<compile_context>
chip_gen: v7x
topology: tpu7x:2x2x1
jax: 0.10.0
libtpu: 0.0.40
codegen_flags: <defaults>
</compile_context>

<pallas_src>
import functools

import jax
import jax.numpy as jnp
from jax import lax
from jax.experimental import pallas as pl
from jax.experimental.pallas import tpu as pltpu

NUM_RBF = 16
NUM_POS_EMB = 16
MAX_REL = 32                        # max_relative_feature
NUM_POS_CLASSES = 2 * MAX_REL + 2   # 66
ONEHOT_PAD = 128                    # pad one-hot classes to a full lane width
RBF_D_MIN, RBF_D_MAX = 2.0, 22.0
RBF_SIGMA = (RBF_D_MAX - RBF_D_MIN) / NUM_RBF
INV_SIGMA = 1.0 / RBF_SIGMA
RBF_DIM = 9 * NUM_RBF               # 144
AUX_DIM = 1 + 9 + 7                 # [d_idx | D9 | O7] = 17 lanes / edge
LN_EPS = 1e-5
TILE_ROWS_MAX = 4096


def _round_up(n, m):
    return ((n + m - 1) // m) * m


def _choose_tile(n):
    """Row-tile size (sublane axis).

    Large tiles amortize the ~0.35 us per-grid-step pipeline overhead (the
    per-edge stream is now only 68 B/row, so small tiles would be overhead
    dominated).  For larger inputs force an EVEN number of roughly equal grid
    steps so the 'parallel' row axis shards evenly across both TensorCores on
    v7x; v5e/v6e (one TC) are unaffected."""
    n = max(n, 8)
    if n <= TILE_ROWS_MAX // 2:
        return _round_up(n, 8)              # single step; splitting tiny work not worth it
    steps = -(-n // TILE_ROWS_MAX)
    steps = max(steps, 2)
    if steps % 2:
        steps += 1                          # balanced megacore split (v7x)
    return max(_round_up(-(-n // steps), 8), 8)


# ----------------------------------------------------------------------------
# Pallas kernel: fused (folded) positional linear + RBF + edge embedding + LN
# ----------------------------------------------------------------------------
def _edge_feature_kernel(aux_ref, T_pos_ref, b_comb_ref, S17_ref, mu_ref,
                         We_rbf_ref, W_aux_ref, gamma_ref, beta_ref, out_ref):
    aux = aux_ref[...]                                   # (TR, 17) f32: [d | D9 | O7]
    tr = aux.shape[0]

    # one-hot positional index (classes padded 66 -> 128; extra rows of the
    # folded weight are zero).  Positional linear is folded into the edge
    # embedding:  onehot @ (Wpos^T @ We_pos) + (b_pos @ We_pos)
    d = aux[:, 0:1].astype(jnp.int32)                    # exact small ints
    iota = lax.broadcasted_iota(jnp.int32, (tr, ONEHOT_PAD), 1)
    onehot = (iota == d).astype(jnp.bfloat16)            # (TR, 128)
    acc = jnp.dot(onehot, T_pos_ref[...],
                  preferred_element_type=jnp.float32)    # (TR, E)
    acc = acc + b_comb_ref[...]

    # in-kernel x16 RBF expansion: aux @ S17 (0/1 selection, rows 1..9) repeats
    # each of the 9 distances 16 times.  Exact even through the MXU f32 path
    # (weights are exactly 0/1), and it keeps the HBM input at 9 lanes instead
    # of the old pre-repeated 144-lane stream.
    d_exp = jnp.dot(aux, S17_ref[...],
                    preferred_element_type=jnp.float32)  # (TR, 144) f32
    z = (d_exp - mu_ref[...]) * INV_SIGMA
    rbf = jnp.exp(-(z * z)).astype(jnp.bfloat16)
    acc = acc + jnp.dot(rbf, We_rbf_ref[...],
                        preferred_element_type=jnp.float32)

    # orientation / quaternion features: rows 10..16 of W_aux hold We_O (f32),
    # other rows are zero, so no lane-unaligned slicing of aux is needed.
    acc = acc + jnp.dot(aux, W_aux_ref[...],
                        preferred_element_type=jnp.float32)

    # two-pass LayerNorm over the feature axis (f32, better parity with torch)
    inv_e = 1.0 / acc.shape[-1]
    mean = jnp.sum(acc, axis=-1, keepdims=True) * inv_e
    xc = acc - mean
    var = jnp.sum(xc * xc, axis=-1, keepdims=True) * inv_e
    inv = lax.rsqrt(var + LN_EPS)
    out_ref[...] = (xc * inv * gamma_ref[...] + beta_ref[...]).astype(out_ref.dtype)


def edge_embed_pallas(d_idx, D9, O7, params, edge_features,
                      out_dtype=jnp.float32):
    """d_idx (N,1) int32, D9 (N,9) f32, O7 (N,7) f32 -> (N, edge_features)."""
    N = d_idx.shape[0]
    E = edge_features
    tile = _choose_tile(N)
    Np = _round_up(N, tile)
    n_pad = Np - N

    # single narrow per-edge stream: [d_idx | D9 | O7] = 17 f32 lanes (68 B/row).
    # XLA fuses this concat with the upstream gathers; padding (when needed)
    # now only touches this narrow array.
    aux = jnp.concatenate([d_idx.astype(jnp.float32),
                           D9.astype(jnp.float32),
                           O7.astype(jnp.float32)], axis=-1)       # (N, 17)
    if n_pad:
        aux = jnp.pad(aux, ((0, n_pad), (0, 0)))
    grid = (Np // tile,)

    # weight prep (fold positional linear into the edge-embedding weight)
    We = params['W_edge'].T.astype(jnp.float32)          # (167, E)
    We_pos = We[:NUM_POS_EMB]                            # (16, E)
    We_rbf = We[NUM_POS_EMB:NUM_POS_EMB + RBF_DIM]       # (144, E)
    We_O = We[NUM_POS_EMB + RBF_DIM:]                    # (7, E)

    Wpos_pad = jnp.zeros((ONEHOT_PAD, NUM_POS_EMB), jnp.float32)
    Wpos_pad = Wpos_pad.at[:NUM_POS_CLASSES].set(params['W_pos'].T)
    T_pos = (Wpos_pad @ We_pos).astype(jnp.bfloat16)     # (128, E)
    b_comb = (params['b_pos'].astype(jnp.float32) @ We_pos).reshape(1, -1)

    # 0/1 selection matrix for the in-kernel RBF expansion: column l picks
    # distance (l // 16), i.e. row 1 + l//16 of the aux stream.
    row_i = jnp.arange(AUX_DIM)[:, None]
    col_i = jnp.arange(RBF_DIM)[None, :]
    S17 = ((col_i // NUM_RBF) + 1 == row_i).astype(jnp.float32)    # (17, 144)

    # orientation projection folded onto the same 17-lane stream (f32, tiny K)
    W_aux = jnp.zeros((AUX_DIM, E), jnp.float32).at[1 + 9:].set(We_O)

    mu144 = jnp.tile(
        jnp.linspace(RBF_D_MIN, RBF_D_MAX, NUM_RBF).astype(jnp.float32),
        (9,)).reshape(1, RBF_DIM)
    We_rbf_b = We_rbf.astype(jnp.bfloat16)
    gamma = params['ln_gamma'].reshape(1, -1).astype(jnp.float32)
    beta = params['ln_beta'].reshape(1, -1).astype(jnp.float32)

    row = lambda i: (i, 0)
    full = lambda i: (0, 0)

    out = pl.pallas_call(
        _edge_feature_kernel,
        out_shape=jax.ShapeDtypeStruct((Np, E), out_dtype),
        grid=grid,
        in_specs=[
            pl.BlockSpec((tile, AUX_DIM), row),                    # aux
            pl.BlockSpec((ONEHOT_PAD, E), full),                   # T_pos
            pl.BlockSpec((1, E), full),                            # b_comb
            pl.BlockSpec((AUX_DIM, RBF_DIM), full),                # S17
            pl.BlockSpec((1, RBF_DIM), full),                      # mu144
            pl.BlockSpec((RBF_DIM, E), full),                      # We_rbf
            pl.BlockSpec((AUX_DIM, E), full),                      # W_aux
            pl.BlockSpec((1, E), full),                            # gamma
            pl.BlockSpec((1, E), full),                            # beta
        ],
        out_specs=pl.BlockSpec((tile, E), row),
        compiler_params=pltpu.CompilerParams(
            dimension_semantics=("parallel",),
            vmem_limit_bytes=48 * 1024 * 1024),
    )(aux, T_pos, b_comb, S17, mu144, We_rbf_b, W_aux, gamma, beta)
    return out[:N]


# ----------------------------------------------------------------------------
# Plain-JAX geometry glue (distances, top-k, gathers, frames, quaternions)
# ----------------------------------------------------------------------------
def _normalize(x, axis=-1, eps=1e-12):
    n = jnp.linalg.norm(x, axis=axis, keepdims=True)
    return x / jnp.maximum(n, eps)


def gather_edges(edges, idx):
    # edges [B,L,L,C], idx [B,L,K] -> [B,L,K,C]
    return jnp.take_along_axis(edges, idx[..., None], axis=2)


def gather_nodes(nodes, idx):
    # nodes [B,L,C], idx [B,L,K] -> [B,L,K,C]
    return jax.vmap(lambda n, i: n[i])(nodes, idx)


def _dist(X, mask, top_k, eps=1e-6):
    mask_2D = mask[:, None, :] * mask[:, :, None]
    dX = X[:, None, :, :] - X[:, :, None, :]
    D = mask_2D * jnp.sqrt(jnp.sum(dX ** 2, axis=-1) + eps)
    D_max = jnp.max(D, axis=-1, keepdims=True)
    D_adjust = D + (1.0 - mask_2D) * D_max
    k = min(top_k, X.shape[1])
    # TODO(synk): torch.topk(largest=False) reimplemented via lax.top_k on -D (XLA sort, not Pallas)
    neg_vals, E_idx = lax.top_k(-D_adjust, k)
    return -neg_vals, E_idx, k


def _quaternions(R):
    diag = jnp.diagonal(R, axis1=-2, axis2=-1)                   # [...,3]
    Rxx, Ryy, Rzz = diag[..., 0], diag[..., 1], diag[..., 2]
    magnitudes = 0.5 * jnp.sqrt(jnp.abs(1.0 + jnp.stack(
        [Rxx - Ryy - Rzz, -Rxx + Ryy - Rzz, -Rxx - Ryy + Rzz], axis=-1)))
    signs = jnp.sign(jnp.stack([R[..., 2, 1] - R[..., 1, 2],
                                R[..., 0, 2] - R[..., 2, 0],
                                R[..., 1, 0] - R[..., 0, 1]], axis=-1))
    xyz = signs * magnitudes
    w = jnp.sqrt(jax.nn.relu(1.0 + jnp.sum(diag, axis=-1, keepdims=True))) / 2.0
    Q = jnp.concatenate([xyz, w], axis=-1)
    return _normalize(Q, axis=-1)


def _orientations_coarse(X, E_idx):
    # Only O_features are needed by forward() (AD_features "V" is discarded).
    B, L, _ = X.shape
    dX = X[:, 1:, :] - X[:, :-1, :]
    dX_norm = jnp.linalg.norm(dX, axis=-1)
    dX_mask = ((3.6 < dX_norm) & (dX_norm < 4.0)).astype(X.dtype)
    dX = dX * dX_mask[:, :, None]
    U = _normalize(dX, axis=-1)
    u_2, u_1 = U[:, :-2, :], U[:, 1:-1, :]
    n_2 = _normalize(jnp.cross(u_2, u_1), axis=-1)
    o_1 = _normalize(u_2 - u_1, axis=-1)
    O = jnp.stack([o_1, n_2, jnp.cross(o_1, n_2)], axis=2)       # [B,L-3,3,3]
    O = O.reshape(B, L - 3, 9)
    O = jnp.pad(O, ((0, 0), (1, 2), (0, 0)))                     # [B,L,9]

    O_neighbors = gather_nodes(O, E_idx)                         # [B,L,K,9]
    X_neighbors = gather_nodes(X, E_idx)                         # [B,L,K,3]
    O = O.reshape(B, L, 3, 3)
    O_neighbors = O_neighbors.reshape(B, L, -1, 3, 3)

    dXn = X_neighbors - X[:, :, None, :]
    dU = jnp.einsum('blij,blkj->blki', O, dXn)
    dU = _normalize(dU, axis=-1)
    R = jnp.einsum('blji,blkjm->blkim', O, O_neighbors)          # O^T @ O_nbr
    Q = _quaternions(R)
    return jnp.concatenate([dU, Q], axis=-1)                     # [B,L,K,7]


def _pair_dist_gather(A, Bc, E_idx):
    D = jnp.sqrt(jnp.sum((A[:, :, None, :] - Bc[:, None, :, :]) ** 2, axis=-1) + 1e-6)
    return gather_edges(D[..., None], E_idx)[..., 0]


def ca_protein_features_forward(params, Ca, mask, residue_idx, chain_labels,
                                top_k=30, edge_features=64,
                                out_dtype=jnp.float32):
    # out_dtype=jnp.bfloat16 halves edge-embedding writeback if the downstream
    # edge MLP accepts bf16; f32 default preserves the PyTorch output dtype.
    B, L, _ = Ca.shape
    D_neighbors, E_idx, K = _dist(Ca, mask, top_k)

    Ca_0 = jnp.zeros_like(Ca).at[:, 1:, :].set(Ca[:, :-1, :])
    Ca_1 = Ca
    Ca_2 = jnp.zeros_like(Ca).at[:, :-1, :].set(Ca[:, 1:, :])

    O_features = _orientations_coarse(Ca, E_idx)                 # [B,L,K,7]

    D_list = [D_neighbors]
    for A, Bc in [(Ca_0, Ca_0), (Ca_2, Ca_2), (Ca_0, Ca_1), (Ca_0, Ca_2),
                  (Ca_1, Ca_0), (Ca_1, Ca_2), (Ca_2, Ca_0), (Ca_2, Ca_1)]:
        D_list.append(_pair_dist_gather(A, Bc, E_idx))
    D9 = jnp.stack(D_list, axis=-1)                              # [B,L,K,9]

    offset = residue_idx[:, :, None] - residue_idx[:, None, :]
    offset = gather_edges(offset[..., None], E_idx)[..., 0]
    d_chains = (chain_labels[:, :, None] - chain_labels[:, None, :] == 0).astype(jnp.int32)
    E_chains = gather_edges(d_chains[..., None], E_idx)[..., 0]
    d_idx = (jnp.clip(offset + MAX_REL, 0, 2 * MAX_REL) * E_chains
             + (1 - E_chains) * (2 * MAX_REL + 1)).astype(jnp.int32)

    N = B * L * K
    E = edge_embed_pallas(d_idx.reshape(N, 1),
                          D9.reshape(N, 9).astype(jnp.float32),
                          O_features.reshape(N, 7).astype(jnp.float32),
                          params, edge_features, out_dtype=out_dtype)
    return E.reshape(B, L, K, edge_features), E_idx


# Pure-JAX reference of the fused kernel portion (sanity check only).
def _edge_embed_ref(d_idx, D9, O7, params):
    onehot = jax.nn.one_hot(d_idx[:, 0], NUM_POS_CLASSES, dtype=jnp.float32)
    e_pos = onehot @ params['W_pos'].T + params['b_pos']
    mu = jnp.linspace(RBF_D_MIN, RBF_D_MAX, NUM_RBF)
    rbf = jnp.exp(-(((D9[..., None] - mu) * INV_SIGMA) ** 2)).reshape(D9.shape[0], -1)
    feat = jnp.concatenate([e_pos, rbf, O7], axis=-1)
    x = feat @ params['W_edge'].T
    mean = x.mean(-1, keepdims=True)
    var = ((x - mean) ** 2).mean(-1, keepdims=True)
    return (x - mean) / jnp.sqrt(var + LN_EPS) * params['ln_gamma'] + params['ln_beta']


if __name__ == "__main__":
    B, L = 2, 16
    edge_features = 64
    node_features = 64  # node_embedding / norm_nodes are unused in forward()

    key = jax.random.PRNGKey(0)
    k1, k2, k3, k4 = jax.random.split(key, 4)

    # chain-like CA trace with ~3.85 Å consecutive spacing (+ small noise)
    t = jnp.arange(L, dtype=jnp.float32)
    base = jnp.stack([3.8 * t, 2.0 * jnp.sin(0.3 * t), 2.0 * jnp.cos(0.3 * t)], axis=-1)
    Ca = base[None] + 0.05 * jax.random.normal(k1, (B, L, 3), jnp.float32)
    mask = jnp.ones((B, L), jnp.float32)
    residue_idx = jnp.broadcast_to(jnp.arange(L, dtype=jnp.int32), (B, L))
    chain_labels = jnp.concatenate(
        [jnp.zeros((B, L // 2), jnp.int32), jnp.ones((B, L // 2), jnp.int32)], axis=1)

    edge_in = NUM_POS_EMB + NUM_RBF * 9 + 7   # 167
    params = {
        'W_pos': 0.1 * jax.random.normal(k2, (NUM_POS_EMB, NUM_POS_CLASSES), jnp.float32),
        'b_pos': 0.1 * jax.random.normal(k3, (NUM_POS_EMB,), jnp.float32),
        'W_edge': 0.1 * jax.random.normal(k4, (edge_features, edge_in), jnp.float32),
        'ln_gamma': jnp.ones((edge_features,), jnp.float32),
        'ln_beta': jnp.zeros((edge_features,), jnp.float32),
    }

    fwd = jax.jit(functools.partial(ca_protein_features_forward,
                                    top_k=30, edge_features=edge_features))
    E, E_idx = fwd(params, Ca, mask, residue_idx, chain_labels)
    E = jax.block_until_ready(E)
    E_idx = jax.block_until_ready(E_idx)

    assert E.shape == (B, L, min(30, L), edge_features)
    assert bool(jnp.isfinite(E).all())

    # sanity check of the Pallas-fused portion against plain JAX
    D_neighbors, idx, K = _dist(Ca, mask, 30)
    Ca_0 = jnp.zeros_like(Ca).at[:, 1:, :].set(Ca[:, :-1, :])
    Ca_2 = jnp.zeros_like(Ca).at[:, :-1, :].set(Ca[:, 1:, :])
    O_features = _orientations_coarse(Ca, idx)
    D_list = [D_neighbors] + [_pair_dist_gather(A, Bc, idx) for A, Bc in
                              [(Ca_0, Ca_0), (Ca_2, Ca_2), (Ca_0, Ca), (Ca_0, Ca_2),
                               (Ca, Ca_0), (Ca, Ca_2), (Ca_2, Ca_0), (Ca_2, Ca)]]
    D9 = jnp.stack(D_list, axis=-1)
    offset = gather_edges((residue_idx[:, :, None] - residue_idx[:, None, :])[..., None], idx)[..., 0]
    E_chains = gather_edges(((chain_labels[:, :, None] - chain_labels[:, None, :]) == 0)
                            .astype(jnp.int32)[..., None], idx)[..., 0]
    d_idx = (jnp.clip(offset + MAX_REL, 0, 2 * MAX_REL) * E_chains
             + (1 - E_chains) * (2 * MAX_REL + 1)).astype(jnp.int32)
    N = B * L * K
    ref = _edge_embed_ref(d_idx.reshape(N, 1), D9.reshape(N, 9),
                          O_features.reshape(N, 7), params)
    if not bool(jnp.allclose(E.reshape(N, edge_features), ref, rtol=5e-2, atol=5e-2)):
        raise AssertionError("Pallas edge embedding deviates from JAX reference")

    print("KERNEL_OK")
</pallas_src>

<mosaic_0001>
module attributes {stable_mosaic.version = 11 : i64} {
  func.func @_edge_feature_kernel(%arg0: i32, %arg1: memref<512x17xf32, #tpu.memory_space<vmem>>, %arg2: memref<128x64xbf16, #tpu.memory_space<vmem>>, %arg3: memref<1x64xf32, #tpu.memory_space<vmem>>, %arg4: memref<17x144xf32, #tpu.memory_space<vmem>>, %arg5: memref<1x144xf32, #tpu.memory_space<vmem>>, %arg6: memref<144x64xbf16, #tpu.memory_space<vmem>>, %arg7: memref<17x64xf32, #tpu.memory_space<vmem>>, %arg8: memref<1x64xf32, #tpu.memory_space<vmem>>, %arg9: memref<1x64xf32, #tpu.memory_space<vmem>>, %arg10: memref<512x64xf32, #tpu.memory_space<vmem>>) attributes {dimension_semantics = [#tpu.dimension_semantics<parallel>], iteration_bounds = array<i64: 1>, scalar_prefetch = 0 : i64, scratch_operands = 0 : i64, tpu.core_type = #tpu.core_type<tc>, window_params = [{transform_indices = @transform_0, window_bounds = array<i64: 512, 17>}, {pipeline_mode = #tpu.pipeline_mode<synchronous>, transform_indices = @transform_1, window_bounds = array<i64: 128, 64>}, {pipeline_mode = #tpu.pipeline_mode<synchronous>, transform_indices = @transform_2, window_bounds = array<i64: 1, 64>}, {pipeline_mode = #tpu.pipeline_mode<synchronous>, transform_indices = @transform_3, window_bounds = array<i64: 17, 144>}, {pipeline_mode = #tpu.pipeline_mode<synchronous>, transform_indices = @transform_4, window_bounds = array<i64: 1, 144>}, {pipeline_mode = #tpu.pipeline_mode<synchronous>, transform_indices = @transform_5, window_bounds = array<i64: 144, 64>}, {pipeline_mode = #tpu.pipeline_mode<synchronous>, transform_indices = @transform_6, window_bounds = array<i64: 17, 64>}, {pipeline_mode = #tpu.pipeline_mode<synchronous>, transform_indices = @transform_7, window_bounds = array<i64: 1, 64>}, {pipeline_mode = #tpu.pipeline_mode<synchronous>, transform_indices = @transform_8, window_bounds = array<i64: 1, 64>}, {transform_indices = @transform_9, window_bounds = array<i64: 512, 64>}]} {
    %c0 = arith.constant 0 : index
    %c0_0 = arith.constant 0 : index
    %0 = vector.load %arg1[%c0, %c0_0] : memref<512x17xf32, #tpu.memory_space<vmem>>, vector<512x17xf32>
    %1 = vector.extract_strided_slice %0 {offsets = [0, 0], sizes = [512, 1], strides = [1, 1]} : vector<512x17xf32> to vector<512x1xf32>
    %2 = arith.fptosi %1 : vector<512x1xf32> to vector<512x1xi32>
    %3 = tpu.iota {dimensions = array<i32: 1>} : vector<512x128xi32>
    %4 = vector.broadcast %2 : vector<512x1xi32> to vector<512x128xi32>
    %5 = arith.cmpi eq, %3, %4 : vector<512x128xi32>
    %6 = arith.extui %5 : vector<512x128xi1> to vector<512x128xi32>
    %7 = arith.sitofp %6 : vector<512x128xi32> to vector<512x128xf32>
    %8 = arith.truncf %7 : vector<512x128xf32> to vector<512x128xbf16>
    %c0_1 = arith.constant 0 : index
    %c0_2 = arith.constant 0 : index
    %9 = vector.load %arg2[%c0_1, %c0_2] : memref<128x64xbf16, #tpu.memory_space<vmem>>, vector<128x64xbf16>
    %cst = arith.constant dense<0.000000e+00> : vector<512x64xf32>
    %10 = tpu.matmul %8, %9, %cst {dimension_numbers = #tpu.dot_dimension_numbers<[1], [0], [0], [1], [0, 0, 1, 1], [], []>} : vector<512x128xbf16>, vector<128x64xbf16>, vector<512x64xf32> -> vector<512x64xf32>
    %c0_3 = arith.constant 0 : index
    %c0_4 = arith.constant 0 : index
    %11 = vector.load %arg3[%c0_3, %c0_4] : memref<1x64xf32, #tpu.memory_space<vmem>>, vector<1x64xf32>
    %12 = vector.broadcast %11 : vector<1x64xf32> to vector<512x64xf32>
    %13 = arith.addf %10, %12 : vector<512x64xf32>
    %c0_5 = arith.constant 0 : index
    %c0_6 = arith.constant 0 : index
    %14 = vector.load %arg4[%c0_5, %c0_6] : memref<17x144xf32, #tpu.memory_space<vmem>>, vector<17x144xf32>
    %cst_7 = arith.constant dense<0.000000e+00> : vector<512x144xf32>
    %15 = tpu.matmul %0, %14, %cst_7 {dimension_numbers = #tpu.dot_dimension_numbers<[1], [0], [0], [1], [0, 0, 1, 1], [], []>} : vector<512x17xf32>, vector<17x144xf32>, vector<512x144xf32> -> vector<512x144xf32>
    %c0_8 = arith.constant 0 : index
    %c0_9 = arith.constant 0 : index
    %16 = vector.load %arg5[%c0_8, %c0_9] : memref<1x144xf32, #tpu.memory_space<vmem>>, vector<1x144xf32>
    %17 = vector.broadcast %16 : vector<1x144xf32> to vector<512x144xf32>
    %18 = arith.subf %15, %17 : vector<512x144xf32>
    %cst_10 = arith.constant 8.000000e-01 : f32
    %19 = vector.broadcast %cst_10 : f32 to vector<512x144xf32>
    %20 = arith.mulf %18, %19 : vector<512x144xf32>
    %21 = arith.mulf %20, %20 : vector<512x144xf32>
    %cst_11 = arith.constant 0.000000e+00 : f32
    %22 = vector.broadcast %cst_11 : f32 to vector<512x144xf32>
    %23 = arith.subf %22, %21 : vector<512x144xf32>
    %24 = math.exp %23 : vector<512x144xf32>
    %25 = arith.truncf %24 : vector<512x144xf32> to vector<512x144xbf16>
    %c0_12 = arith.constant 0 : index
    %c0_13 = arith.constant 0 : index
    %26 = vector.load %arg6[%c0_12, %c0_13] : memref<144x64xbf16, #tpu.memory_space<vmem>>, vector<144x64xbf16>
    %cst_14 = arith.constant dense<0.000000e+00> : vector<512x64xf32>
    %27 = tpu.matmul %25, %26, %cst_14 {dimension_numbers = #tpu.dot_dimension_numbers<[1], [0], [0], [1], [0, 0, 1, 1], [], []>} : vector<512x144xbf16>, vector<144x64xbf16>, vector<512x64xf32> -> vector<512x64xf32>
    %28 = arith.addf %13, %27 : vector<512x64xf32>
    %c0_15 = arith.constant 0 : index
    %c0_16 = arith.constant 0 : index
    %29 = vector.load %arg7[%c0_15, %c0_16] : memref<17x64xf32, #tpu.memory_space<vmem>>, vector<17x64xf32>
    %cst_17 = arith.constant dense<0.000000e+00> : vector<512x64xf32>
    %30 = tpu.matmul %0, %29, %cst_17 {dimension_numbers = #tpu.dot_dimension_numbers<[1], [0], [0], [1], [0, 0, 1, 1], [], []>} : vector<512x17xf32>, vector<17x64xf32>, vector<512x64xf32> -> vector<512x64xf32>
    %31 = arith.addf %28, %30 : vector<512x64xf32>
    %cst_18 = arith.constant dense<0.000000e+00> : vector<512xf32>
    %32 = vector.multi_reduction <add>, %31, %cst_18 [1] : vector<512x64xf32> to vector<512xf32>
    %33 = vector.shape_cast %32 : vector<512xf32> to vector<512x1xf32>
    %cst_19 = arith.constant 1.562500e-02 : f32
    %34 = vector.broadcast %cst_19 : f32 to vector<512x1xf32>
    %35 = arith.mulf %33, %34 : vector<512x1xf32>
    %36 = vector.broadcast %35 : vector<512x1xf32> to vector<512x64xf32>
    %37 = arith.subf %31, %36 : vector<512x64xf32>
    %38 = arith.mulf %37, %37 : vector<512x64xf32>
    %cst_20 = arith.constant dense<0.000000e+00> : vector<512xf32>
    %39 = vector.multi_reduction <add>, %38, %cst_20 [1] : vector<512x64xf32> to vector<512xf32>
    %40 = vector.shape_cast %39 : vector<512xf32> to vector<512x1xf32>
    %cst_21 = arith.constant 1.562500e-02 : f32
    %41 = vector.broadcast %cst_21 : f32 to vector<512x1xf32>
    %42 = arith.mulf %40, %41 : vector<512x1xf32>
    %cst_22 = arith.constant 9.99999974E-6 : f32
    %43 = vector.broadcast %cst_22 : f32 to vector<512x1xf32>
    %44 = arith.addf %42, %43 : vector<512x1xf32>
    %45 = math.rsqrt %44 : vector<512x1xf32>
    %46 = vector.broadcast %45 : vector<512x1xf32> to vector<512x64xf32>
    %47 = arith.mulf %37, %46 : vector<512x64xf32>
    %c0_23 = arith.constant 0 : index
    %c0_24 = arith.constant 0 : index
    %48 = vector.load %arg8[%c0_23, %c0_24] : memref<1x64xf32, #tpu.memory_space<vmem>>, vector<1x64xf32>
    %49 = vector.broadcast %48 : vector<1x64xf32> to vector<512x64xf32>
    %50 = arith.mulf %47, %49 : vector<512x64xf32>
    %c0_25 = arith.constant 0 : index
    %c0_26 = arith.constant 0 : index
    %51 = vector.load %arg9[%c0_25, %c0_26] : memref<1x64xf32, #tpu.memory_space<vmem>>, vector<1x64xf32>
    %52 = vector.broadcast %51 : vector<1x64xf32> to vector<512x64xf32>
    %53 = arith.addf %50, %52 : vector<512x64xf32>
    %c0_27 = arith.constant 0 : index
    %c0_28 = arith.constant 0 : index
    %54 = vector.load %arg10[%c0_27, %c0_28] : memref<512x64xf32, #tpu.memory_space<vmem>>, vector<512x64xf32>
    tpu.vector_store %arg10[%c0_27, %c0_28], %53 {strides = array<i32>} : memref<512x64xf32, #tpu.memory_space<vmem>>, vector<512x64xf32>,
    return
  }
  func.func @transform_0(%arg0: i32) -> (i32, i32) {
    %c0_i32 = arith.constant 0 : i32
    %c0_i32_0 = arith.constant 0 : i32
    return %arg0, %c0_i32 : i32, i32
  }
  func.func @transform_1(%arg0: i32) -> (i32, i32) {
    %c0_i32 = arith.constant 0 : i32
    %c0_i32_0 = arith.constant 0 : i32
    %c0_i32_1 = arith.constant 0 : i32
    return %c0_i32, %c0_i32_0 : i32, i32
  }
  func.func @transform_2(%arg0: i32) -> (i32, i32) {
    %c0_i32 = arith.constant 0 : i32
    %c0_i32_0 = arith.constant 0 : i32
    %c0_i32_1 = arith.constant 0 : i32
    return %c0_i32, %c0_i32_0 : i32, i32
  }
  func.func @transform_3(%arg0: i32) -> (i32, i32) {
    %c0_i32 = arith.constant 0 : i32
    %c0_i32_0 = arith.constant 0 : i32
    %c0_i32_1 = arith.constant 0 : i32
    return %c0_i32, %c0_i32_0 : i32, i32
  }
  func.func @transform_4(%arg0: i32) -> (i32, i32) {
    %c0_i32 = arith.constant 0 : i32
    %c0_i32_0 = arith.constant 0 : i32
    %c0_i32_1 = arith.constant 0 : i32
    return %c0_i32, %c0_i32_0 : i32, i32
  }
  func.func @transform_5(%arg0: i32) -> (i32, i32) {
    %c0_i32 = arith.constant 0 : i32
    %c0_i32_0 = arith.constant 0 : i32
    %c0_i32_1 = arith.constant 0 : i32
    return %c0_i32, %c0_i32_0 : i32, i32
  }
  func.func @transform_6(%arg0: i32) -> (i32, i32) {
    %c0_i32 = arith.constant 0 : i32
    %c0_i32_0 = arith.constant 0 : i32
    %c0_i32_1 = arith.constant 0 : i32
    return %c0_i32, %c0_i32_0 : i32, i32
  }
  func.func @transform_7(%arg0: i32) -> (i32, i32) {
    %c0_i32 = arith.constant 0 : i32
    %c0_i32_0 = arith.constant 0 : i32
    %c0_i32_1 = arith.constant 0 : i32
    return %c0_i32, %c0_i32_0 : i32, i32
  }
  func.func @transform_8(%arg0: i32) -> (i32, i32) {
    %c0_i32 = arith.constant 0 : i32
    %c0_i32_0 = arith.constant 0 : i32
    %c0_i32_1 = arith.constant 0 : i32
    return %c0_i32, %c0_i32_0 : i32, i32
  }
  func.func @transform_9(%arg0: i32) -> (i32, i32) {
    %c0_i32 = arith.constant 0 : i32
    %c0_i32_0 = arith.constant 0 : i32
    return %arg0, %c0_i32 : i32, i32
  }
}

</mosaic_0001>

<bundles_post_ra>
// kernel: tile.8
= control target key start
LH: loop header
LB: loop body
LE: loop exit
PB: predicated region body
PF: predicated region fallthrough
CT: control target
= control target key end

     0   :  { %s28_s0 = inlined_call_operand.vmem [shape: f32[16], index: 0, kind: input, shape index: {}]   ;;  %s29_s1 = inlined_call_operand.vmem [shape: f32[9,16], index: 1, kind: output, shape index: {}]  }
   0x1   :  { %v4_v0 = vld [vmem:[%s28_s0] ss:$0 sm:$0xff] }
   0x2   :  { %5 = vst [vmem:[%s29_s1] sm:$0xff] %v4_v0  ;;  %8 = vst [vmem:[%s29_s1 + $0x8] sm:$0xff] %v4_v0 }

// kernel: tile.9
= control target key start
LH: loop header
LB: loop body
LE: loop exit
PB: predicated region body
PF: predicated region fallthrough
CT: control target
= control target key end

     0   :  { %s74_s10 = smov 112   ;;  %s75_s11 = smov 80   ;;  %vm4_vm0 = vcmask 130048   ;;  %vm10_vm1 = vcmask 1048448   ;;  %vm16_vm2 = vcmask 917248   ;;  %vm22_vm3 = vcmask 786048   ;;  %s121_s0 = inlined_call_operand.vmem [shape: f32[9,16], index: 0, kind: input, shape index: {}]   ;;  %s122_s1 = inlined_call_operand.vmem [shape: f32[1,144], index: 1, kind: output, shape index: {}]  }
   0x1   :  { %v59_v0 = vld [vmem:[%s121_s0 + $0x7] sm:$0x1]   ;;  %v61_v1 = vld [vmem:[%s121_s0 + $0x5] sm:$0x1]   ;;  %v60_v2 = vld [vmem:[%s121_s0 + $0x6] sm:$0x1]  }
   0x2   :  { %8 = vrot.lane.b32.xlu0 %v59_v0, %s74_s10  ;;  %20 = vrot.lane.b32.xlu1 %v61_v1, %s75_s11  ;;  %v62_v3 = vld [vmem:[%s121_s0 + $0x4] sm:$0x1]   ;;  %s2_s16 = smov 3  ;;  %s76_s19 = smov 96   ;;  %v63_v5 = vld [vmem:[%s121_s0 + $0x3] sm:$0x1]  }
   0x3   :  { %v3_v4 = vld [vmem:[%s121_s0] ss:$8 sm:%s2_s16]   ;;  %s77_s20 = smov 64   ;;  %v64_v6 = vld [vmem:[%s121_s0 + $0x2] sm:$0x1]   ;;  %s78_s25 = smov 48  }
   0x4   :  { %5 = vst.msk [vmem:[#allocation0] ss:$8 sm:$0x3] %vm4_vm0, %v3_v4   ;;  %s79_s26 = smov 32   ;;  %v65_v7 = vld [vmem:[%s121_s0 + $0x1] sm:$0x1]  }
   0x5   :  { %s80_s0 = smov 16   ;;  %vm28_vm4 = vcmask 654848   ;;  %vm34_vm5 = vcmask 523648   ;;  %vm40_vm6 = vcmask 392448   ;;  %vm46_vm7 = vcmask 261248  }
   0x6   :  { %14 = vrot.lane.b32.xlu0 %v60_v2, %s76_s19  ;;  %26 = vrot.lane.b32.xlu1 %v62_v3, %s77_s20 }
   0xa   :  { %32 = vrot.lane.b32.xlu0 %v63_v5, %s78_s25  ;;  %38 = vrot.lane.b32.xlu1 %v64_v6, %s79_s26 }
   0xb   :  { %v55_v8 = vld [vmem:[#allocation0 + $0x8] sm:$0x1] }
   0xc   :  { %66 = vst [vmem:[%s122_s1 + $0x1] sm:$0x1] %v55_v8 }
   0xe   :  { %44 = vrot.lane.b32.xlu0 %v65_v7, %s80_s0 }
  0x74   :  { %v9_v9 = vpop.permute.xlu0 %8   ;;  %v21_v10 = vpop.permute.xlu1 %20  }
  0x75   :  { %11 = vst.msk [vmem:[#allocation0] sm:$0x1] %vm10_vm1, %v9_v9  }
  0x78   :  { %v15_v11 = vpop.permute.xlu0 %14   ;;  %v27_v12 = vpop.permute.xlu1 %26  }
  0x79   :  { %17 = vst.msk [vmem:[#allocation0] sm:$0x1] %vm16_vm2, %v15_v11  }
  0x7a   :  { %23 = vst.msk [vmem:[#allocation0] sm:$0x1] %vm22_vm3, %v21_v10  }
  0x7b   :  { %29 = vst.msk [vmem:[#allocation0] sm:$0x1] %vm28_vm4, %v27_v12  }
  0x7c   :  { %v33_v13 = vpop.permute.xlu0 %32   ;;  %v39_v14 = vpop.permute.xlu1 %38  }
  0x7d   :  { %35 = vst.msk [vmem:[#allocation0] sm:$0x1] %vm34_vm5, %v33_v13  }
  0x7e   :  { %41 = vst.msk [vmem:[#allocation0] sm:$0x1] %vm40_vm6, %v39_v14  }
  0x80   :  { %v45_v15 = vpop.permute.xlu0 %44  }
  0x81   :  { %47 = vst.msk [vmem:[#allocation0] sm:$0x1] %vm46_vm7, %v45_v15  }
  0x88   :  { %v51_v16 = vld [vmem:[#allocation0] sm:$0x1] }
  0x89   :  { %53 = vst [vmem:[%s122_s1] sm:$0x1] %v51_v16 }

// kernel: neg.5
= control target key start
LH: loop header
LB: loop body
LE: loop exit
PB: predicated region body
PF: predicated region fallthrough
CT: control target
= control target key end

     0   :  { %s72_s0 = inlined_call_operand.vmem [shape: f32[2,16,16], index: 0, kind: input, shape index: {}]   ;;  %s73_s1 = inlined_call_operand.vmem [shape: f32[2,16,16], index: 1, kind: output, shape index: {}]  }
   0x1   :  { %v2_v0 = vld [vmem:[%s72_s0] sm:$0xff]  ;;  %v32_v1 = vld [vmem:[%s72_s0 + $0x10] sm:$0xff]  ;;  %v34_v2 = vld [vmem:[%s72_s0 + $0x8] sm:$0xff] }
   0x2   :  { %v5_v3 = vxor.u32 2147483648, %v2_v0  ;;  %v12_v4 = vxor.u32 2147483648, %v32_v1  ;;  %v20_v5 = vxor.u32 2147483648, %v34_v2  ;;  %v36_v6 = vld [vmem:[%s72_s0 + $0x18] sm:$0xff] }
   0x3   :  { %v28_v7 = vxor.u32 2147483648, %v36_v6 }
   0x4   :  { %7 = vst [vmem:[%s73_s1] sm:$0xff] %v5_v3  ;;  %33 = vst [vmem:[%s73_s1 + $0x10] sm:$0xff] %v12_v4 }
   0x5   :  { %35 = vst [vmem:[%s73_s1 + $0x8] sm:$0xff] %v20_v5  ;;  %37 = vst [vmem:[%s73_s1 + $0x18] sm:$0xff] %v28_v7 }

// kernel: ca_protein_features_forward.1
= control target key start
LH: loop header
LB: loop body
LE: loop exit
PB: predicated region body
PF: predicated region fallthrough
CT: control target
= control target key end

     0   :  { %v5724_v5 = vmov 0   ;;  %vm1139_vm0 = vcmask 1040384   ;;  %v5725_v12 = vmov 0.0   ;;  %vm946_vm1 = vcmask 138240   ;;  %s8908_s0 = inlined_call_operand.vmem [shape: f32[512,17], index: 0, kind: input, shape index: {}]   ;;  %s8909_s1 = inlined_call_operand.vmem [shape: bf16[128,64], index: 1, kind: input, shape index: {}]   ;;  %s8910_s2 = inlined_call_operand.vmem [shape: f32[1,64], index: 2, kind: input, shape index: {}]   ;;  %s8911_s3 = inlined_call_operand.vmem [shape: f32[17,144], index: 3, kind: input, shape index: {}]   ;;  %s8912_s4 = inlined_call_operand.vmem [shape: f32[1,144], index: 4, kind: input, shape index: {}]   ;;  %s8913_s5 = inlined_call_operand.vmem [shape: bf16[144,64], index: 5, kind: input, shape index: {}]   ;;  %s8914_s6 = inlined_call_operand.vmem [shape: f32[17,64], index: 6, kind: input, shape index: {}]   ;;  %s8915_s7 = inlined_call_operand.vmem [shape: f32[1,64], index: 7, kind: input, shape index: {}]   ;;  %s8916_s8 = inlined_call_operand.vmem [shape: f32[1,64], index: 8, kind: input, shape index: {}]   ;;  %s8917_s9 = inlined_call_operand.hbm [shape: f32[512,64], index: 9, kind: output, shape index: {}]  }
   0x1   :  { %v941_v0 = vld [vmem:[%s8911_s3 + $0x8] sm:$0xff]  ;;  %v943_v1 = vld [vmem:[%s8911_s3 + $0x18] sm:$0xff]  ;;  %v940_v2 = vld [vmem:[%s8911_s3] sm:$0xff]  ;;  %5232 = vset.pattern.permute.xlu1 %v5724_v5  ;;  %5231 = vset.pattern.permute.xlu0 %v5724_v5 }
   0x2   :  { %v5071_v3 = vpack.c.bf16 %v943_v1, %v941_v0  ;;  %v942_v4 = vld [vmem:[%s8911_s3 + $0x10] sm:$0xff]  ;;  %v34_v7 = vld [vmem:[%s8908_s0] sm:$0xff]  ;;  %v945_v11 = vld [vmem:[%s8911_s3 + $0x28] sm:$0x1]  ;;  %1210 = vmatprep.mubr.f32.mxu1 %v5725_v12 }
   0x3   :  { %v36_v6 = vld [vmem:[%s8908_s0 + $0x10] sm:$0xff]  ;;  %v5073_v8 = vpack.c.bf16 %v942_v4, %v940_v2  ;;  %v5097_v10 = vtrunc.f32 %v34_v7  ;;  %v37_v13 = vld [vmem:[%s8908_s0 + $0x18] sm:$0xff]  ;;  %v35_v15 = vld [vmem:[%s8908_s0 + $0x8] sm:$0xff] }
   0x4   :  { %v5101_v9 = vtrunc.f32 %v36_v6  ;;  %5072 = vmatprep.subr.bf16.mxu1 %v5071_v3  ;;  %v5103_v14 = vtrunc.f32 %v37_v13  ;;  %v5813_v16 = vld [vmem:[%s8908_s0 + $0x28] sm:$0xff]  ;;  %v38_v17 = vld [vmem:[%s8908_s0 + $0x20] sm:$0xff]  ;;  %v5099_v20 = vtrunc.f32 %v35_v15  ;;  %v5826_v26 = vld [vmem:[%s8908_s0 + $0x38] sm:$0xff] }
   0x5   :  { %5074 = vmatpush1.bf16.msra.mxu1 %v5073_v8  ;;  %v5098_v19 = vcvt.f32.s32 %v5097_v10  ;;  %v944_v21 = vld [vmem:[%s8911_s3 + $0x20] sm:$0x1]  ;;  %v5107_v24 = vtrunc.f32 %v5813_v16  ;;  %v5105_v25 = vtrunc.f32 %v38_v17  ;;  %v5831_v27 = vld [vmem:[%s8908_s0 + $0x30] sm:$0xff]  ;;  %v5111_v30 = vtrunc.f32 %v5826_v26  ;;  %v5842_v32 = vld [vmem:[%s8908_s0 + $0x48] sm:$0xff] }
   0x6   :  { %v5102_v18 = vcvt.f32.s32 %v5101_v9  ;;  %4608 = vmatprep.subr.msk.mxu1 %vm1139_vm0, %v945_v11  ;;  %v5104_v22 = vcvt.f32.s32 %v5103_v14  ;;  %v5100_v23 = vcvt.f32.s32 %v5099_v20  ;;  %v5109_v31 = vtrunc.f32 %v5831_v27  ;;  %v5847_v33 = vld [vmem:[%s8908_s0 + $0x40] sm:$0xff]  ;;  %v5856_v38 = vld [vmem:[%s8908_s0 + $0x58] sm:$0xff]  ;;  %v5861_v39 = vld [vmem:[%s8908_s0 + $0x50] sm:$0xff] }
   0x7   :  { %165 = vperm.xlu0 %5231, %v5098_v19   ;;  %v5108_v28 = vcvt.f32.s32 %v5107_v24  ;;  %v5106_v29 = vcvt.f32.s32 %v5105_v25  ;;  %v5112_v34 = vcvt.f32.s32 %v5111_v30  ;;  %v5115_v36 = vtrunc.f32 %v5842_v32  ;;  %v5869_v44 = vld [vmem:[%s8908_s0 + $0x68] sm:$0xff]  ;;  %v5875_v45 = vld [vmem:[%s8908_s0 + $0x60] sm:$0xff]  ;;  %v5890_v52 = vld [vmem:[%s8908_s0 + $0x78] sm:$0xff] }
   0x8   :  { %171 = vperm.xlu1 %5232, %v5102_v18   ;;  %v5110_v35 = vcvt.f32.s32 %v5109_v31  ;;  %v5113_v37 = vtrunc.f32 %v5847_v33  ;;  %v5119_v42 = vtrunc.f32 %v5856_v38  ;;  %v5117_v43 = vtrunc.f32 %v5861_v39  ;;  %v5233_v46 = vld [vmem:[%s8909_s1] sm:$0xff]   ;;  %v5234_v47 = vld [vmem:[%s8909_s1 + $0x8] sm:$0xff]   ;;  %v5895_v53 = vld [vmem:[%s8908_s0 + $0x70] sm:$0xff] }
   0x9   :  { %4609 = vmatpush1.msk.msra.mxu1 %vm1139_vm0, %v944_v21  ;;  %v5116_v40 = vcvt.f32.s32 %v5115_v36  ;;  %v5123_v50 = vtrunc.f32 %v5869_v44  ;;  %v5121_v51 = vtrunc.f32 %v5875_v45  ;;  %4889 = vmatprep.subr.bf16.mxu0 %v5233_v46  ;;  %v5235_v54 = vld [vmem:[%s8909_s1 + $0x10] sm:$0xff]   ;;  %v5127_v57 = vtrunc.f32 %v5890_v52  ;;  %v5907_v59 = vld [vmem:[%s8908_s0 + $0x88] sm:$0xff]  ;;  %v5912_v60 = vld [vmem:[%s8908_s0 + $0x80] sm:$0xff] }
   0xa   :  { %4610 = vmatmul.mubr.msk.f32.vlgmr.msra.gmra.mrb[0].mxu1 %vm946_vm1, %v34_v7  ;;  %5079 = vmatprep.subr.bf16.mxu1 %v5724_v5  ;;  %v5114_v41 = vcvt.f32.s32 %v5113_v37  ;;  %v5120_v48 = vcvt.f32.s32 %v5119_v42  ;;  %v5118_v49 = vcvt.f32.s32 %v5117_v43  ;;  %v5125_v58 = vtrunc.f32 %v5895_v53  ;;  %v5919_v61 = vld [vmem:[%s8908_s0 + $0x98] sm:$0xff]  ;;  %v5929_v3 = vld [vmem:[%s8908_s0 + $0x90] sm:$0xff]  ;;  %v5237_v4 = vld [vmem:[%s8909_s1 + $0x20] sm:$0xff]  }
   0xb   :  { %168 = vperm.xlu0 %5231, %v5100_v23   ;;  %1216 = vmatprep.mubr.f32.mxu1 %v5725_v12  ;;  %v5124_v55 = vcvt.f32.s32 %v5123_v50  ;;  %v5122_v56 = vcvt.f32.s32 %v5121_v51  ;;  %v5236_v62 = vld [vmem:[%s8909_s1 + $0x18] sm:$0xff]   ;;  %v5128_v63 = vcvt.f32.s32 %v5127_v57  ;;  %v5131_v1 = vtrunc.f32 %v5907_v59  ;;  %v5942_v10 = vld [vmem:[%s8908_s0 + $0xa8] sm:$0xff]  ;;  %v5948_v11 = vld [vmem:[%s8908_s0 + $0xa0] sm:$0xff] }
   0xc   :  { %174 = vperm.xlu1 %5232, %v5104_v22   ;;  %4890 = vmatpush3.bf16.msra.mxu0 %v5233_v46  ;;  %v5126_v0 = vcvt.f32.s32 %v5125_v58  ;;  %v5129_v2 = vtrunc.f32 %v5912_v60  ;;  %v5135_v8 = vtrunc.f32 %v5919_v61  ;;  %v5133_v9 = vtrunc.f32 %v5929_v3 }
   0xd   :  { %4891 = vmatprep.subr.bf16.mxu0 %v5234_v47 }
   0xe   :  { %4611 = vmatmul.mubr.msk.f32.gmra.mrb[2].mxu1 %vm946_vm1, %v35_v15  ;;  %v5130_v7 = vcvt.f32.s32 %v5129_v2  ;;  %v5136_v14 = vcvt.f32.s32 %v5135_v8  ;;  %v5134_v15 = vcvt.f32.s32 %v5133_v9 }
   0xf   :  { %177 = vperm.xlu0 %5231, %v5106_v29   ;;  %1222 = vmatprep.mubr.f32.mxu1 %v5725_v12 }
  0x10   :  { %180 = vperm.xlu1 %5232, %v5108_v28   ;;  %4892 = vmatpush3.bf16.msra.mxu0 %v5234_v47 }
  0x11   :  { %4893 = vmatprep.subr.bf16.mxu0 %v5235_v54 }
  0x12   :  { %4612 = vmatmul.mubr.msk.f32.gmra.mrb[4].mxu1 %vm946_vm1, %v36_v6  ;;  %v5132_v6 = vcvt.f32.s32 %v5131_v1 }
  0x13   :  { %183 = vperm.xlu0 %5231, %v5110_v35   ;;  %1228 = vmatprep.mubr.f32.mxu1 %v5725_v12 }
  0x14   :  { %186 = vperm.xlu1 %5232, %v5112_v34   ;;  %4894 = vmatpush3.bf16.msra.mxu0 %v5235_v54 }
  0x15   :  { %4895 = vmatprep.subr.bf16.mxu0 %v5236_v62 }
  0x16   :  { %4613 = vmatmul.mubr.msk.f32.gmra.mrb[6].mxu1 %vm946_vm1, %v37_v13  ;;  %v5238_v13 = vld [vmem:[%s8909_s1 + $0x28] sm:$0xff]  }
  0x17   :  { %189 = vperm.xlu0 %5231, %v5114_v41   ;;  %1234 = vmatprep.mubr.f32.mxu1 %v5725_v12 }
  0x18   :  { %192 = vperm.xlu1 %5232, %v5116_v40   ;;  %4896 = vmatpush3.bf16.msra.mxu0 %v5236_v62 }
  0x19   :  { %4897 = vmatprep.subr.bf16.mxu0 %v5237_v4 }
  0x1a   :  { %4614 = vmatmul.mubr.msk.f32.gmra.mrb[8].mxu1 %vm946_vm1, %v38_v17  ;;  %v5137_v17 = vtrunc.f32 %v5948_v11 }
  0x1b   :  { %195 = vperm.xlu0 %5231, %v5118_v49   ;;  %1240 = vmatprep.mubr.f32.mxu1 %v5725_v12 }
  0x1c   :  { %198 = vperm.xlu1 %5232, %v5120_v48  }
  0x1e   :  { %4615 = vmatmul.mubr.msk.f32.gmra.mrb[10].mxu1 %vm946_vm1, %v5813_v16  ;;  %v5139_v16 = vtrunc.f32 %v5942_v10 }
  0x1f   :  { %201 = vperm.xlu0 %5231, %v5122_v56   ;;  %1246 = vmatprep.mubr.f32.mxu1 %v5725_v12 }
  0x20   :  { %204 = vperm.xlu1 %5232, %v5124_v55  }
  0x22   :  { %4616 = vmatmul.mubr.msk.f32.gmra.mrb[12].mxu1 %vm946_vm1, %v5831_v27 }
  0x23   :  { %207 = vperm.xlu0 %5231, %v5126_v0   ;;  %1252 = vmatprep.mubr.f32.mxu1 %v5725_v12 }
  0x24   :  { %210 = vperm.xlu1 %5232, %v5128_v63  }
  0x26   :  { %4617 = vmatmul.mubr.msk.f32.gmra.mrb[14].mxu1 %vm946_vm1, %v5826_v26 }
  0x27   :  { %213 = vperm.xlu0 %5231, %v5130_v7  }
  0x28   :  { %216 = vperm.xlu1 %5232, %v5132_v6  }
  0x29   :  { %14 = vsyncpa [#allocation3], 0  ;;  %1258 = vmatprep.mubr.f32.mxu1 %v5725_v12  ;;  %v5961_v18 = vld [vmem:[%s8908_s0 + $0xb8] sm:$0xff]  ;;  %v5966_v19 = vld [vmem:[%s8908_s0 + $0xb0] sm:$0xff]  ;;  %4898 = vmatpush3.bf16.msra.mxu0 %v5237_v4  ;;  %v5140_v21 = vcvt.f32.s32 %v5139_v16  ;;  %v5138_v22 = vcvt.f32.s32 %v5137_v17 }
  0x2a   :  { %4618 = vmatmul.mubr.msk.f32.gmra.mrb[16].mxu1 %vm946_vm1, %v5847_v33  ;;  %4899 = vmatprep.subr.bf16.mxu0 %v5238_v13  ;;  %v5239_v20 = vld [vmem:[%s8909_s1 + $0x30] sm:$0xff]   ;;  %v5143_v23 = vtrunc.f32 %v5961_v18  ;;  %v5141_v24 = vtrunc.f32 %v5966_v19  ;;  %v5979_v25 = vld [vmem:[%s8908_s0 + $0xc8] sm:$0xff]  ;;  %v5984_v26 = vld [vmem:[%s8908_s0 + $0xc0] sm:$0xff] }
  0x2b   :  { %219 = vperm.xlu0 %5231, %v5134_v15   ;;  %1264 = vmatprep.mubr.f32.mxu1 %v5725_v12  ;;  %v5240_v27 = vld [vmem:[%s8909_s1 + $0x38] sm:$0xff]   ;;  %v5147_v30 = vtrunc.f32 %v5979_v25  ;;  %v5145_v31 = vtrunc.f32 %v5984_v26  ;;  %v6012_v40 = vld [vmem:[%s8908_s0 + $0xe8] sm:$0xff]  ;;  %v6048_v55 = vld [vmem:[%s8908_s0 + $0x100] sm:$0xff] }
  0x2c   :  { %222 = vperm.xlu1 %5232, %v5136_v14   ;;  %v5144_v28 = vcvt.f32.s32 %v5143_v23  ;;  %v5142_v29 = vcvt.f32.s32 %v5141_v24  ;;  %v5997_v33 = vld [vmem:[%s8908_s0 + $0xd8] sm:$0xff]  ;;  %v5155_v43 = vtrunc.f32 %v6012_v40  ;;  %v6043_v54 = vld [vmem:[%s8908_s0 + $0x108] sm:$0xff]  ;;  %v5161_v58 = vtrunc.f32 %v6048_v55  ;;  %v6063_v63 = vld [vmem:[%s8908_s0 + $0x110] sm:$0xff] }
  0x2d   :  { %4900 = vmatpush3.bf16.msra.mxu0 %v5238_v13  ;;  %v5148_v34 = vcvt.f32.s32 %v5147_v30  ;;  %v5146_v35 = vcvt.f32.s32 %v5145_v31  ;;  %v5151_v36 = vtrunc.f32 %v5997_v33  ;;  %v6028_v47 = vld [vmem:[%s8908_s0 + $0xf8] sm:$0xff]  ;;  %v5163_v57 = vtrunc.f32 %v6043_v54  ;;  %v6073_v4 = vld [vmem:[%s8908_s0 + $0x128] sm:$0xff]  ;;  %v6078_v6 = vld [vmem:[%s8908_s0 + $0x120] sm:$0xff] }
  0x2e   :  { %4619 = vmatmul.mubr.msk.f32.gmra.mrb[18].mxu1 %vm946_vm1, %v5842_v32  ;;  %4901 = vmatprep.subr.bf16.mxu0 %v5239_v20  ;;  %v6002_v32 = vld [vmem:[%s8908_s0 + $0xd0] sm:$0xff]  ;;  %v5156_v48 = vcvt.f32.s32 %v5155_v43  ;;  %v5159_v50 = vtrunc.f32 %v6028_v47  ;;  %v6058_v62 = vld [vmem:[%s8908_s0 + $0x118] sm:$0xff]  ;;  %v5162_v0 = vcvt.f32.s32 %v5161_v58  ;;  %v5165_v2 = vtrunc.f32 %v6063_v63 }
  0x2f   :  { %225 = vperm.xlu0 %5231, %v5138_v22   ;;  %1270 = vmatprep.mubr.f32.mxu1 %v5725_v12  ;;  %v5149_v37 = vtrunc.f32 %v6002_v32  ;;  %v5152_v41 = vcvt.f32.s32 %v5151_v36  ;;  %v5167_v1 = vtrunc.f32 %v6058_v62  ;;  %v5171_v8 = vtrunc.f32 %v6073_v4  ;;  %v6088_v13 = vld [vmem:[%s8908_s0 + $0x138] sm:$0xff]  ;;  %v6093_v14 = vld [vmem:[%s8908_s0 + $0x130] sm:$0xff] }
  0x30   :  { %228 = vperm.xlu1 %5232, %v5140_v21   ;;  %v5166_v7 = vcvt.f32.s32 %v5165_v2  ;;  %v5169_v9 = vtrunc.f32 %v6078_v6  ;;  %v5175_v16 = vtrunc.f32 %v6088_v13  ;;  %v5173_v17 = vtrunc.f32 %v6093_v14  ;;  %v6108_v21 = vld [vmem:[%s8908_s0 + $0x140] sm:$0xff]  ;;  %v6153_v43 = vld [vmem:[%s8908_s0 + $0x170] sm:$0xff]  ;;  %v6178_v58 = vld [vmem:[%s8908_s0 + $0x198] sm:$0xff] }
  0x31   :  { %4902 = vmatpush3.bf16.msra.mxu0 %v5239_v20  ;;  %v5150_v42 = vcvt.f32.s32 %v5149_v37  ;;  %v6103_v20 = vld [vmem:[%s8908_s0 + $0x148] sm:$0xff]  ;;  %v5177_v24 = vtrunc.f32 %v6108_v21 }
  0x32   :  { %4620 = vmatmul.mubr.msk.f32.gmra.mrb[20].mxu1 %vm946_vm1, %v5861_v39  ;;  %4903 = vmatprep.subr.bf16.mxu0 %v5240_v27  ;;  %v6017_v39 = vld [vmem:[%s8908_s0 + $0xe0] sm:$0xff]  ;;  %v5170_v15 = vcvt.f32.s32 %v5169_v9  ;;  %v5174_v22 = vcvt.f32.s32 %v5173_v17  ;;  %v5179_v23 = vtrunc.f32 %v6103_v20 }
  0x33   :  { %231 = vperm.xlu0 %5231, %v5142_v29   ;;  %1276 = vmatprep.mubr.f32.mxu1 %v5725_v12  ;;  %v5153_v46 = vtrunc.f32 %v6017_v39  ;;  %v5178_v29 = vcvt.f32.s32 %v5177_v24  ;;  %v6228_v24 = vld [vmem:[%s8908_s0 + $0x1c8] sm:$0xff] }
  0x34   :  { %234 = vperm.xlu1 %5232, %v5144_v28   ;;  %v6123_v28 = vld [vmem:[%s8908_s0 + $0x150] sm:$0xff] }
  0x35   :  { %4904 = vmatpush3.bf16.msra.mxu0 %v5240_v27  ;;  %v5154_v49 = vcvt.f32.s32 %v5153_v46  ;;  %v6118_v27 = vld [vmem:[%s8908_s0 + $0x158] sm:$0xff]  ;;  %v5181_v31 = vtrunc.f32 %v6123_v28 }
  0x36   :  { %4621 = vmatmul.mubr.msk.f32.gmra.mrb[22].mxu1 %vm946_vm1, %v5856_v38  ;;  %2608 = vmatprep.subr.bf16.mxu0 %v5724_v5  ;;  %v6033_v38 = vld [vmem:[%s8908_s0 + $0xf0] sm:$0xff]  ;;  %v5183_v30 = vtrunc.f32 %v6118_v27 }
  0x37   :  { %237 = vperm.xlu0 %5231, %v5146_v35   ;;  %1282 = vmatprep.mubr.f32.mxu1 %v5725_v12  ;;  %v5157_v51 = vtrunc.f32 %v6033_v38  ;;  %v6138_v35 = vld [vmem:[%s8908_s0 + $0x160] sm:$0xff]  ;;  %v5182_v36 = vcvt.f32.s32 %v5181_v31  ;;  %v5211_v31 = vtrunc.f32 %v6228_v24 }
  0x38   :  { %240 = vperm.xlu1 %5232, %v5148_v34   ;;  %v6133_v34 = vld [vmem:[%s8908_s0 + $0x168] sm:$0xff] }
  0x39   :  { %v5158_v56 = vcvt.f32.s32 %v5157_v51  ;;  %v5187_v37 = vtrunc.f32 %v6133_v34  ;;  %v6168_v51 = vld [vmem:[%s8908_s0 + $0x180] sm:$0xff] }
  0x3a   :  { %4622 = vmatmul.mubr.msk.f32.gmra.mrb[24].mxu1 %vm946_vm1, %v5875_v45  ;;  %v5160_v45 = vcvt.f32.s32 %v5159_v50  ;;  %v6163_v50 = vld [vmem:[%s8908_s0 + $0x188] sm:$0xff] }
  0x3b   :  { %243 = vperm.xlu0 %5231, %v5150_v42   ;;  %1288 = vmatprep.mubr.f32.mxu1 %v5725_v12  ;;  %v6148_v42 = vld [vmem:[%s8908_s0 + $0x178] sm:$0xff] }
  0x3c   :  { %246 = vperm.xlu1 %5232, %v5152_v41   ;;  %v5185_v41 = vtrunc.f32 %v6138_v35 }
  0x3e   :  { %4623 = vmatmul.mubr.msk.f32.gmra.mrb[26].mxu1 %vm946_vm1, %v5869_v44  ;;  %v5164_v44 = vcvt.f32.s32 %v5163_v57  ;;  %v5186_v46 = vcvt.f32.s32 %v5185_v41  ;;  %v5193_v57 = vtrunc.f32 %v6168_v51  ;;  %v5212_v41 = vcvt.f32.s32 %v5211_v31 }
  0x3f   :  { %249 = vperm.xlu0 %5231, %v5154_v49   ;;  %1294 = vmatprep.mubr.f32.mxu1 %v5725_v12  ;;  %v5189_v49 = vtrunc.f32 %v6153_v43 }
  0x40   :  { %252 = vperm.xlu1 %5232, %v5156_v48   ;;  %v5191_v48 = vtrunc.f32 %v6148_v42 }
  0x42   :  { %4624 = vmatmul.mubr.msk.f32.gmra.mrb[28].mxu1 %vm946_vm1, %v5895_v53  ;;  %v5168_v53 = vcvt.f32.s32 %v5167_v1  ;;  %v5199_v1 = vtrunc.f32 %v6178_v58 }
  0x43   :  { %255 = vperm.xlu0 %5231, %v5158_v56   ;;  %1300 = vmatprep.mubr.f32.mxu1 %v5725_v12  ;;  %v5195_v56 = vtrunc.f32 %v6163_v50 }
  0x44   :  { %258 = vperm.xlu1 %5232, %v5160_v45   ;;  %v5190_v45 = vcvt.f32.s32 %v5189_v49  ;;  %v6272_v49 = vld [vmem:[%s8908_s0 + $0x1e8] sm:$0xff] }
  0x46   :  { %4625 = vmatmul.mubr.msk.f32.gmra.mrb[30].mxu1 %vm946_vm1, %v5890_v52  ;;  %v5172_v52 = vcvt.f32.s32 %v5171_v8 }
  0x47   :  { %261 = vperm.xlu0 %5231, %v5162_v0   ;;  %1306 = vmatprep.mubr.f32.mxu1 %v5725_v12  ;;  %v5194_v0 = vcvt.f32.s32 %v5193_v57  ;;  %v5219_v57 = vtrunc.f32 %v6272_v49 }
  0x48   :  { %264 = vperm.xlu1 %5232, %v5164_v44   ;;  %v6183_v44 = vld [vmem:[%s8908_s0 + $0x190] sm:$0xff] }
  0x49   :  { %v5197_v2 = vtrunc.f32 %v6183_v44 }
  0x4a   :  { %4626 = vmatmul.mubr.msk.f32.gmra.mrb[32].mxu1 %vm946_vm1, %v5912_v60  ;;  %v5176_v60 = vcvt.f32.s32 %v5175_v16  ;;  %v6213_v16 = vld [vmem:[%s8908_s0 + $0x1b0] sm:$0xff] }
  0x4b   :  { %267 = vperm.xlu0 %5231, %v5166_v7   ;;  %1312 = vmatprep.mubr.f32.mxu1 %v5725_v12  ;;  %v6198_v7 = vld [vmem:[%s8908_s0 + $0x1a0] sm:$0xff]  ;;  %v5198_v8 = vcvt.f32.s32 %v5197_v2  ;;  %v5220_v2 = vcvt.f32.s32 %v5219_v57 }
  0x4c   :  { %270 = vperm.xlu1 %5232, %v5168_v53   ;;  %v6193_v53 = vld [vmem:[%s8908_s0 + $0x1a8] sm:$0xff] }
  0x4d   :  { %v5203_v9 = vtrunc.f32 %v6193_v53 }
  0x4e   :  { %4627 = vmatmul.mubr.msk.f32.gmra.mrb[34].mxu1 %vm946_vm1, %v5907_v59  ;;  %v5180_v59 = vcvt.f32.s32 %v5179_v23  ;;  %v5205_v23 = vtrunc.f32 %v6213_v16 }
  0x4f   :  { %273 = vperm.xlu0 %5231, %v5170_v15   ;;  %1318 = vmatprep.mubr.f32.mxu1 %v5725_v12  ;;  %v6208_v15 = vld [vmem:[%s8908_s0 + $0x1b8] sm:$0xff]  ;;  %v5204_v17 = vcvt.f32.s32 %v5203_v9 }
  0x50   :  { %276 = vperm.xlu1 %5232, %v5172_v52   ;;  %v5201_v52 = vtrunc.f32 %v6198_v7 }
  0x52   :  { %4628 = vmatmul.mubr.msk.f32.gmra.mrb[36].mxu1 %vm946_vm1, %v5929_v3  ;;  %v5184_v3 = vcvt.f32.s32 %v5183_v30  ;;  %v5206_v30 = vcvt.f32.s32 %v5205_v23 }
  0x53   :  { %279 = vperm.xlu0 %5231, %v5174_v22   ;;  %1324 = vmatprep.mubr.f32.mxu1 %v5725_v12  ;;  %v5207_v22 = vtrunc.f32 %v6208_v15 }
  0x54   :  { %282 = vperm.xlu1 %5232, %v5176_v60   ;;  %v5202_v60 = vcvt.f32.s32 %v5201_v52 }
  0x56   :  { %4629 = vmatmul.mubr.msk.f32.gmra.mrb[38].mxu1 %vm946_vm1, %v5919_v61  ;;  %v5188_v61 = vcvt.f32.s32 %v5187_v37  ;;  %v6264_v37 = vld [vmem:[%s8913_s5 + $0x10] sm:$0xff]  }
  0x57   :  { %285 = vperm.xlu0 %5231, %v5178_v29   ;;  %1330 = vmatprep.mubr.f32.mxu1 %v5725_v12  ;;  %v5208_v29 = vcvt.f32.s32 %v5207_v22 }
  0x58   :  { %288 = vperm.xlu1 %5232, %v5180_v59   ;;  %v6242_v59 = vld [vmem:[%s8913_s5 + $0x8] sm:$0xff]  }
  0x5a   :  { %4630 = vmatmul.mubr.msk.f32.gmra.mrb[40].mxu1 %vm946_vm1, %v5948_v11  ;;  %v5192_v11 = vcvt.f32.s32 %v5191_v48 }
  0x5b   :  { %291 = vperm.xlu0 %5231, %v5182_v36   ;;  %1336 = vmatprep.mubr.f32.mxu1 %v5725_v12  ;;  %v6250_v36 = vld [vmem:[%s8908_s0 + $0x1d8] sm:$0xff] }
  0x5c   :  { %294 = vperm.xlu1 %5232, %v5184_v3  }
  0x5e   :  { %4631 = vmatmul.mubr.msk.f32.gmra.mrb[42].mxu1 %vm946_vm1, %v5942_v10  ;;  %v5196_v10 = vcvt.f32.s32 %v5195_v56 }
  0x5f   :  { %297 = vperm.xlu0 %5231, %v5186_v46   ;;  %1342 = vmatprep.mubr.f32.mxu1 %v5725_v12  ;;  %v5215_v46 = vtrunc.f32 %v6250_v36 }
  0x60   :  { %300 = vperm.xlu1 %5232, %v5188_v61  }
  0x62   :  { %4632 = vmatmul.mubr.msk.f32.gmra.mrb[44].mxu1 %vm946_vm1, %v5966_v19  ;;  %v5200_v19 = vcvt.f32.s32 %v5199_v1  ;;  %v6308_v1 = vld [vmem:[%s8913_s5 + $0x20] sm:$0xff]  }
  0x63   :  { %303 = vperm.xlu0 %5231, %v5190_v45   ;;  %1348 = vmatprep.mubr.f32.mxu1 %v5725_v12  ;;  %v5216_v45 = vcvt.f32.s32 %v5215_v46 }
  0x64   :  { %306 = vperm.xlu1 %5232, %v5192_v11   ;;  %v6286_v11 = vld [vmem:[%s8913_s5 + $0x18] sm:$0xff]  }
  0x66   :  { %4633 = vmatmul.mubr.msk.f32.gmra.mrb[46].mxu1 %vm946_vm1, %v5961_v18  ;;  %v6220_v18 = vld [vmem:[%s8913_s5] sm:$0xff]  }
  0x67   :  { %309 = vperm.xlu0 %5231, %v5194_v0   ;;  %1354 = vmatprep.mubr.f32.mxu1 %v5725_v12  ;;  %v6294_v0 = vld [vmem:[%s8908_s0 + $0x1f8] sm:$0xff] }
  0x68   :  { %312 = vperm.xlu1 %5232, %v5196_v10   ;;  %5088 = vmatpush1.bf16.msra.mxu1 %v6220_v18 }
  0x69   :  { %5080 = vmatprep.subr.bf16.mxu1 %v5724_v5 }
  0x6a   :  { %4634 = vmatmul.mubr.msk.f32.gmra.mrb[48].mxu1 %vm946_vm1, %v5984_v26  ;;  %v6233_v26 = vld [vmem:[%s8908_s0 + $0x1c0] sm:$0xff] }
  0x6b   :  { %315 = vperm.xlu0 %5231, %v5198_v8   ;;  %1360 = vmatprep.mubr.f32.mxu1 %v5725_v12  ;;  %v5209_v3 = vtrunc.f32 %v6233_v26  ;;  %v5223_v8 = vtrunc.f32 %v6294_v0 }
  0x6c   :  { %318 = vperm.xlu1 %5232, %v5200_v19   ;;  %5089 = vmatpush1.bf16.msra.mxu1 %v6242_v59 }
  0x6d   :  { %5081 = vmatprep.subr.bf16.mxu1 %v5724_v5  ;;  %v5210_v61 = vcvt.f32.s32 %v5209_v3  ;;  %v5224_v52 = vcvt.f32.s32 %v5223_v8  ;;  %v5726_v3 = vmov 1.0|1.0  }
  0x6e   :  { %4635 = vmatmul.mubr.msk.f32.gmra.mrb[50].mxu1 %vm946_vm1, %v5979_v25  ;;  %v6255_v25 = vld [vmem:[%s8908_s0 + $0x1d0] sm:$0xff] }
  0x6f   :  { %321 = vperm.xlu0 %5231, %v5202_v60   ;;  %1366 = vmatprep.mubr.f32.mxu1 %v5725_v12  ;;  %v5213_v48 = vtrunc.f32 %v6255_v25  ;;  %v162_v60 = vlaneseq }
  0x70   :  { %324 = vperm.xlu1 %5232, %v5204_v17   ;;  %5090 = vmatpush1.bf16.msra.mxu1 %v6264_v37 }
  0x71   :  { %5082 = vmatprep.subr.bf16.mxu1 %v5724_v5  ;;  %v5214_v56 = vcvt.f32.s32 %v5213_v48  ;;  %v6335_v22 = vand.u32 127, %v162_v60 }
  0x72   :  { %4636 = vmatmul.mubr.msk.f32.gmra.mrb[52].mxu1 %vm946_vm1, %v6002_v32  ;;  %v6277_v32 = vld [vmem:[%s8908_s0 + $0x1e0] sm:$0xff] }
  0x73   :  { %327 = vperm.xlu0 %5231, %v5206_v30   ;;  %1372 = vmatprep.mubr.f32.mxu1 %v5725_v12  ;;  %v5217_v10 = vtrunc.f32 %v6277_v32 }
  0x74   :  { %330 = vperm.xlu1 %5232, %v5208_v29   ;;  %5091 = vmatpush1.bf16.msra.mxu1 %v6286_v11 }
  0x75   :  { %5083 = vmatprep.subr.bf16.mxu1 %v5724_v5  ;;  %v5218_v19 = vcvt.f32.s32 %v5217_v10 }
  0x76   :  { %4637 = vmatmul.mubr.msk.f32.gmra.mrb[54].mxu1 %vm946_vm1, %v5997_v33  ;;  %v6299_v33 = vld [vmem:[%s8908_s0 + $0x1f0] sm:$0xff] }
  0x77   :  { %333 = vperm.xlu0 %5231, %v5210_v61   ;;  %1378 = vmatprep.mubr.f32.mxu1 %v5725_v12  ;;  %v5221_v9 = vtrunc.f32 %v6299_v33 }
  0x78   :  { %336 = vperm.xlu1 %5232, %v5212_v41   ;;  %5092 = vmatpush1.bf16.msra.mxu1 %v6308_v1 }
  0x79   :  { %5084 = vmatprep.subr.bf16.mxu1 %v5724_v5  ;;  %v5222_v17 = vcvt.f32.s32 %v5221_v9 }
  0x7a   :  { %4638 = vmatmul.mubr.msk.f32.gmra.mrb[56].mxu1 %vm946_vm1, %v6017_v39  ;;  %v6320_v39 = vld [vmem:[%s8913_s5 + $0x28] sm:$0xff]  }
  0x7b   :  { %339 = vperm.xlu0 %5231, %v5214_v56   ;;  %1384 = vmatprep.mubr.f32.mxu1 %v5725_v12 }
  0x7c   :  { %342 = vperm.xlu1 %5232, %v5216_v45   ;;  %5093 = vmatpush1.bf16.msra.mxu1 %v6320_v39 }
  0x7d   :  { %5085 = vmatprep.subr.bf16.mxu1 %v5724_v5 }
  0x7e   :  { %4639 = vmatmul.mubr.msk.f32.gmra.mrb[58].mxu1 %vm946_vm1, %v6012_v40  ;;  %v6330_v40 = vld [vmem:[%s8913_s5 + $0x30] sm:$0xff]  }
  0x7f   :  { %345 = vperm.xlu0 %5231, %v5218_v19   ;;  %1390 = vmatprep.mubr.f32.mxu1 %v5725_v12 }
  0x80   :  { %348 = vperm.xlu1 %5232, %v5220_v2   ;;  %5094 = vmatpush1.bf16.msra.mxu1 %v6330_v40 }
  0x81   :  { %5086 = vmatprep.subr.bf16.mxu1 %v5724_v5 }
  0x82   :  { %4640 = vmatmul.mubr.msk.f32.gmra.mrb[60].mxu1 %vm946_vm1, %v6033_v38  ;;  %v6343_v38 = vld [vmem:[%s8913_s5 + $0x38] sm:$0xff]  }
  0x83   :  { %351 = vperm.xlu0 %5231, %v5222_v17   ;;  %1396 = vmatprep.mubr.f32.mxu1 %v5725_v12 }
  0x84   :  { %354 = vperm.xlu1 %5232, %v5224_v52   ;;  %5095 = vmatpush1.bf16.msra.mxu1 %v6343_v38 }
  0x85   :  { %5087 = vmatprep.subr.bf16.mxu1 %v5724_v5 }
  0x86   :  { %v166_v29 = vpop.permute.xlu0 %165  ;;  %4641 = vmatmul.mubr.msk.f32.gmra.mrb[62].mxu1 %vm946_vm1, %v6028_v47  ;;  %v6355_v47 = vld [vmem:[%s8913_s5 + $0x40] sm:$0xff]  }
  0x87   :  { %v172_v23 = vpop.permute.xlu1 %171  ;;  %1402 = vmatprep.mubr.f32.mxu1 %v5725_v12  ;;  %vm356_vm3 = vcmp.eq.s32.totalorder %v6335_v22, %v166_v29 }
  0x88   :  { %vm358_vm2 = vcmp.eq.s32.totalorder %v6335_v22, %v172_v23  ;;  %5096 = vmatpush1.bf16.msra.mxu1 %v6355_v47 }
  0x8a   :  { %v169_v31 = vpop.permute.xlu0 %168  ;;  %4642 = vmatmul.mubr.msk.f32.gmra.mrb[64].mxu1 %vm946_vm1, %v6048_v55 }
  0x8b   :  { %v175_v30 = vpop.permute.xlu1 %174  ;;  %vm357_vm5 = vcmp.eq.s32.totalorder %v6335_v22, %v169_v31  ;;  %1408 = vmatprep.mubr.f32.mxu1 %v5725_v12 }
  0x8c   :  { %vm359_vm4 = vcmp.eq.s32.totalorder %v6335_v22, %v175_v30  ;;  %vm4544_vm7 = vmpackc.low %vm357_vm5, %vm356_vm3 }
  0x8d   :  { %vm4546_vm6 = vmpackc.low %vm359_vm4, %vm358_vm2  ;;  %4905 = vmatprep.mubr.msk.bf16.mxu0 %vm4544_vm7, %v5726_v3 }
  0x8e   :  { %v178_v41 = vpop.permute.xlu0 %177  ;;  %4643 = vmatmul.mubr.msk.f32.gmra.mrb[66].mxu1 %vm946_vm1, %v6043_v54  ;;  %4906 = vmatmul.mubr.msk.bf16.vlgmr.msra.gmra.mrb[0].mxu0 %vm4546_vm6, %v5726_v3 }
  0x8f   :  { %v181_v55 = vpop.permute.xlu1 %180  ;;  %vm360_vm9 = vcmp.eq.s32.totalorder %v6335_v22, %v178_v41  ;;  %1414 = vmatprep.mubr.f32.mxu1 %v5725_v12  ;;  %2609 = vmatpush1.bf16.msra.mxu0 %v6220_v18 }
  0x90   :  { %vm361_vm8 = vcmp.eq.s32.totalorder %v6335_v22, %v181_v55  ;;  %2610 = vmatprep.subr.bf16.mxu0 %v5724_v5 }
  0x91   :  { %vm4548_vm10 = vmpackc.low %vm361_vm8, %vm360_vm9 }
  0x92   :  { %4909 = vmatprep.mubr.msk.bf16.mxu0 %vm4548_vm10, %v5726_v3  ;;  %v184_v46 = vpop.permute.xlu0 %183  ;;  %4644 = vmatmul.mubr.msk.f32.gmra.mrb[68].mxu1 %vm946_vm1, %v6063_v63 }
  0x93   :  { %v187_v61 = vpop.permute.xlu1 %186  ;;  %vm362_vm12 = vcmp.eq.s32.totalorder %v6335_v22, %v184_v46  ;;  %1420 = vmatprep.mubr.f32.mxu1 %v5725_v12  ;;  %2611 = vmatpush1.bf16.msra.mxu0 %v6242_v59 }
  0x94   :  { %vm363_vm11 = vcmp.eq.s32.totalorder %v6335_v22, %v187_v61  ;;  %2612 = vmatprep.subr.bf16.mxu0 %v5724_v5 }
  0x95   :  { %vm4550_vm13 = vmpackc.low %vm363_vm11, %vm362_vm12 }
  0x96   :  { %v190_v18 = vpop.permute.xlu0 %189  ;;  %4645 = vmatmul.mubr.msk.f32.gmra.mrb[70].mxu1 %vm946_vm1, %v6058_v62  ;;  %4910 = vmatmul.mubr.msk.bf16.gmra.mrb[4].mxu0 %vm4550_vm13, %v5726_v3 }
  0x97   :  { %v193_v54 = vpop.permute.xlu1 %192  ;;  %vm364_vm15 = vcmp.eq.s32.totalorder %v6335_v22, %v190_v18  ;;  %1426 = vmatprep.mubr.f32.mxu1 %v5725_v12  ;;  %2613 = vmatpush1.bf16.msra.mxu0 %v6264_v37 }
  0x98   :  { %vm365_vm14 = vcmp.eq.s32.totalorder %v6335_v22, %v193_v54  ;;  %2614 = vmatprep.subr.bf16.mxu0 %v5724_v5 }
  0x99   :  { %vm4552_vm2 = vmpackc.low %vm365_vm14, %vm364_vm15 }
  0x9a   :  { %4913 = vmatprep.mubr.msk.bf16.mxu0 %vm4552_vm2, %v5726_v3  ;;  %v196_v59 = vpop.permute.xlu0 %195  ;;  %4646 = vmatmul.mubr.msk.f32.gmra.mrb[72].mxu1 %vm946_vm1, %v6078_v6 }
  0x9b   :  { %v199_v63 = vpop.permute.xlu1 %198  ;;  %vm366_vm4 = vcmp.eq.s32.totalorder %v6335_v22, %v196_v59  ;;  %1432 = vmatprep.mubr.f32.mxu1 %v5725_v12  ;;  %2615 = vmatpush1.bf16.msra.mxu0 %v6286_v11 }
  0x9c   :  { %vm367_vm3 = vcmp.eq.s32.totalorder %v6335_v22, %v199_v63  ;;  %2616 = vmatprep.subr.bf16.mxu0 %v5724_v5 }
  0x9d   :  { %vm4554_vm5 = vmpackc.low %vm367_vm3, %vm366_vm4 }
  0x9e   :  { %v202_v37 = vpop.permute.xlu0 %201  ;;  %4647 = vmatmul.mubr.msk.f32.gmra.mrb[74].mxu1 %vm946_vm1, %v6073_v4  ;;  %4914 = vmatmul.mubr.msk.bf16.gmra.mrb[8].mxu0 %vm4554_vm5, %v5726_v3 }
  0x9f   :  { %v205_v62 = vpop.permute.xlu1 %204  ;;  %vm368_vm7 = vcmp.eq.s32.totalorder %v6335_v22, %v202_v37  ;;  %1438 = vmatprep.mubr.f32.mxu1 %v5725_v12  ;;  %2617 = vmatpush1.bf16.msra.mxu0 %v6308_v1 }
  0xa0   :  { %vm369_vm6 = vcmp.eq.s32.totalorder %v6335_v22, %v205_v62  ;;  %2618 = vmatprep.subr.bf16.mxu0 %v5724_v5 }
  0xa1   :  { %vm4556_vm8 = vmpackc.low %vm369_vm6, %vm368_vm7 }
  0xa2   :  { %4917 = vmatprep.mubr.msk.bf16.mxu0 %vm4556_vm8, %v5726_v3  ;;  %v208_v48 = vpop.permute.xlu0 %207  ;;  %4648 = vmatmul.mubr.msk.f32.gmra.mrb[76].mxu1 %vm946_vm1, %v6093_v14 }
  0xa3   :  { %v211_v6 = vpop.permute.xlu1 %210  ;;  %vm370_vm10 = vcmp.eq.s32.totalorder %v6335_v22, %v208_v48  ;;  %1444 = vmatprep.mubr.f32.mxu1 %v5725_v12  ;;  %2619 = vmatpush1.bf16.msra.mxu0 %v6320_v39 }
  0xa4   :  { %vm371_vm9 = vcmp.eq.s32.totalorder %v6335_v22, %v211_v6  ;;  %2620 = vmatprep.subr.bf16.mxu0 %v5724_v5 }
  0xa5   :  { %vm4558_vm11 = vmpackc.low %vm371_vm9, %vm370_vm10 }
  0xa6   :  { %v214_v11 = vpop.permute.xlu0 %213  ;;  %4649 = vmatmul.mubr.msk.f32.gmra.mrb[78].mxu1 %vm946_vm1, %v6088_v13  ;;  %4918 = vmatmul.mubr.msk.bf16.gmra.mrb[12].mxu0 %vm4558_vm11, %v5726_v3 }
  0xa7   :  { %v217_v4 = vpop.permute.xlu1 %216  ;;  %vm372_vm13 = vcmp.eq.s32.totalorder %v6335_v22, %v214_v11  ;;  %1450 = vmatprep.mubr.f32.mxu1 %v5725_v12  ;;  %2621 = vmatpush1.bf16.msra.mxu0 %v6330_v40 }
  0xa8   :  { %vm373_vm12 = vcmp.eq.s32.totalorder %v6335_v22, %v217_v4  ;;  %2622 = vmatprep.subr.bf16.mxu0 %v5724_v5 }
  0xa9   :  { %vm4560_vm14 = vmpackc.low %vm373_vm12, %vm372_vm13 }
  0xaa   :  { %4921 = vmatprep.mubr.msk.bf16.mxu0 %vm4560_vm14, %v5726_v3  ;;  %v220_v45 = vpop.permute.xlu0 %219  ;;  %4650 = vmatmul.mubr.msk.f32.gmra.mrb[80].mxu1 %vm946_vm1, %v6108_v21 }
  0xab   :  { %v223_v14 = vpop.permute.xlu1 %222  ;;  %vm374_vm2 = vcmp.eq.s32.totalorder %v6335_v22, %v220_v45  ;;  %1456 = vmatprep.mubr.f32.mxu1 %v5725_v12  ;;  %2623 = vmatpush1.bf16.msra.mxu0 %v6343_v38 }
  0xac   :  { %vm375_vm15 = vcmp.eq.s32.totalorder %v6335_v22, %v223_v14  ;;  %2624 = vmatprep.subr.bf16.mxu0 %v5724_v5 }
  0xad   :  { %vm4562_vm3 = vmpackc.low %vm375_vm15, %vm374_vm2 }
  0xae   :  { %v226_v56 = vpop.permute.xlu0 %225  ;;  %4651 = vmatmul.mubr.msk.f32.gmra.mrb[82].mxu1 %vm946_vm1, %v6103_v20  ;;  %4922 = vmatmul.mubr.msk.bf16.gmra.mrb[16].mxu0 %vm4562_vm3, %v5726_v3 }
  0xaf   :  { %v229_v13 = vpop.permute.xlu1 %228  ;;  %vm376_vm5 = vcmp.eq.s32.totalorder %v6335_v22, %v226_v56  ;;  %1462 = vmatprep.mubr.f32.mxu1 %v5725_v12  ;;  %2625 = vmatpush1.bf16.msra.mxu0 %v6355_v47 }
  0xb0   :  { %vm377_vm4 = vcmp.eq.s32.totalorder %v6335_v22, %v229_v13 }
  0xb1   :  { %vm4564_vm6 = vmpackc.low %vm377_vm4, %vm376_vm5 }
  0xb2   :  { %4925 = vmatprep.mubr.msk.bf16.mxu0 %vm4564_vm6, %v5726_v3  ;;  %v232_v5 = vpop.permute.xlu0 %231  ;;  %4652 = vmatmul.mubr.msk.f32.gmra.mrb[84].mxu1 %vm946_vm1, %v6123_v28 }
  0xb3   :  { %v235_v21 = vpop.permute.xlu1 %234  ;;  %vm378_vm8 = vcmp.eq.s32.totalorder %v6335_v22, %v232_v5  ;;  %1468 = vmatprep.mubr.f32.mxu1 %v5725_v12 }
  0xb4   :  { %vm379_vm7 = vcmp.eq.s32.totalorder %v6335_v22, %v235_v21 }
  0xb5   :  { %vm4566_vm9 = vmpackc.low %vm379_vm7, %vm378_vm8 }
  0xb6   :  { %v238_v57 = vpop.permute.xlu0 %237  ;;  %4653 = vmatmul.mubr.msk.f32.gmra.mrb[86].mxu1 %vm946_vm1, %v6118_v27  ;;  %4926 = vmatmul.mubr.msk.bf16.gmra.mrb[20].mxu0 %vm4566_vm9, %v5726_v3 }
  0xb7   :  { %v241_v20 = vpop.permute.xlu1 %240  ;;  %vm380_vm11 = vcmp.eq.s32.totalorder %v6335_v22, %v238_v57  ;;  %1474 = vmatprep.mubr.f32.mxu1 %v5725_v12 }
  0xb8   :  { %vm381_vm10 = vcmp.eq.s32.totalorder %v6335_v22, %v241_v20 }
  0xb9   :  { %vm4568_vm12 = vmpackc.low %vm381_vm10, %vm380_vm11 }
  0xba   :  { %4929 = vmatprep.mubr.msk.bf16.mxu0 %vm4568_vm12, %v5726_v3  ;;  %v244_v10 = vpop.permute.xlu0 %243  ;;  %4654 = vmatmul.mubr.msk.f32.gmra.mrb[88].mxu1 %vm946_vm1, %v6138_v35 }
  0xbb   :  { %v247_v28 = vpop.permute.xlu1 %246  ;;  %vm382_vm14 = vcmp.eq.s32.totalorder %v6335_v22, %v244_v10  ;;  %1480 = vmatprep.mubr.f32.mxu1 %v5725_v12 }
  0xbc   :  { %vm383_vm13 = vcmp.eq.s32.totalorder %v6335_v22, %v247_v28 }
  0xbd   :  { %vm4570_vm15 = vmpackc.low %vm383_vm13, %vm382_vm14 }
  0xbe   :  { %v250_v1 = vpop.permute.xlu0 %249  ;;  %4655 = vmatmul.mubr.msk.f32.gmra.mrb[90].mxu1 %vm946_vm1, %v6133_v34  ;;  %4930 = vmatmul.mubr.msk.bf16.gmra.mrb[24].mxu0 %vm4570_vm15, %v5726_v3 }
  0xbf   :  { %v253_v27 = vpop.permute.xlu1 %252  ;;  %vm384_vm3 = vcmp.eq.s32.totalorder %v6335_v22, %v250_v1  ;;  %1486 = vmatprep.mubr.f32.mxu1 %v5725_v12 }
  0xc0   :  { %vm385_vm2 = vcmp.eq.s32.totalorder %v6335_v22, %v253_v27 }
  0xc1   :  { %vm4572_vm4 = vmpackc.low %vm385_vm2, %vm384_vm3 }
  0xc2   :  { %4933 = vmatprep.mubr.msk.bf16.mxu0 %vm4572_vm4, %v5726_v3  ;;  %v256_v2 = vpop.permute.xlu0 %255  ;;  %4656 = vmatmul.mubr.msk.f32.gmra.mrb[92].mxu1 %vm946_vm1, %v6153_v43 }
  0xc3   :  { %v259_v35 = vpop.permute.xlu1 %258  ;;  %vm386_vm6 = vcmp.eq.s32.totalorder %v6335_v22, %v256_v2  ;;  %1492 = vmatprep.mubr.f32.mxu1 %v5725_v12 }
  0xc4   :  { %vm387_vm5 = vcmp.eq.s32.totalorder %v6335_v22, %v259_v35 }
  0xc5   :  { %vm4574_vm7 = vmpackc.low %vm387_vm5, %vm386_vm6 }
  0xc6   :  { %v262_v19 = vpop.permute.xlu0 %261  ;;  %4657 = vmatmul.mubr.msk.f32.gmra.mrb[94].mxu1 %vm946_vm1, %v6148_v42  ;;  %4934 = vmatmul.mubr.msk.bf16.gmra.mrb[28].mxu0 %vm4574_vm7, %v5726_v3 }
  0xc7   :  { %v265_v34 = vpop.permute.xlu1 %264  ;;  %vm388_vm9 = vcmp.eq.s32.totalorder %v6335_v22, %v262_v19  ;;  %1498 = vmatprep.mubr.f32.mxu1 %v5725_v12 }
  0xc8   :  { %vm389_vm8 = vcmp.eq.s32.totalorder %v6335_v22, %v265_v34 }
  0xc9   :  { %vm4576_vm10 = vmpackc.low %vm389_vm8, %vm388_vm9 }
  0xca   :  { %4937 = vmatprep.mubr.msk.bf16.mxu0 %vm4576_vm10, %v5726_v3  ;;  %v268_v8 = vpop.permute.xlu0 %267  ;;  %4658 = vmatmul.mubr.msk.f32.gmra.mrb[96].mxu1 %vm946_vm1, %v6168_v51  ;;  %v1598_v51 = vshrl.u32 %v162_v60, 7 }
  0xcb   :  { %v271_v43 = vpop.permute.xlu1 %270  ;;  %vm390_vm12 = vcmp.eq.s32.totalorder %v6335_v22, %v268_v8  ;;  %1504 = vmatprep.mubr.f32.mxu1 %v5725_v12 }
  0xcc   :  { %vm391_vm11 = vcmp.eq.s32.totalorder %v6335_v22, %v271_v43  ;;  %v1603_v60 = vsub.s32 1, %v1598_v51 }
  0xcd   :  { %vm4578_vm13 = vmpackc.low %vm391_vm11, %vm390_vm12 }
  0xce   :  { %v274_v9 = vpop.permute.xlu0 %273  ;;  %4659 = vmatmul.mubr.msk.f32.gmra.mrb[98].mxu1 %vm946_vm1, %v6163_v50  ;;  %4938 = vmatmul.mubr.msk.bf16.gmra.mrb[32].mxu0 %vm4578_vm13, %v5726_v3  ;;  %v1599_v50 = vsub.s32 0, %v1598_v51 }
  0xcf   :  { %v277_v42 = vpop.permute.xlu1 %276  ;;  %vm392_vm15 = vcmp.eq.s32.totalorder %v6335_v22, %v274_v9  ;;  %1510 = vmatprep.mubr.f32.mxu1 %v5725_v12 }
  0xd0   :  { %vm393_vm14 = vcmp.eq.s32.totalorder %v6335_v22, %v277_v42 }
  0xd1   :  { %vm4580_vm2 = vmpackc.low %vm393_vm14, %vm392_vm15 }
  0xd2   :  { %4941 = vmatprep.mubr.msk.bf16.mxu0 %vm4580_vm2, %v5726_v3  ;;  %v280_v52 = vpop.permute.xlu0 %279  ;;  %4660 = vmatmul.mubr.msk.f32.gmra.mrb[100].mxu1 %vm946_vm1, %v6183_v44  ;;  %v1595_v44 = vld [vmem:[%s8912_s4] sm:$0x3] }
  0xd3   :  { %v283_v39 = vpop.permute.xlu1 %282  ;;  %vm394_vm4 = vcmp.eq.s32.totalorder %v6335_v22, %v280_v52  ;;  %1516 = vmatprep.mubr.f32.mxu1 %v5725_v12  ;;  %v6505_v38 = vrot.slane %v1595_v44, %v1603_v60 }
  0xd4   :  { %vm395_vm3 = vcmp.eq.s32.totalorder %v6335_v22, %v283_v39 }
  0xd5   :  { %vm4582_vm5 = vmpackc.low %vm395_vm3, %vm394_vm4 }
  0xd6   :  { %v286_v40 = vpop.permute.xlu0 %285  ;;  %4661 = vmatmul.mubr.msk.f32.gmra.mrb[102].mxu1 %vm946_vm1, %v6178_v58  ;;  %4942 = vmatmul.mubr.msk.bf16.gmra.mrb[36].mxu0 %vm4582_vm5, %v5726_v3  ;;  %v6500_v58 = vrot.slane %v1595_v44, %v1599_v50 }
  0xd7   :  { %v289_v17 = vpop.permute.xlu1 %288  ;;  %vm396_vm7 = vcmp.eq.s32.totalorder %v6335_v22, %v286_v40  ;;  %1522 = vmatprep.mubr.f32.mxu1 %v5725_v12 }
  0xd8   :  { %vm397_vm6 = vcmp.eq.s32.totalorder %v6335_v22, %v289_v17 }
  0xd9   :  { %vm4584_vm8 = vmpackc.low %vm397_vm6, %vm396_vm7 }
  0xda   :  { %4945 = vmatprep.mubr.msk.bf16.mxu0 %vm4584_vm8, %v5726_v3  ;;  %v292_v29 = vpop.permute.xlu0 %291  ;;  %4662 = vmatmul.mubr.msk.f32.gmra.mrb[104].mxu1 %vm946_vm1, %v6198_v7 }
  0xdb   :  { %v295_v23 = vpop.permute.xlu1 %294  ;;  %vm398_vm10 = vcmp.eq.s32.totalorder %v6335_v22, %v292_v29  ;;  %1528 = vmatprep.mubr.f32.mxu1 %v5725_v12 }
  0xdc   :  { %vm399_vm9 = vcmp.eq.s32.totalorder %v6335_v22, %v295_v23 }
  0xdd   :  { %vm4586_vm11 = vmpackc.low %vm399_vm9, %vm398_vm10  ;;  %v1212_v30 = vpop.f32.mrb[0].mxu1 }
  0xde   :  { %v1607_v47 = vsub.f32 %v1212_v30, %v6500_v58  ;;  %v298_v55 = vpop.permute.xlu0 %297  ;;  %4663 = vmatmul.mubr.msk.f32.gmra.mrb[106].mxu1 %vm946_vm1, %v6193_v53  ;;  %4946 = vmatmul.mubr.msk.bf16.gmra.mrb[40].mxu0 %vm4586_vm11, %v5726_v3  ;;  %v1214_v7 = vpop.f32.mrb[1].mxu1 }
  0xdf   :  { %v301_v31 = vpop.permute.xlu1 %300  ;;  %vm400_vm13 = vcmp.eq.s32.totalorder %v6335_v22, %v298_v55  ;;  %1534 = vmatprep.mubr.f32.mxu1 %v5725_v12  ;;  %v1608_v61 = vsub.f32 %v1214_v7, %v6505_v38 }
  0xe0   :  { %vm401_vm12 = vcmp.eq.s32.totalorder %v6335_v22, %v301_v31  ;;  %v1735_v41 = vmul.f32 0.8, %v1607_v47 }
  0xe1   :  { %vm4588_vm14 = vmpackc.low %vm401_vm12, %vm400_vm13  ;;  %v1218_v46 = vpop.f32.mrb[2].mxu1  ;;  %v1736_v18 = vmul.f32 0.8, %v1608_v61 }
  0xe2   :  { %4949 = vmatprep.mubr.msk.bf16.mxu0 %vm4588_vm14, %v5726_v3  ;;  %v1863_v54 = vmul.f32 %v1735_v41, %v1735_v41  ;;  %v1609_v53 = vsub.f32 %v1218_v46, %v6500_v58  ;;  %v304_v59 = vpop.permute.xlu0 %303  ;;  %4664 = vmatmul.mubr.msk.f32.gmra.mrb[108].mxu1 %vm946_vm1, %v6213_v16  ;;  %v1220_v62 = vpop.f32.mrb[3].mxu1 }
  0xe3   :  { %v307_v63 = vpop.permute.xlu1 %306  ;;  %vm402_vm2 = vcmp.eq.s32.totalorder %v6335_v22, %v304_v59  ;;  %1540 = vmatprep.mubr.f32.mxu1 %v5725_v12  ;;  %v1864_v6 = vmul.f32 %v1736_v18, %v1736_v18  ;;  %v1610_v4 = vsub.f32 %v1220_v62, %v6505_v38 }
  0xe4   :  { %vm403_vm15 = vcmp.eq.s32.totalorder %v6335_v22, %v307_v63  ;;  %v1991_v37 = vsub.f32 0.0, %v1863_v54  ;;  %v1737_v48 = vmul.f32 0.8, %v1609_v53 }
  0xe5   :  { %vm4590_vm3 = vmpackc.low %vm403_vm15, %vm402_vm2  ;;  %v1224_v11 = vpop.f32.mrb[4].mxu1  ;;  %v1992_v45 = vsub.f32 0.0, %v1864_v6  ;;  %v1738_v56 = vmul.f32 0.8, %v1610_v4 }
  0xe6   :  { %v2119_v14 = vmul.f32 1.442695, %v1991_v37  ;;  %v1865_v13 = vmul.f32 %v1737_v48, %v1737_v48  ;;  %v310_v16 = vpop.permute.xlu0 %309  ;;  %4665 = vmatmul.mubr.msk.f32.gmra.mrb[110].mxu1 %vm946_vm1, %v6208_v15  ;;  %4950 = vmatmul.mubr.msk.bf16.gmra.mrb[44].mxu0 %vm4590_vm3, %v5726_v3  ;;  %v1611_v5 = vsub.f32 %v1224_v11, %v6500_v58  ;;  %v1226_v20 = vpop.f32.mrb[5].mxu1 }
  0xe7   :  { %v313_v21 = vpop.permute.xlu1 %312  ;;  %vm404_vm5 = vcmp.eq.s32.totalorder %v6335_v22, %v310_v16  ;;  %1546 = vmatprep.mubr.f32.mxu1 %v5725_v12  ;;  %v1866_v28 = vmul.f32 %v1738_v56, %v1738_v56  ;;  %v2121_v10 = vmul.f32 1.442695, %v1992_v45  ;;  %v1612_v1 = vsub.f32 %v1226_v20, %v6505_v38 }
  0xe8   :  { %vm405_vm4 = vcmp.eq.s32.totalorder %v6335_v22, %v313_v21  ;;  %v1993_v57 = vsub.f32 0.0, %v1865_v13  ;;  %v1739_v27 = vmul.f32 0.8, %v1611_v5  ;;  %5250 = vpow2.f32 %v2119_v14 }
  0xe9   :  { %vm4592_vm6 = vmpackc.low %vm405_vm4, %vm404_vm5  ;;  %v1230_v35 = vpop.f32.mrb[6].mxu1  ;;  %v1994_v2 = vsub.f32 0.0, %v1866_v28  ;;  %v1740_v42 = vmul.f32 0.8, %v1612_v1 }
  0xea   :  { %4953 = vmatprep.mubr.msk.bf16.mxu0 %vm4592_vm6, %v5726_v3  ;;  %v2123_v15 = vmul.f32 1.442695, %v1993_v57  ;;  %v1613_v19 = vsub.f32 %v1230_v35, %v6500_v58  ;;  %v316_v43 = vpop.permute.xlu0 %315  ;;  %4666 = vmatmul.mubr.msk.f32.gmra.mrb[112].mxu1 %vm946_vm1, %v6233_v26  ;;  %v1867_v8 = vmul.f32 %v1739_v27, %v1739_v27  ;;  %v1232_v9 = vpop.f32.mrb[7].mxu1 }
  0xeb   :  { %v319_v34 = vpop.permute.xlu1 %318  ;;  %vm406_vm8 = vcmp.eq.s32.totalorder %v6335_v22, %v316_v43  ;;  %1552 = vmatprep.mubr.f32.mxu1 %v5725_v12  ;;  %v2125_v51 = vmul.f32 1.442695, %v1994_v2  ;;  %v1614_v50 = vsub.f32 %v1232_v9, %v6505_v38  ;;  %v1868_v17 = vmul.f32 %v1740_v42, %v1740_v42 }
  0xec   :  { %vm407_vm7 = vcmp.eq.s32.totalorder %v6335_v22, %v319_v34  ;;  %5252 = vpow2.f32 %v2123_v15  ;;  %v1741_v39 = vmul.f32 0.8, %v1613_v19  ;;  %v1995_v26 = vsub.f32 0.0, %v1867_v8 }
  0xed   :  { %vm6538_vm9 = vmpackc.low %vm407_vm7, %vm406_vm8  ;;  %5254 = vpow2.f32 %v2121_v10  ;;  %v1236_v40 = vpop.f32.mrb[8].mxu1  ;;  %v1742_v60 = vmul.f32 0.8, %v1614_v50  ;;  %v1996_v47 = vsub.f32 0.0, %v1868_v17 }
  0xee   :  { %5256 = vpow2.f32 %v2125_v51  ;;  %v1869_v44 = vmul.f32 %v1741_v39, %v1741_v39  ;;  %v1615_v29 = vsub.f32 %v1236_v40, %v6500_v58  ;;  %v322_v30 = vpop.permute.xlu0 %321  ;;  %4667 = vmatmul.mubr.msk.f32.gmra.mrb[114].mxu1 %vm946_vm1, %v6228_v24  ;;  %v2127_v31 = vmul.f32 1.442695, %v1995_v26  ;;  %4954 = vmatmul.mubr.msk.bf16.gmra.mrb[48].mxu0 %vm6538_vm9, %v5726_v3  ;;  %v1238_v55 = vpop.f32.mrb[9].mxu1 }
  0xef   :  { %v325_v23 = vpop.permute.xlu1 %324  ;;  %vm408_vm11 = vcmp.eq.s32.totalorder %v6335_v22, %v322_v30  ;;  %1558 = vmatprep.mubr.f32.mxu1 %v5725_v12  ;;  %v1870_v41 = vmul.f32 %v1742_v60, %v1742_v60  ;;  %v1616_v46 = vsub.f32 %v1238_v55, %v6505_v38  ;;  %v2129_v24 = vmul.f32 1.442695, %v1996_v47 }
  0xf0   :  { %vm409_vm10 = vcmp.eq.s32.totalorder %v6335_v22, %v325_v23  ;;  %v1997_v7 = vsub.f32 0.0, %v1869_v44  ;;  %v1743_v61 = vmul.f32 0.8, %v1615_v29  ;;  %5258 = vpow2.f32 %v2127_v31 }
  0xf1   :  { %vm4596_vm12 = vmpackc.low %vm409_vm10, %vm408_vm11  ;;  %v1242_v54 = vpop.f32.mrb[10].mxu1  ;;  %v1998_v63 = vsub.f32 0.0, %v1870_v41  ;;  %v1744_v59 = vmul.f32 0.8, %v1616_v46 }
  0xf2   :  { %4957 = vmatprep.mubr.msk.bf16.mxu0 %vm4596_vm12, %v5726_v3  ;;  %v2131_v18 = vmul.f32 1.442695, %v1997_v7  ;;  %v1871_v53 = vmul.f32 %v1743_v61, %v1743_v61  ;;  %v328_v37 = vpop.permute.xlu0 %327  ;;  %4668 = vmatmul.mubr.msk.f32.gmra.mrb[116].mxu1 %vm946_vm1, %v6255_v25  ;;  %v1617_v6 = vsub.f32 %v1242_v54, %v6500_v58  ;;  %v1244_v48 = vpop.f32.mrb[11].mxu1 }
  0xf3   :  { %v331_v62 = vpop.permute.xlu1 %330  ;;  %vm410_vm14 = vcmp.eq.s32.totalorder %v6335_v22, %v328_v37  ;;  %1564 = vmatprep.mubr.f32.mxu1 %v5725_v12  ;;  %v6560_v4 = vpop.eup %5250  ;;  %v2133_v11 = vmul.f32 1.442695, %v1998_v63  ;;  %v1872_v45 = vmul.f32 %v1744_v59, %v1744_v59  ;;  %v1618_v56 = vsub.f32 %v1244_v48, %v6505_v38 }
  0xf4   :  { %vm411_vm13 = vcmp.eq.s32.totalorder %v6335_v22, %v331_v62  ;;  %5260 = vpow2.f32 %v2131_v18  ;;  %v1999_v14 = vsub.f32 0.0, %v1871_v53  ;;  %v1745_v25 = vmul.f32 0.8, %v1617_v6 }
  0xf5   :  { %vm6562_vm15 = vmpackc.low %vm411_vm13, %vm410_vm14  ;;  %5262 = vpow2.f32 %v2129_v24  ;;  %v1248_v21 = vpop.f32.mrb[12].mxu1  ;;  %v2000_v20 = vsub.f32 0.0, %v1872_v45  ;;  %v1746_v35 = vmul.f32 0.8, %v1618_v56  ;;  %vm2511_vm14 = vcmask 130048  }
  0xf6   :  { %v6567_v16 = vpop.eup %5252  ;;  %5264 = vpow2.f32 %v2133_v11  ;;  %v2135_v5 = vmul.f32 1.442695, %v1999_v14  ;;  %v1619_v28 = vsub.f32 %v1248_v21, %v6500_v58  ;;  %v334_v10 = vpop.permute.xlu0 %333  ;;  %4669 = vmatmul.mubr.msk.f32.gmra.mrb[118].mxu1 %vm946_vm1, %v6250_v36  ;;  %v1873_v1 = vmul.f32 %v1745_v25, %v1745_v25  ;;  %4958 = vmatmul.mubr.msk.bf16.gmra.mrb[52].mxu0 %vm6562_vm15, %v5726_v3 }
  0xf7   :  { %v337_v57 = vpop.permute.xlu1 %336  ;;  %v6572_v27 = vpop.eup %5254  ;;  %vm412_vm3 = vcmp.eq.s32.totalorder %v6335_v22, %v334_v10  ;;  %1570 = vmatprep.mubr.f32.mxu1 %v5725_v12  ;;  %v1874_v43 = vmul.f32 %v1746_v35, %v1746_v35  ;;  %v2375_v9 = vpack.c.bf16 %v6567_v16, %v6560_v4  ;;  %v2137_v51 = vmul.f32 1.442695, %v2000_v20 }
  0xf8   :  { %vm413_vm2 = vcmp.eq.s32.totalorder %v6335_v22, %v337_v57  ;;  %v1250_v15 = vpop.f32.mrb[13].mxu1  ;;  %v6580_v2 = vpop.eup %5256  ;;  %5266 = vpow2.f32 %v2135_v5  ;;  %v1747_v34 = vmul.f32 0.8, %v1619_v28  ;;  %v2001_v19 = vsub.f32 0.0, %v1873_v1 }
  0xf9   :  { %vm4600_vm4 = vmpackc.low %vm413_vm2, %vm412_vm3  ;;  %v1620_v36 = vsub.f32 %v1250_v15, %v6505_v38  ;;  %v1254_v8 = vpop.f32.mrb[14].mxu1  ;;  %v2376_v42 = vpack.c.bf16 %v6580_v2, %v6572_v27  ;;  %v2002_v44 = vsub.f32 0.0, %v1874_v43 }
  0xfa   :  { %4961 = vmatprep.mubr.msk.bf16.mxu0 %vm4600_vm4, %v5726_v3  ;;  %v1875_v39 = vmul.f32 %v1747_v34, %v1747_v34  ;;  %v1621_v26 = vsub.f32 %v1254_v8, %v6500_v58  ;;  %v340_v17 = vpop.permute.xlu0 %339  ;;  %4670 = vmatmul.mubr.msk.f32.gmra.mrb[120].mxu1 %vm946_vm1, %v6277_v32  ;;  %v2139_v40 = vmul.f32 1.442695, %v2001_v19  ;;  %v1256_v60 = vpop.f32.mrb[15].mxu1 }
  0xfb   :  { %v1748_v52 = vmul.f32 0.8, %v1620_v36  ;;  %v343_v50 = vpop.permute.xlu1 %342  ;;  %vm414_vm6 = vcmp.eq.s32.totalorder %v6335_v22, %v340_v17  ;;  %1576 = vmatprep.mubr.f32.mxu1 %v5725_v12  ;;  %v1622_v47 = vsub.f32 %v1256_v60, %v6505_v38  ;;  %v6599_v55 = vpop.eup %5258  ;;  %v2141_v32 = vmul.f32 1.442695, %v2002_v44 }
  0xfc   :  { %vm415_vm5 = vcmp.eq.s32.totalorder %v6335_v22, %v343_v50  ;;  %v2003_v23 = vsub.f32 0.0, %v1875_v39  ;;  %v1749_v30 = vmul.f32 0.8, %v1621_v26  ;;  %5268 = vpow2.f32 %v2139_v40 }
  0xfd   :  { %v1876_v29 = vmul.f32 %v1748_v52, %v1748_v52  ;;  %vm6594_vm7 = vmpackc.low %vm415_vm5, %vm414_vm6  ;;  %v1260_v7 = vpop.f32.mrb[16].mxu1  ;;  %v1750_v54 = vmul.f32 0.8, %v1622_v47  ;;  %5270 = vpow2.f32 %v2141_v32 }
  0xfe   :  { %v6601_v41 = vpop.eup %5260  ;;  %v2143_v61 = vmul.f32 1.442695, %v2003_v23  ;;  %v1877_v24 = vmul.f32 %v1749_v30, %v1749_v30  ;;  %v346_v63 = vpop.permute.xlu0 %345  ;;  %4671 = vmatmul.mubr.msk.f32.gmra.mrb[122].mxu1 %vm946_vm1, %v6272_v49  ;;  %4962 = vmatmul.mubr.msk.bf16.gmra.mrb[56].mxu0 %vm6594_vm7, %v5726_v3  ;;  %v1623_v59 = vsub.f32 %v1260_v7, %v6500_v58  ;;  %5272 = vpow2.f32 %v2137_v51 }
  0xff   :  { %v2004_v46 = vsub.f32 0.0, %v1876_v29  ;;  %v349_v18 = vpop.permute.xlu1 %348  ;;  %v6605_v53 = vpop.eup %5262  ;;  %vm416_vm9 = vcmp.eq.s32.totalorder %v6335_v22, %v346_v63  ;;  %1582 = vmatprep.mubr.f32.mxu1 %v5725_v12  ;;  %v1878_v48 = vmul.f32 %v1750_v54, %v1750_v54  ;;  %v2377_v25 = vpack.c.bf16 %v6601_v41, %v6599_v55 }
 0x100   :  { %vm417_vm8 = vcmp.eq.s32.totalorder %v6335_v22, %v349_v18  ;;  %v1262_v62 = vpop.f32.mrb[17].mxu1  ;;  %v6614_v37 = vpop.eup %5264  ;;  %v2005_v6 = vsub.f32 0.0, %v1877_v24  ;;  %v1751_v11 = vmul.f32 0.8, %v1623_v59  ;;  %5274 = vpow2.f32 %v2143_v61 }
 0x101   :  { %v2145_v49 = vmul.f32 1.442695, %v2004_v46  ;;  %vm4604_vm10 = vmpackc.low %vm417_vm8, %vm416_vm9  ;;  %v1624_v14 = vsub.f32 %v1262_v62, %v6505_v38  ;;  %v1266_v45 = vpop.f32.mrb[18].mxu1  ;;  %v2378_v13 = vpack.c.bf16 %v6614_v37, %v6605_v53  ;;  %v2006_v5 = vsub.f32 0.0, %v1878_v48 }
 0x102   :  { %4965 = vmatprep.mubr.msk.bf16.mxu0 %vm4604_vm10, %v5726_v3  ;;  %v6622_v56 = vpop.eup %5266  ;;  %v2147_v21 = vmul.f32 1.442695, %v2005_v6  ;;  %v1625_v57 = vsub.f32 %v1266_v45, %v6500_v58  ;;  %v352_v28 = vpop.permute.xlu0 %351  ;;  %4672 = vmatmul.mubr.msk.f32.gmra.mrb[124].mxu1 %vm946_vm1, %v6299_v33  ;;  %v1879_v10 = vmul.f32 %v1751_v11, %v1751_v11 }
 0x103   :  { %v355_v20 = vpop.permute.xlu1 %354  ;;  %v1752_v1 = vmul.f32 0.8, %v1624_v14  ;;  %vm418_vm12 = vcmp.eq.s32.totalorder %v6335_v22, %v352_v28  ;;  %v1268_v35 = vpop.f32.mrb[19].mxu1  ;;  %1588 = vmatprep.mubr.f32.mxu1 %v5725_v12  ;;  %v2149_v15 = vmul.f32 1.442695, %v2006_v5 }
 0x104   :  { %vm419_vm11 = vcmp.eq.s32.totalorder %v6335_v22, %v355_v20  ;;  %5276 = vpow2.f32 %v2147_v21  ;;  %v1753_v34 = vmul.f32 0.8, %v1625_v57  ;;  %v1626_v19 = vsub.f32 %v1268_v35, %v6505_v38 }
 0x105   :  { %vm6630_vm13 = vmpackc.low %vm419_vm11, %vm418_vm12  ;;  %5278 = vpow2.f32 %v2145_v49  ;;  %v2007_v33 = vsub.f32 0.0, %v1879_v10  ;;  %v1880_v43 = vmul.f32 %v1752_v1, %v1752_v1  ;;  %v1272_v8 = vpop.f32.mrb[20].mxu1 }
 0x106   :  { %5280 = vpow2.f32 %v2149_v15  ;;  %v1881_v51 = vmul.f32 %v1753_v34, %v1753_v34  ;;  %v1754_v22 = vmul.f32 0.8, %v1626_v19  ;;  %v1627_v39 = vsub.f32 %v1272_v8, %v6500_v58  ;;  %v1274_v12 = vpop.f32.mrb[21].mxu1  ;;  %4673 = vmatmul.mubr.msk.f32.gmra.mrb[126].mxu1 %vm946_vm1, %v6294_v0  ;;  %v6638_v52 = vpop.eup %5268  ;;  %4966 = vmatmul.mubr.msk.bf16.gmra.mrb[60].mxu0 %vm6630_vm13, %v5726_v3 }
 0x107   :  { %v2151_v50 = vmul.f32 1.442695, %v2007_v33  ;;  %v2008_v26 = vsub.f32 0.0, %v1880_v43  ;;  %v1628_v17 = vsub.f32 %v1274_v12, %v6505_v38  ;;  %4683 = vmatprep.mubr.msk.bf16.mxu0 %vm2511_vm14, %v2376_v42  ;;  %v2379_v0 = vpack.c.bf16 %v6638_v52, %v6622_v56  ;;  %v6650_v23 = vpop.eup %5270 }
 0x108   :  { %v2009_v40 = vsub.f32 0.0, %v1881_v51  ;;  %v1882_v44 = vmul.f32 %v1754_v22, %v1754_v22  ;;  %v1755_v60 = vmul.f32 0.8, %v1627_v39  ;;  %v6652_v47 = vpop.eup %5272 }
 0x109   :  { %v2153_v29 = vmul.f32 1.442695, %v2008_v26  ;;  %v1756_v30 = vmul.f32 0.8, %v1628_v17  ;;  %v1278_v31 = vpop.f32.mrb[22].mxu1  ;;  %5282 = vpow2.f32 %v2151_v50  ;;  %v2380_v42 = vpack.c.bf16 %v6650_v23, %v6652_v47 }
 0x10a   :  { %v2155_v3 = vmul.f32 1.442695, %v2009_v40  ;;  %v2010_v32 = vsub.f32 0.0, %v1882_v44  ;;  %v1883_v7 = vmul.f32 %v1755_v60, %v1755_v60  ;;  %v1629_v61 = vsub.f32 %v1278_v31, %v6500_v58  ;;  %v1280_v46 = vpop.f32.mrb[23].mxu1  ;;  %v6658_v24 = vpop.eup %5274 }
 0x10b   :  { %v1884_v27 = vmul.f32 %v1756_v30, %v1756_v30  ;;  %v1630_v2 = vsub.f32 %v1280_v46, %v6505_v38 }
 0x10c   :  { %5284 = vpow2.f32 %v2155_v3  ;;  %v2157_v54 = vmul.f32 1.442695, %v2010_v32  ;;  %v2011_v18 = vsub.f32 0.0, %v1883_v7  ;;  %v1757_v63 = vmul.f32 0.8, %v1629_v61 }
 0x10d   :  { %5286 = vpow2.f32 %v2153_v29  ;;  %v2012_v59 = vsub.f32 0.0, %v1884_v27  ;;  %v1758_v62 = vmul.f32 0.8, %v1630_v2  ;;  %v1284_v49 = vpop.f32.mrb[24].mxu1 }
 0x10e   :  { %v6660_v6 = vpop.eup %5276  ;;  %5288 = vpow2.f32 %v2157_v54  ;;  %v2159_v48 = vmul.f32 1.442695, %v2011_v18  ;;  %v1885_v11 = vmul.f32 %v1757_v63, %v1757_v63  ;;  %v1631_v14 = vsub.f32 %v1284_v49, %v6500_v58  ;;  %v1286_v45 = vpop.f32.mrb[25].mxu1  ;;  %2641 = vmatmul.mubr.bf16.vlgmr.msra.gmra.mrb[64].mxu0 %v2375_v9 }
 0x10f   :  { %v6663_v21 = vpop.eup %5278  ;;  %v2161_v5 = vmul.f32 1.442695, %v2012_v59  ;;  %v1886_v20 = vmul.f32 %v1758_v62, %v1758_v62  ;;  %v1632_v57 = vsub.f32 %v1286_v45, %v6505_v38  ;;  %v2381_v28 = vpack.c.bf16 %v6660_v6, %v6658_v24  ;;  %4684 = vmatprep.mubr.msk.bf16.mxu0 %vm2511_vm14, %v2378_v13 }
 0x110   :  { %v6671_v10 = vpop.eup %5280  ;;  %v2013_v1 = vsub.f32 0.0, %v1885_v11  ;;  %v1759_v35 = vmul.f32 0.8, %v1631_v14  ;;  %5290 = vpow2.f32 %v2159_v48 }
 0x111   :  { %v2014_v15 = vsub.f32 0.0, %v1886_v20  ;;  %v1760_v34 = vmul.f32 0.8, %v1632_v57  ;;  %v1290_v36 = vpop.f32.mrb[26].mxu1  ;;  %v2382_v4 = vpack.c.bf16 %v6671_v10, %v6663_v21  ;;  %5292 = vpow2.f32 %v2161_v5 }
 0x112   :  { %v2163_v16 = vmul.f32 1.442695, %v2013_v1  ;;  %v1887_v9 = vmul.f32 %v1759_v35, %v1759_v35  ;;  %v1633_v19 = vsub.f32 %v1290_v36, %v6500_v58  ;;  %v1292_v33 = vpop.f32.mrb[27].mxu1 }
 0x113   :  { %v2165_v43 = vmul.f32 1.442695, %v2014_v15  ;;  %v1888_v8 = vmul.f32 %v1760_v34, %v1760_v34  ;;  %v1634_v51 = vsub.f32 %v1292_v33, %v6505_v38  ;;  %v6681_v13 = vpop.eup %5282 }
 0x114   :  { %5294 = vpow2.f32 %v2163_v16  ;;  %v2015_v53 = vsub.f32 0.0, %v1887_v9  ;;  %v1761_v37 = vmul.f32 0.8, %v1633_v19 }
 0x115   :  { %5296 = vpow2.f32 %v2165_v43  ;;  %v2016_v22 = vsub.f32 0.0, %v1888_v8  ;;  %v1762_v39 = vmul.f32 0.8, %v1634_v51  ;;  %v1296_v12 = vpop.f32.mrb[28].mxu1 }
 0x116   :  { %v6683_v50 = vpop.eup %5284  ;;  %v2167_v26 = vmul.f32 1.442695, %v2015_v53  ;;  %v1889_v17 = vmul.f32 %v1761_v37, %v1761_v37  ;;  %v1635_v40 = vsub.f32 %v1296_v12, %v6500_v58  ;;  %v1298_v44 = vpop.f32.mrb[29].mxu1  ;;  %2649 = vmatmul.mubr.bf16.gmra.mrb[68].mxu0 %v2377_v25 }
 0x117   :  { %v6686_v60 = vpop.eup %5286  ;;  %v2169_v23 = vmul.f32 1.442695, %v2016_v22  ;;  %v1890_v29 = vmul.f32 %v1762_v39, %v1762_v39  ;;  %v1636_v30 = vsub.f32 %v1298_v44, %v6505_v38  ;;  %v2383_v31 = vpack.c.bf16 %v6683_v50, %v6681_v13  ;;  %4685 = vmatprep.mubr.msk.bf16.mxu0 %vm2511_vm14, %v2380_v42 }
 0x118   :  { %v6694_v47 = vpop.eup %5288  ;;  %v2017_v3 = vsub.f32 0.0, %v1889_v17  ;;  %v1763_v32 = vmul.f32 0.8, %v1635_v40  ;;  %5298 = vpow2.f32 %v2167_v26 }
 0x119   :  { %v2018_v7 = vsub.f32 0.0, %v1890_v29  ;;  %v1764_v61 = vmul.f32 0.8, %v1636_v30  ;;  %v1302_v46 = vpop.f32.mrb[30].mxu1  ;;  %v2384_v27 = vpack.c.bf16 %v6694_v47, %v6686_v60  ;;  %5300 = vpow2.f32 %v2169_v23 }
 0x11a   :  { %v2171_v55 = vmul.f32 1.442695, %v2017_v3  ;;  %v1891_v41 = vmul.f32 %v1763_v32, %v1763_v32  ;;  %v1637_v25 = vsub.f32 %v1302_v46, %v6500_v58  ;;  %v1304_v2 = vpop.f32.mrb[31].mxu1  ;;  %v6701_v59 = vpop.eup %5290 }
 0x11b   :  { %v2173_v54 = vmul.f32 1.442695, %v2018_v7  ;;  %v1892_v18 = vmul.f32 %v1764_v61, %v1764_v61  ;;  %v1638_v63 = vsub.f32 %v1304_v2, %v6505_v38  ;;  %v6703_v49 = vpop.eup %5292 }
 0x11c   :  { %5302 = vpow2.f32 %v2171_v55  ;;  %v2019_v42 = vsub.f32 0.0, %v1891_v41  ;;  %v1765_v62 = vmul.f32 0.8, %v1637_v25 }
 0x11d   :  { %5304 = vpow2.f32 %v2173_v54  ;;  %v2020_v48 = vsub.f32 0.0, %v1892_v18  ;;  %v1766_v11 = vmul.f32 0.8, %v1638_v63  ;;  %v1308_v14 = vpop.f32.mrb[32].mxu1 }
 0x11e   :  { %v6705_v45 = vpop.eup %5294  ;;  %v2175_v5 = vmul.f32 1.442695, %v2019_v42  ;;  %v1893_v20 = vmul.f32 %v1765_v62, %v1765_v62  ;;  %v1639_v57 = vsub.f32 %v1308_v14, %v6500_v58  ;;  %v1310_v1 = vpop.f32.mrb[33].mxu1  ;;  %2657 = vmatmul.mubr.bf16.gmra.mrb[72].mxu0 %v2379_v0 }
 0x11f   :  { %v6708_v35 = vpop.eup %5296  ;;  %v2177_v15 = vmul.f32 1.442695, %v2020_v48  ;;  %v1894_v34 = vmul.f32 %v1766_v11, %v1766_v11  ;;  %v1640_v36 = vsub.f32 %v1310_v1, %v6505_v38  ;;  %v2385_v16 = vpack.c.bf16 %v6705_v45, %v6701_v59  ;;  %4686 = vmatprep.mubr.msk.bf16.mxu0 %vm2511_vm14, %v2382_v4 }
 0x120   :  { %v2021_v9 = vsub.f32 0.0, %v1893_v20  ;;  %v1767_v19 = vmul.f32 0.8, %v1639_v57  ;;  %v2386_v33 = vpack.c.bf16 %v6708_v35, %v6703_v49  ;;  %5306 = vpow2.f32 %v2175_v5 }
 0x121   :  { %v2022_v43 = vsub.f32 0.0, %v1894_v34  ;;  %v1768_v8 = vmul.f32 0.8, %v1640_v36  ;;  %v1314_v51 = vpop.f32.mrb[34].mxu1  ;;  %5308 = vpow2.f32 %v2177_v15 }
 0x122   :  { %v2179_v56 = vmul.f32 1.442695, %v2021_v9  ;;  %v1895_v52 = vmul.f32 %v1767_v19, %v1767_v19  ;;  %v1641_v0 = vsub.f32 %v1314_v51, %v6500_v58  ;;  %v1316_v53 = vpop.f32.mrb[35].mxu1  ;;  %v6724_v21 = vpop.eup %5298 }
 0x123   :  { %v2181_v37 = vmul.f32 1.442695, %v2022_v43  ;;  %v1896_v22 = vmul.f32 %v1768_v8, %v1768_v8  ;;  %v1642_v39 = vsub.f32 %v1316_v53, %v6505_v38  ;;  %v6726_v12 = vpop.eup %5300 }
 0x124   :  { %5310 = vpow2.f32 %v2179_v56  ;;  %v2023_v10 = vsub.f32 0.0, %v1895_v52  ;;  %v1769_v4 = vmul.f32 0.8, %v1641_v0 }
 0x125   :  { %5312 = vpow2.f32 %v2181_v37  ;;  %v2024_v26 = vsub.f32 0.0, %v1896_v22  ;;  %v1770_v17 = vmul.f32 0.8, %v1642_v39  ;;  %v1320_v40 = vpop.f32.mrb[36].mxu1 }
 0x126   :  { %v6728_v44 = vpop.eup %5302  ;;  %v2183_v23 = vmul.f32 1.442695, %v2023_v10  ;;  %v1897_v29 = vmul.f32 %v1769_v4, %v1769_v4  ;;  %v1643_v30 = vsub.f32 %v1320_v40, %v6500_v58  ;;  %v1322_v3 = vpop.f32.mrb[37].mxu1  ;;  %2665 = vmatmul.mubr.bf16.gmra.mrb[76].mxu0 %v2381_v28 }
 0x127   :  { %v6731_v32 = vpop.eup %5304  ;;  %v2185_v7 = vmul.f32 1.442695, %v2024_v26  ;;  %v1898_v61 = vmul.f32 %v1770_v17, %v1770_v17  ;;  %v1644_v46 = vsub.f32 %v1322_v3, %v6505_v38  ;;  %v2387_v55 = vpack.c.bf16 %v6728_v44, %v6724_v21  ;;  %4687 = vmatprep.mubr.msk.bf16.mxu0 %vm2511_vm14, %v2384_v27 }
 0x128   :  { %v2025_v41 = vsub.f32 0.0, %v1897_v29  ;;  %v1771_v25 = vmul.f32 0.8, %v1643_v30  ;;  %v2388_v2 = vpack.c.bf16 %v6731_v32, %v6726_v12  ;;  %5314 = vpow2.f32 %v2183_v23 }
 0x129   :  { %v2026_v54 = vsub.f32 0.0, %v1898_v61  ;;  %v1772_v18 = vmul.f32 0.8, %v1644_v46  ;;  %v1326_v63 = vpop.f32.mrb[38].mxu1  ;;  %5316 = vpow2.f32 %v2185_v7 }
 0x12a   :  { %v2187_v24 = vmul.f32 1.442695, %v2025_v41  ;;  %v1899_v6 = vmul.f32 %v1771_v25, %v1771_v25  ;;  %v1645_v28 = vsub.f32 %v1326_v63, %v6500_v58  ;;  %v1328_v42 = vpop.f32.mrb[39].mxu1  ;;  %v6747_v60 = vpop.eup %5306 }
 0x12b   :  { %v2189_v62 = vmul.f32 1.442695, %v2026_v54  ;;  %v1900_v48 = vmul.f32 %v1772_v18, %v1772_v18  ;;  %v1646_v11 = vsub.f32 %v1328_v42, %v6505_v38  ;;  %v6749_v14 = vpop.eup %5308 }
 0x12c   :  { %5318 = vpow2.f32 %v2187_v24  ;;  %v2027_v47 = vsub.f32 0.0, %v1899_v6  ;;  %v1773_v27 = vmul.f32 0.8, %v1645_v28 }
 0x12d   :  { %5320 = vpow2.f32 %v2189_v62  ;;  %v2028_v5 = vsub.f32 0.0, %v1900_v48  ;;  %v1774_v20 = vmul.f32 0.8, %v1646_v11  ;;  %v1332_v57 = vpop.f32.mrb[40].mxu1 }
 0x12e   :  { %v6751_v1 = vpop.eup %5310  ;;  %v2191_v15 = vmul.f32 1.442695, %v2027_v47  ;;  %v1901_v34 = vmul.f32 %v1773_v27, %v1773_v27  ;;  %v1647_v36 = vsub.f32 %v1332_v57, %v6500_v58  ;;  %v1334_v9 = vpop.f32.mrb[41].mxu1  ;;  %2673 = vmatmul.mubr.bf16.gmra.mrb[80].mxu0 %v2383_v31 }
 0x12f   :  { %v6754_v19 = vpop.eup %5312  ;;  %v2193_v43 = vmul.f32 1.442695, %v2028_v5  ;;  %v1902_v8 = vmul.f32 %v1774_v20, %v1774_v20  ;;  %v1648_v51 = vsub.f32 %v1334_v9, %v6505_v38  ;;  %v2389_v56 = vpack.c.bf16 %v6751_v1, %v6747_v60  ;;  %4688 = vmatprep.mubr.msk.bf16.mxu0 %vm2511_vm14, %v2386_v33 }
 0x130   :  { %v2029_v52 = vsub.f32 0.0, %v1901_v34  ;;  %v1775_v0 = vmul.f32 0.8, %v1647_v36  ;;  %v2390_v53 = vpack.c.bf16 %v6754_v19, %v6749_v14  ;;  %5322 = vpow2.f32 %v2191_v15 }
 0x131   :  { %v2030_v37 = vsub.f32 0.0, %v1902_v8  ;;  %v1776_v22 = vmul.f32 0.8, %v1648_v51  ;;  %v1338_v39 = vpop.f32.mrb[42].mxu1  ;;  %5324 = vpow2.f32 %v2193_v43 }
 0x132   :  { %v2195_v13 = vmul.f32 1.442695, %v2029_v52  ;;  %v1903_v50 = vmul.f32 %v1775_v0, %v1775_v0  ;;  %v1649_v31 = vsub.f32 %v1338_v39, %v6500_v58  ;;  %v1340_v10 = vpop.f32.mrb[43].mxu1  ;;  %v6770_v49 = vpop.eup %5314 }
 0x133   :  { %v2197_v4 = vmul.f32 1.442695, %v2030_v37  ;;  %v1904_v26 = vmul.f32 %v1776_v22, %v1776_v22  ;;  %v1650_v17 = vsub.f32 %v1340_v10, %v6505_v38  ;;  %v6772_v40 = vpop.eup %5316 }
 0x134   :  { %5326 = vpow2.f32 %v2195_v13  ;;  %v2031_v35 = vsub.f32 0.0, %v1903_v50  ;;  %v1777_v33 = vmul.f32 0.8, %v1649_v31 }
 0x135   :  { %5328 = vpow2.f32 %v2197_v4  ;;  %v2032_v23 = vsub.f32 0.0, %v1904_v26  ;;  %v1778_v29 = vmul.f32 0.8, %v1650_v17  ;;  %v1344_v30 = vpop.f32.mrb[44].mxu1 }
 0x136   :  { %v6774_v3 = vpop.eup %5318  ;;  %v2199_v7 = vmul.f32 1.442695, %v2031_v35  ;;  %v1905_v61 = vmul.f32 %v1777_v33, %v1777_v33  ;;  %v1651_v46 = vsub.f32 %v1344_v30, %v6500_v58  ;;  %v1346_v41 = vpop.f32.mrb[45].mxu1  ;;  %2681 = vmatmul.mubr.bf16.gmra.mrb[84].mxu0 %v2385_v16 }
 0x137   :  { %v6777_v25 = vpop.eup %5320  ;;  %v2201_v54 = vmul.f32 1.442695, %v2032_v23  ;;  %v1906_v18 = vmul.f32 %v1778_v29, %v1778_v29  ;;  %v1652_v63 = vsub.f32 %v1346_v41, %v6505_v38  ;;  %v2391_v24 = vpack.c.bf16 %v6774_v3, %v6770_v49  ;;  %4689 = vmatprep.mubr.msk.bf16.mxu0 %vm2511_vm14, %v2388_v2 }
 0x138   :  { %v2033_v6 = vsub.f32 0.0, %v1905_v61  ;;  %v1779_v28 = vmul.f32 0.8, %v1651_v46  ;;  %v2392_v42 = vpack.c.bf16 %v6777_v25, %v6772_v40  ;;  %5330 = vpow2.f32 %v2199_v7 }
 0x139   :  { %v2034_v62 = vsub.f32 0.0, %v1906_v18  ;;  %v1780_v48 = vmul.f32 0.8, %v1652_v63  ;;  %v1350_v11 = vpop.f32.mrb[46].mxu1  ;;  %5332 = vpow2.f32 %v2201_v54 }
 0x13a   :  { %v2203_v59 = vmul.f32 1.442695, %v2033_v6  ;;  %v1907_v45 = vmul.f32 %v1779_v28, %v1779_v28  ;;  %v1653_v16 = vsub.f32 %v1350_v11, %v6500_v58  ;;  %v1352_v47 = vpop.f32.mrb[47].mxu1  ;;  %v6793_v12 = vpop.eup %5322 }
 0x13b   :  { %v2205_v27 = vmul.f32 1.442695, %v2034_v62  ;;  %v1908_v5 = vmul.f32 %v1780_v48, %v1780_v48  ;;  %v1654_v20 = vsub.f32 %v1352_v47, %v6505_v38  ;;  %v6795_v57 = vpop.eup %5324 }
 0x13c   :  { %5334 = vpow2.f32 %v2203_v59  ;;  %v2035_v32 = vsub.f32 0.0, %v1907_v45  ;;  %v1781_v2 = vmul.f32 0.8, %v1653_v16 }
 0x13d   :  { %5336 = vpow2.f32 %v2205_v27  ;;  %v2036_v15 = vsub.f32 0.0, %v1908_v5  ;;  %v1782_v34 = vmul.f32 0.8, %v1654_v20  ;;  %v1356_v36 = vpop.f32.mrb[48].mxu1 }
 0x13e   :  { %v6797_v9 = vpop.eup %5326  ;;  %v2207_v43 = vmul.f32 1.442695, %v2035_v32  ;;  %v1909_v8 = vmul.f32 %v1781_v2, %v1781_v2  ;;  %v1655_v51 = vsub.f32 %v1356_v36, %v6500_v58  ;;  %v1358_v52 = vpop.f32.mrb[49].mxu1  ;;  %2689 = vmatmul.mubr.bf16.gmra.mrb[88].mxu0 %v2387_v55 }
 0x13f   :  { %v6800_v0 = vpop.eup %5328  ;;  %v2209_v37 = vmul.f32 1.442695, %v2036_v15  ;;  %v1910_v22 = vmul.f32 %v1782_v34, %v1782_v34  ;;  %v1656_v39 = vsub.f32 %v1358_v52, %v6505_v38  ;;  %v2393_v13 = vpack.c.bf16 %v6797_v9, %v6793_v12  ;;  %4690 = vmatprep.mubr.msk.bf16.mxu0 %vm2511_vm14, %v2390_v53 }
 0x140   :  { %v2037_v50 = vsub.f32 0.0, %v1909_v8  ;;  %v1783_v31 = vmul.f32 0.8, %v1655_v51  ;;  %v2394_v10 = vpack.c.bf16 %v6800_v0, %v6795_v57  ;;  %5338 = vpow2.f32 %v2207_v43 }
 0x141   :  { %v2038_v4 = vsub.f32 0.0, %v1910_v22  ;;  %v1784_v26 = vmul.f32 0.8, %v1656_v39  ;;  %v1362_v17 = vpop.f32.mrb[50].mxu1  ;;  %5340 = vpow2.f32 %v2209_v37 }
 0x142   :  { %v2211_v21 = vmul.f32 1.442695, %v2037_v50  ;;  %v1911_v44 = vmul.f32 %v1783_v31, %v1783_v31  ;;  %v1657_v55 = vsub.f32 %v1362_v17, %v6500_v58  ;;  %v1364_v35 = vpop.f32.mrb[51].mxu1  ;;  %v6816_v14 = vpop.eup %5330 }
 0x143   :  { %v2213_v33 = vmul.f32 1.442695, %v2038_v4  ;;  %v1912_v23 = vmul.f32 %v1784_v26, %v1784_v26  ;;  %v1658_v29 = vsub.f32 %v1364_v35, %v6505_v38  ;;  %v6818_v30 = vpop.eup %5332 }
 0x144   :  { %5342 = vpow2.f32 %v2211_v21  ;;  %v2039_v19 = vsub.f32 0.0, %v1911_v44  ;;  %v1785_v53 = vmul.f32 0.8, %v1657_v55 }
 0x145   :  { %5344 = vpow2.f32 %v2213_v33  ;;  %v2040_v7 = vsub.f32 0.0, %v1912_v23  ;;  %v1786_v61 = vmul.f32 0.8, %v1658_v29  ;;  %v1368_v46 = vpop.f32.mrb[52].mxu1 }
 0x146   :  { %v6820_v41 = vpop.eup %5334  ;;  %v2215_v54 = vmul.f32 1.442695, %v2039_v19  ;;  %v1913_v18 = vmul.f32 %v1785_v53, %v1785_v53  ;;  %v1659_v63 = vsub.f32 %v1368_v46, %v6500_v58  ;;  %v1370_v6 = vpop.f32.mrb[53].mxu1  ;;  %2697 = vmatmul.mubr.bf16.gmra.mrb[92].mxu0 %v2389_v56 }
 0x147   :  { %v6823_v28 = vpop.eup %5336  ;;  %v2217_v62 = vmul.f32 1.442695, %v2040_v7  ;;  %v1914_v48 = vmul.f32 %v1786_v61, %v1786_v61  ;;  %v1660_v11 = vsub.f32 %v1370_v6, %v6505_v38  ;;  %v2395_v59 = vpack.c.bf16 %v6820_v41, %v6816_v14  ;;  %4691 = vmatprep.mubr.msk.bf16.mxu0 %vm2511_vm14, %v2392_v42 }
 0x148   :  { %v2041_v45 = vsub.f32 0.0, %v1913_v18  ;;  %v1787_v16 = vmul.f32 0.8, %v1659_v63  ;;  %v2396_v47 = vpack.c.bf16 %v6823_v28, %v6818_v30  ;;  %5346 = vpow2.f32 %v2215_v54 }
 0x149   :  { %v2042_v27 = vsub.f32 0.0, %v1914_v48  ;;  %v1788_v5 = vmul.f32 0.8, %v1660_v11  ;;  %v1374_v20 = vpop.f32.mrb[54].mxu1  ;;  %5348 = vpow2.f32 %v2217_v62 }
 0x14a   :  { %v2219_v60 = vmul.f32 1.442695, %v2041_v45  ;;  %v1915_v1 = vmul.f32 %v1787_v16, %v1787_v16  ;;  %v1661_v56 = vsub.f32 %v1374_v20, %v6500_v58  ;;  %v1376_v32 = vpop.f32.mrb[55].mxu1  ;;  %v6839_v40 = vpop.eup %5338 }
 0x14b   :  { %v2221_v2 = vmul.f32 1.442695, %v2042_v27  ;;  %v1916_v15 = vmul.f32 %v1788_v5, %v1788_v5  ;;  %v1662_v34 = vsub.f32 %v1376_v32, %v6505_v38  ;;  %v6841_v36 = vpop.eup %5340 }
 0x14c   :  { %5350 = vpow2.f32 %v2219_v60  ;;  %v2043_v25 = vsub.f32 0.0, %v1915_v1  ;;  %v1789_v42 = vmul.f32 0.8, %v1661_v56 }
 0x14d   :  { %5352 = vpow2.f32 %v2221_v2  ;;  %v2044_v43 = vsub.f32 0.0, %v1916_v15  ;;  %v1790_v8 = vmul.f32 0.8, %v1662_v34  ;;  %v1380_v51 = vpop.f32.mrb[56].mxu1 }
 0x14e   :  { %v6843_v52 = vpop.eup %5342  ;;  %v2223_v37 = vmul.f32 1.442695, %v2043_v25  ;;  %v1917_v22 = vmul.f32 %v1789_v42, %v1789_v42  ;;  %v1663_v39 = vsub.f32 %v1380_v51, %v6500_v58  ;;  %v1382_v50 = vpop.f32.mrb[57].mxu1  ;;  %2705 = vmatmul.mubr.bf16.gmra.mrb[96].mxu0 %v2391_v24 }
 0x14f   :  { %v6846_v31 = vpop.eup %5344  ;;  %v2225_v4 = vmul.f32 1.442695, %v2044_v43  ;;  %v1918_v26 = vmul.f32 %v1790_v8, %v1790_v8  ;;  %v1664_v17 = vsub.f32 %v1382_v50, %v6505_v38  ;;  %v2397_v21 = vpack.c.bf16 %v6843_v52, %v6839_v40  ;;  %4692 = vmatprep.mubr.msk.bf16.mxu0 %vm2511_vm14, %v2394_v10 }
 0x150   :  { %v2045_v44 = vsub.f32 0.0, %v1917_v22  ;;  %v1791_v55 = vmul.f32 0.8, %v1663_v39  ;;  %v2398_v35 = vpack.c.bf16 %v6846_v31, %v6841_v36  ;;  %5354 = vpow2.f32 %v2223_v37 }
 0x151   :  { %v2046_v33 = vsub.f32 0.0, %v1918_v26  ;;  %v1792_v23 = vmul.f32 0.8, %v1664_v17  ;;  %v1386_v29 = vpop.f32.mrb[58].mxu1  ;;  %5356 = vpow2.f32 %v2225_v4 }
 0x152   :  { %v2227_v49 = vmul.f32 1.442695, %v2045_v44  ;;  %v1919_v3 = vmul.f32 %v1791_v55, %v1791_v55  ;;  %v1665_v24 = vsub.f32 %v1386_v29, %v6500_v58  ;;  %v1388_v19 = vpop.f32.mrb[59].mxu1  ;;  %v6862_v57 = vpop.eup %5346 }
 0x153   :  { %v2229_v53 = vmul.f32 1.442695, %v2046_v33  ;;  %v1920_v7 = vmul.f32 %v1792_v23, %v1792_v23  ;;  %v1666_v61 = vsub.f32 %v1388_v19, %v6505_v38  ;;  %v6864_v46 = vpop.eup %5348 }
 0x154   :  { %5358 = vpow2.f32 %v2227_v49  ;;  %v2047_v0 = vsub.f32 0.0, %v1919_v3  ;;  %v1793_v10 = vmul.f32 0.8, %v1665_v24 }
 0x155   :  { %5360 = vpow2.f32 %v2229_v53  ;;  %v2048_v54 = vsub.f32 0.0, %v1920_v7  ;;  %v1794_v18 = vmul.f32 0.8, %v1666_v61  ;;  %v1392_v63 = vpop.f32.mrb[60].mxu1 }
 0x156   :  { %v6866_v6 = vpop.eup %5350  ;;  %v2231_v62 = vmul.f32 1.442695, %v2047_v0  ;;  %v1921_v48 = vmul.f32 %v1793_v10, %v1793_v10  ;;  %v1667_v11 = vsub.f32 %v1392_v63, %v6500_v58  ;;  %v1394_v45 = vpop.f32.mrb[61].mxu1  ;;  %2713 = vmatmul.mubr.bf16.gmra.mrb[100].mxu0 %v2393_v13 }
 0x157   :  { %v6869_v16 = vpop.eup %5352  ;;  %v2233_v27 = vmul.f32 1.442695, %v2048_v54  ;;  %v1922_v5 = vmul.f32 %v1794_v18, %v1794_v18  ;;  %v1668_v20 = vsub.f32 %v1394_v45, %v6505_v38  ;;  %v2399_v60 = vpack.c.bf16 %v6866_v6, %v6862_v57  ;;  %4693 = vmatprep.mubr.msk.bf16.mxu0 %vm2511_vm14, %v2396_v47 }
 0x158   :  { %v2049_v1 = vsub.f32 0.0, %v1921_v48  ;;  %v1795_v56 = vmul.f32 0.8, %v1667_v11  ;;  %v2400_v32 = vpack.c.bf16 %v6869_v16, %v6864_v46  ;;  %5362 = vpow2.f32 %v2231_v62 }
 0x159   :  { %v2050_v2 = vsub.f32 0.0, %v1922_v5  ;;  %v1796_v15 = vmul.f32 0.8, %v1668_v20  ;;  %v1398_v34 = vpop.f32.mrb[62].mxu1  ;;  %5364 = vpow2.f32 %v2233_v27 }
 0x15a   :  { %v2235_v12 = vmul.f32 1.442695, %v2049_v1  ;;  %v1923_v9 = vmul.f32 %v1795_v56, %v1795_v56  ;;  %v1669_v13 = vsub.f32 %v1398_v34, %v6500_v58  ;;  %v1400_v25 = vpop.f32.mrb[63].mxu1  ;;  %v6885_v30 = vpop.eup %5354 }
 0x15b   :  { %v2237_v42 = vmul.f32 1.442695, %v2050_v2  ;;  %v1924_v43 = vmul.f32 %v1796_v15, %v1796_v15  ;;  %v1670_v8 = vsub.f32 %v1400_v25, %v6505_v38  ;;  %v6887_v51 = vpop.eup %5356 }
 0x15c   :  { %5366 = vpow2.f32 %v2235_v12  ;;  %v2051_v28 = vsub.f32 0.0, %v1923_v9  ;;  %v1797_v47 = vmul.f32 0.8, %v1669_v13 }
 0x15d   :  { %5368 = vpow2.f32 %v2237_v42  ;;  %v2052_v37 = vsub.f32 0.0, %v1924_v43  ;;  %v1798_v22 = vmul.f32 0.8, %v1670_v8  ;;  %v1404_v39 = vpop.f32.mrb[64].mxu1 }
 0x15e   :  { %v6889_v50 = vpop.eup %5358  ;;  %v2239_v4 = vmul.f32 1.442695, %v2051_v28  ;;  %v1925_v26 = vmul.f32 %v1797_v47, %v1797_v47  ;;  %v1671_v17 = vsub.f32 %v1404_v39, %v6500_v58  ;;  %v1406_v44 = vpop.f32.mrb[65].mxu1  ;;  %2721 = vmatmul.mubr.bf16.gmra.mrb[104].mxu0 %v2395_v59 }
 0x15f   :  { %v6892_v55 = vpop.eup %5360  ;;  %v2241_v33 = vmul.f32 1.442695, %v2052_v37  ;;  %v1926_v23 = vmul.f32 %v1798_v22, %v1798_v22  ;;  %v1672_v29 = vsub.f32 %v1406_v44, %v6505_v38  ;;  %v2401_v49 = vpack.c.bf16 %v6889_v50, %v6885_v30  ;;  %4694 = vmatprep.mubr.msk.bf16.mxu0 %vm2511_vm14, %v2398_v35 }
 0x160   :  { %v2053_v3 = vsub.f32 0.0, %v1925_v26  ;;  %v1799_v24 = vmul.f32 0.8, %v1671_v17  ;;  %v2402_v19 = vpack.c.bf16 %v6892_v55, %v6887_v51  ;;  %5370 = vpow2.f32 %v2239_v4 }
 0x161   :  { %v2054_v53 = vsub.f32 0.0, %v1926_v23  ;;  %v1800_v7 = vmul.f32 0.8, %v1672_v29  ;;  %v1410_v61 = vpop.f32.mrb[66].mxu1  ;;  %v6907_v10 = vpop.f32.mrb[0].mxu0  ;;  %5372 = vpow2.f32 %v2241_v33 }
 0x162   :  { %v2243_v14 = vmul.f32 1.442695, %v2053_v3  ;;  %v1927_v41 = vmul.f32 %v1799_v24, %v1799_v24  ;;  %v1673_v59 = vsub.f32 %v1410_v61, %v6500_v58  ;;  %v1412_v0 = vpop.f32.mrb[67].mxu1  ;;  %v6910_v31 = vpop.f32.mrb[1].mxu0 }
 0x163   :  { %v2245_v54 = vmul.f32 1.442695, %v2054_v53  ;;  %v1928_v18 = vmul.f32 %v1800_v7, %v1800_v7  ;;  %v1674_v36 = vsub.f32 %v1412_v0, %v6505_v38  ;;  %v6912_v35 = vpop.eup %5362  ;;  %v6914_v48 = vpop.f32.mrb[2].mxu0 }
 0x164   :  { %5374 = vpow2.f32 %v2243_v14  ;;  %v2055_v63 = vsub.f32 0.0, %v1927_v41  ;;  %v1801_v62 = vmul.f32 0.8, %v1673_v59  ;;  %v6916_v11 = vpop.eup %5364  ;;  %v6918_v20 = vpop.f32.mrb[3].mxu0 }
 0x165   :  { %5376 = vpow2.f32 %v2245_v54  ;;  %v2056_v45 = vsub.f32 0.0, %v1928_v18  ;;  %v1802_v27 = vmul.f32 0.8, %v1674_v36  ;;  %v1416_v5 = vpop.f32.mrb[68].mxu1 }
 0x166   :  { %v6920_v1 = vpop.eup %5366  ;;  %v2247_v56 = vmul.f32 1.442695, %v2055_v63  ;;  %v1929_v2 = vmul.f32 %v1801_v62, %v1801_v62  ;;  %v1675_v15 = vsub.f32 %v1416_v5, %v6500_v58  ;;  %v1418_v34 = vpop.f32.mrb[69].mxu1  ;;  %2729 = vmatmul.mubr.bf16.gmra.mrb[108].mxu0 %v2397_v21 }
 0x167   :  { %v6923_v12 = vpop.eup %5368  ;;  %v2249_v9 = vmul.f32 1.442695, %v2056_v45  ;;  %v1930_v13 = vmul.f32 %v1802_v27, %v1802_v27  ;;  %v1676_v25 = vsub.f32 %v1418_v34, %v6505_v38  ;;  %v2403_v42 = vpack.c.bf16 %v6920_v1, %v6912_v35  ;;  %4695 = vmatprep.mubr.msk.bf16.mxu0 %vm2511_vm14, %v2400_v32 }
 0x168   :  { %v2057_v43 = vsub.f32 0.0, %v1929_v2  ;;  %v1803_v8 = vmul.f32 0.8, %v1675_v15  ;;  %v2404_v28 = vpack.c.bf16 %v6923_v12, %v6916_v11  ;;  %5378 = vpow2.f32 %v2247_v56 }
 0x169   :  { %v2058_v47 = vsub.f32 0.0, %v1930_v13  ;;  %v1804_v37 = vmul.f32 0.8, %v1676_v25  ;;  %v1422_v22 = vpop.f32.mrb[70].mxu1  ;;  %v6938_v4 = vpop.f32.mrb[4].mxu0  ;;  %5380 = vpow2.f32 %v2249_v9 }
 0x16a   :  { %v2251_v40 = vmul.f32 1.442695, %v2057_v43  ;;  %v1931_v52 = vmul.f32 %v1803_v8, %v1803_v8  ;;  %v1677_v21 = vsub.f32 %v1422_v22, %v6500_v58  ;;  %v1424_v39 = vpop.f32.mrb[71].mxu1  ;;  %v6941_v16 = vpop.f32.mrb[5].mxu0 }
 0x16b   :  { %v2253_v26 = vmul.f32 1.442695, %v2058_v47  ;;  %v1932_v17 = vmul.f32 %v1804_v37, %v1804_v37  ;;  %v1678_v46 = vsub.f32 %v1424_v39, %v6505_v38  ;;  %v6943_v32 = vpop.eup %5370  ;;  %v6945_v23 = vpop.f32.mrb[6].mxu0 }
 0x16c   :  { %5382 = vpow2.f32 %v2251_v40  ;;  %v2059_v44 = vsub.f32 0.0, %v1931_v52  ;;  %v1805_v33 = vmul.f32 0.8, %v1677_v21  ;;  %v6947_v29 = vpop.eup %5372  ;;  %v6949_v7 = vpop.f32.mrb[7].mxu0 }
 0x16d   :  { %5384 = vpow2.f32 %v2253_v26  ;;  %v2060_v3 = vsub.f32 0.0, %v1932_v17  ;;  %v1806_v24 = vmul.f32 0.8, %v1678_v46  ;;  %v1428_v53 = vpop.f32.mrb[72].mxu1 }
 0x16e   :  { %v6951_v61 = vpop.eup %5374  ;;  %v2255_v14 = vmul.f32 1.442695, %v2059_v44  ;;  %v1933_v41 = vmul.f32 %v1805_v33, %v1805_v33  ;;  %v1679_v59 = vsub.f32 %v1428_v53, %v6500_v58  ;;  %v1430_v0 = vpop.f32.mrb[73].mxu1  ;;  %2737 = vmatmul.mubr.bf16.gmra.mrb[112].mxu0 %v2399_v60  ;;  %v2961_v33 = vld [vmem:[%s8914_s6] sm:$0xff] }
 0x16f   :  { %v6954_v54 = vpop.eup %5376  ;;  %v2257_v18 = vmul.f32 1.442695, %v2060_v3  ;;  %v1934_v36 = vmul.f32 %v1806_v24, %v1806_v24  ;;  %v1680_v63 = vsub.f32 %v1430_v0, %v6505_v38  ;;  %v2405_v62 = vpack.c.bf16 %v6951_v61, %v6943_v32  ;;  %4696 = vmatprep.mubr.msk.bf16.mxu0 %vm2511_vm14, %v2402_v19  ;;  %v2962_v3 = vld [vmem:[%s8914_s6 + $0x8] sm:$0xff] }
 0x170   :  { %v2061_v45 = vsub.f32 0.0, %v1933_v41  ;;  %v1807_v27 = vmul.f32 0.8, %v1679_v59  ;;  %v2406_v5 = vpack.c.bf16 %v6954_v54, %v6947_v29  ;;  %5386 = vpow2.f32 %v2255_v14 }
 0x171   :  { %v2062_v56 = vsub.f32 0.0, %v1934_v36  ;;  %v1808_v2 = vmul.f32 0.8, %v1680_v63  ;;  %v1434_v15 = vpop.f32.mrb[74].mxu1  ;;  %v6969_v9 = vpop.f32.mrb[8].mxu0  ;;  %5388 = vpow2.f32 %v2257_v18  ;;  %v7005_v30 = vpack.c.bf16 %v2962_v3, %v2961_v33 }
 0x172   :  { %v2259_v57 = vmul.f32 1.442695, %v2061_v45  ;;  %v1935_v6 = vmul.f32 %v1807_v27, %v1807_v27  ;;  %v1681_v60 = vsub.f32 %v1434_v15, %v6500_v58  ;;  %v1436_v34 = vpop.f32.mrb[75].mxu1  ;;  %v6972_v55 = vpop.f32.mrb[9].mxu0 }
 0x173   :  { %v2261_v13 = vmul.f32 1.442695, %v2062_v56  ;;  %v1936_v25 = vmul.f32 %v1808_v2, %v1808_v2  ;;  %v1682_v51 = vsub.f32 %v1436_v34, %v6505_v38  ;;  %v6974_v19 = vpop.eup %5378  ;;  %v6976_v47 = vpop.f32.mrb[10].mxu0  ;;  %5076 = vmatprep.subr.bf16.mxu1 %v7005_v30 }
 0x174   :  { %5390 = vpow2.f32 %v2259_v57  ;;  %v2063_v43 = vsub.f32 0.0, %v1935_v6  ;;  %v1809_v8 = vmul.f32 0.8, %v1681_v60  ;;  %v6978_v37 = vpop.eup %5380  ;;  %v6980_v21 = vpop.f32.mrb[11].mxu0 }
 0x175   :  { %5392 = vpow2.f32 %v2261_v13  ;;  %v2064_v22 = vsub.f32 0.0, %v1936_v25  ;;  %v1810_v40 = vmul.f32 0.8, %v1682_v51  ;;  %v1440_v52 = vpop.f32.mrb[76].mxu1 }
 0x176   :  { %v6982_v39 = vpop.eup %5382  ;;  %v2263_v26 = vmul.f32 1.442695, %v2063_v43  ;;  %v1937_v17 = vmul.f32 %v1809_v8, %v1809_v8  ;;  %v1683_v46 = vsub.f32 %v1440_v52, %v6500_v58  ;;  %v1442_v44 = vpop.f32.mrb[77].mxu1  ;;  %2745 = vmatmul.mubr.bf16.gmra.mrb[116].mxu0 %v2401_v49 }
 0x177   :  { %v6991_v24 = vpop.eup %5384  ;;  %v2265_v53 = vmul.f32 1.442695, %v2064_v22  ;;  %v1938_v14 = vmul.f32 %v1810_v40, %v1810_v40  ;;  %v1684_v41 = vsub.f32 %v1442_v44, %v6505_v38  ;;  %v2407_v59 = vpack.c.bf16 %v6982_v39, %v6974_v19  ;;  %4697 = vmatprep.mubr.msk.bf16.mxu0 %vm2511_vm14, %v2404_v28 }
 0x178   :  { %v2065_v0 = vsub.f32 0.0, %v1937_v17  ;;  %v1811_v18 = vmul.f32 0.8, %v1683_v46  ;;  %v2408_v36 = vpack.c.bf16 %v6991_v24, %v6978_v37  ;;  %5394 = vpow2.f32 %v2263_v26 }
 0x179   :  { %v2066_v63 = vsub.f32 0.0, %v1938_v14  ;;  %v1812_v45 = vmul.f32 0.8, %v1684_v41  ;;  %v1446_v27 = vpop.f32.mrb[78].mxu1  ;;  %v7008_v15 = vpop.f32.mrb[12].mxu0  ;;  %5396 = vpow2.f32 %v2265_v53 }
 0x17a   :  { %v2267_v50 = vmul.f32 1.442695, %v2065_v0  ;;  %v1939_v49 = vmul.f32 %v1811_v18, %v1811_v18  ;;  %v1685_v56 = vsub.f32 %v1446_v27, %v6500_v58  ;;  %v1448_v2 = vpop.f32.mrb[79].mxu1  ;;  %v7011_v57 = vpop.f32.mrb[13].mxu0 }
 0x17b   :  { %v2269_v11 = vmul.f32 1.442695, %v2066_v63  ;;  %v1940_v12 = vmul.f32 %v1812_v45, %v1812_v45  ;;  %v1686_v28 = vsub.f32 %v1448_v2, %v6505_v38  ;;  %v7014_v6 = vpop.eup %5386  ;;  %v7016_v13 = vpop.f32.mrb[14].mxu0 }
 0x17c   :  { %5398 = vpow2.f32 %v2267_v50  ;;  %v2067_v60 = vsub.f32 0.0, %v1939_v49  ;;  %v1813_v34 = vmul.f32 0.8, %v1685_v56  ;;  %v7018_v25 = vpop.eup %5388  ;;  %v7020_v22 = vpop.f32.mrb[15].mxu0 }
 0x17d   :  { %5400 = vpow2.f32 %v2269_v11  ;;  %v2068_v51 = vsub.f32 0.0, %v1940_v12  ;;  %v1814_v43 = vmul.f32 0.8, %v1686_v28  ;;  %v1452_v8 = vpop.f32.mrb[80].mxu1 }
 0x17e   :  { %v7022_v40 = vpop.eup %5390  ;;  %v2271_v52 = vmul.f32 1.442695, %v2067_v60  ;;  %v1941_v26 = vmul.f32 %v1813_v34, %v1813_v34  ;;  %v1687_v17 = vsub.f32 %v1452_v8, %v6500_v58  ;;  %v1454_v46 = vpop.f32.mrb[81].mxu1  ;;  %2753 = vmatmul.mubr.bf16.gmra.mrb[120].mxu0 %v2403_v42 }
 0x17f   :  { %v7025_v44 = vpop.eup %5392  ;;  %v2273_v33 = vmul.f32 1.442695, %v2068_v51  ;;  %v1942_v3 = vmul.f32 %v1814_v43, %v1814_v43  ;;  %v1688_v53 = vsub.f32 %v1454_v46, %v6505_v38  ;;  %v2409_v14 = vpack.c.bf16 %v7022_v40, %v7014_v6  ;;  %4698 = vmatprep.mubr.msk.bf16.mxu0 %vm2511_vm14, %v2406_v5 }
 0x180   :  { %v2069_v41 = vsub.f32 0.0, %v1941_v26  ;;  %v1815_v0 = vmul.f32 0.8, %v1687_v17  ;;  %v2410_v18 = vpack.c.bf16 %v7025_v44, %v7018_v25  ;;  %5402 = vpow2.f32 %v2271_v52 }
 0x181   :  { %v2070_v63 = vsub.f32 0.0, %v1942_v3  ;;  %v1816_v45 = vmul.f32 0.8, %v1688_v53  ;;  %v1458_v27 = vpop.f32.mrb[82].mxu1  ;;  %v7040_v49 = vpop.f32.mrb[16].mxu0  ;;  %5404 = vpow2.f32 %v2273_v33 }
 0x182   :  { %v2275_v35 = vmul.f32 1.442695, %v2069_v41  ;;  %v1943_v1 = vmul.f32 %v1815_v0, %v1815_v0  ;;  %v1689_v42 = vsub.f32 %v1458_v27, %v6500_v58  ;;  %v1460_v50 = vpop.f32.mrb[83].mxu1  ;;  %v7043_v54 = vpop.f32.mrb[17].mxu0 }
 0x183   :  { %v2277_v56 = vmul.f32 1.442695, %v2070_v63  ;;  %v1944_v2 = vmul.f32 %v1816_v45, %v1816_v45  ;;  %v1690_v29 = vsub.f32 %v1460_v50, %v6505_v38  ;;  %v7045_v5 = vpop.eup %5394  ;;  %v7047_v28 = vpop.f32.mrb[18].mxu0 }
 0x184   :  { %5406 = vpow2.f32 %v2275_v35  ;;  %v2071_v11 = vsub.f32 0.0, %v1943_v1  ;;  %v1817_v12 = vmul.f32 0.8, %v1689_v42  ;;  %v7049_v60 = vpop.eup %5396  ;;  %v7051_v8 = vpop.f32.mrb[19].mxu0 }
 0x185   :  { %5408 = vpow2.f32 %v2277_v56  ;;  %v2072_v34 = vsub.f32 0.0, %v1944_v2  ;;  %v1818_v51 = vmul.f32 0.8, %v1690_v29  ;;  %v1464_v43 = vpop.f32.mrb[84].mxu1 }
 0x186   :  { %v7053_v52 = vpop.eup %5398  ;;  %v2279_v26 = vmul.f32 1.442695, %v2071_v11  ;;  %v1945_v17 = vmul.f32 %v1817_v12, %v1817_v12  ;;  %v1691_v46 = vsub.f32 %v1464_v43, %v6500_v58  ;;  %v1466_v33 = vpop.f32.mrb[85].mxu1  ;;  %2761 = vmatmul.mubr.bf16.gmra.mrb[124].mxu0 %v2405_v62 }
 0x187   :  { %v7056_v3 = vpop.eup %5400  ;;  %v2281_v53 = vmul.f32 1.442695, %v2072_v34  ;;  %v1946_v41 = vmul.f32 %v1818_v51, %v1818_v51  ;;  %v1692_v0 = vsub.f32 %v1466_v33, %v6505_v38  ;;  %v2411_v63 = vpack.c.bf16 %v7053_v52, %v7045_v5  ;;  %4699 = vmatprep.mubr.msk.bf16.mxu0 %vm2511_vm14, %v2408_v36 }
 0x188   :  { %v2073_v45 = vsub.f32 0.0, %v1945_v17  ;;  %v1819_v27 = vmul.f32 0.8, %v1691_v46  ;;  %v2412_v35 = vpack.c.bf16 %v7056_v3, %v7049_v60  ;;  %5410 = vpow2.f32 %v2279_v26 }
 0x189   :  { %v2074_v1 = vsub.f32 0.0, %v1946_v41  ;;  %v1820_v42 = vmul.f32 0.8, %v1692_v0  ;;  %v1470_v50 = vpop.f32.mrb[86].mxu1  ;;  %v7071_v2 = vpop.f32.mrb[20].mxu0  ;;  %5412 = vpow2.f32 %v2281_v53 }
 0x18a   :  { %v2283_v32 = vmul.f32 1.442695, %v2073_v45  ;;  %v1947_v61 = vmul.f32 %v1819_v27, %v1819_v27  ;;  %v1693_v62 = vsub.f32 %v1470_v50, %v6500_v58  ;;  %v1472_v56 = vpop.f32.mrb[87].mxu1  ;;  %v7074_v24 = vpop.f32.mrb[21].mxu0 }
 0x18b   :  { %v2285_v29 = vmul.f32 1.442695, %v2074_v1  ;;  %v1948_v11 = vmul.f32 %v1820_v42, %v1820_v42  ;;  %v1694_v37 = vsub.f32 %v1472_v56, %v6505_v38  ;;  %v7076_v36 = vpop.eup %5402  ;;  %v7078_v51 = vpop.f32.mrb[22].mxu0 }
 0x18c   :  { %5414 = vpow2.f32 %v2283_v32  ;;  %v2075_v12 = vsub.f32 0.0, %v1947_v61  ;;  %v1821_v34 = vmul.f32 0.8, %v1693_v62  ;;  %v7080_v43 = vpop.eup %5404  ;;  %v7082_v33 = vpop.f32.mrb[23].mxu0 }
 0x18d   :  { %5416 = vpow2.f32 %v2285_v29  ;;  %v2076_v26 = vsub.f32 0.0, %v1948_v11  ;;  %v1822_v17 = vmul.f32 0.8, %v1694_v37  ;;  %v1476_v46 = vpop.f32.mrb[88].mxu1 }
 0x18e   :  { %v7084_v53 = vpop.eup %5406  ;;  %v2287_v41 = vmul.f32 1.442695, %v2075_v12  ;;  %v1949_v0 = vmul.f32 %v1821_v34, %v1821_v34  ;;  %v1695_v45 = vsub.f32 %v1476_v46, %v6500_v58  ;;  %v1478_v27 = vpop.f32.mrb[89].mxu1  ;;  %2769 = vmatmul.mubr.bf16.gmra.mrb[128].mxu0 %v2407_v59 }
 0x18f   :  { %v7087_v1 = vpop.eup %5408  ;;  %v2289_v42 = vmul.f32 1.442695, %v2076_v26  ;;  %v1950_v50 = vmul.f32 %v1822_v17, %v1822_v17  ;;  %v1696_v32 = vsub.f32 %v1478_v27, %v6505_v38  ;;  %4700 = vmatprep.mubr.msk.bf16.mxu0 %vm2511_vm14, %v2410_v18 }
 0x190   :  { %v2077_v62 = vsub.f32 0.0, %v1949_v0  ;;  %v1823_v56 = vmul.f32 0.8, %v1695_v45  ;;  %5418 = vpow2.f32 %v2287_v41 }
 0x191   :  { %v2078_v11 = vsub.f32 0.0, %v1950_v50  ;;  %v1824_v37 = vmul.f32 0.8, %v1696_v32  ;;  %v1482_v12 = vpop.f32.mrb[90].mxu1  ;;  %v7102_v26 = vpop.f32.mrb[24].mxu0  ;;  %5420 = vpow2.f32 %v2289_v42 }
 0x192   :  { %v2291_v19 = vmul.f32 1.442695, %v2077_v62  ;;  %v1951_v39 = vmul.f32 %v1823_v56, %v1823_v56  ;;  %v1697_v59 = vsub.f32 %v1482_v12, %v6500_v58  ;;  %v1484_v34 = vpop.f32.mrb[91].mxu1  ;;  %v7105_v44 = vpop.f32.mrb[25].mxu0 }
 0x193   :  { %v2293_v17 = vmul.f32 1.442695, %v2078_v11  ;;  %v1952_v46 = vmul.f32 %v1824_v37, %v1824_v37  ;;  %v1698_v25 = vsub.f32 %v1484_v34, %v6505_v38  ;;  %v7107_v18 = vpop.eup %5410  ;;  %v7109_v41 = vpop.f32.mrb[26].mxu0 }
 0x194   :  { %5422 = vpow2.f32 %v2291_v19  ;;  %v2079_v0 = vsub.f32 0.0, %v1951_v39  ;;  %v1825_v45 = vmul.f32 0.8, %v1697_v59  ;;  %v7111_v27 = vpop.eup %5412  ;;  %v7113_v42 = vpop.f32.mrb[27].mxu0 }
 0x195   :  { %5424 = vpow2.f32 %v2293_v17  ;;  %v2080_v50 = vsub.f32 0.0, %v1952_v46  ;;  %v1826_v32 = vmul.f32 0.8, %v1698_v25  ;;  %v1488_v62 = vpop.f32.mrb[92].mxu1 }
 0x196   :  { %v7115_v56 = vpop.eup %5414  ;;  %v2295_v11 = vmul.f32 1.442695, %v2079_v0  ;;  %v1953_v37 = vmul.f32 %v1825_v45, %v1825_v45  ;;  %v1699_v12 = vsub.f32 %v1488_v62, %v6500_v58  ;;  %v1490_v34 = vpop.f32.mrb[93].mxu1  ;;  %2777 = vmatmul.mubr.bf16.gmra.mrb[132].mxu0 %v2409_v14 }
 0x197   :  { %v7118_v19 = vpop.eup %5416  ;;  %v2297_v39 = vmul.f32 1.442695, %v2080_v50  ;;  %v1954_v59 = vmul.f32 %v1826_v32, %v1826_v32  ;;  %v1700_v17 = vsub.f32 %v1490_v34, %v6505_v38  ;;  %4701 = vmatprep.mubr.msk.bf16.mxu0 %vm2511_vm14, %v2412_v35 }
 0x198   :  { %v2081_v25 = vsub.f32 0.0, %v1953_v37  ;;  %v1827_v61 = vmul.f32 0.8, %v1699_v12  ;;  %5426 = vpow2.f32 %v2295_v11 }
 0x199   :  { %v2082_v45 = vsub.f32 0.0, %v1954_v59  ;;  %v1828_v50 = vmul.f32 0.8, %v1700_v17  ;;  %v1494_v32 = vpop.f32.mrb[94].mxu1  ;;  %v7133_v34 = vpop.f32.mrb[28].mxu0  ;;  %5428 = vpow2.f32 %v2297_v39 }
 0x19a   :  { %v2299_v6 = vmul.f32 1.442695, %v2081_v25  ;;  %v1955_v40 = vmul.f32 %v1827_v61, %v1827_v61  ;;  %v1701_v14 = vsub.f32 %v1494_v32, %v6500_v58  ;;  %v1496_v62 = vpop.f32.mrb[95].mxu1  ;;  %v7136_v3 = vpop.f32.mrb[29].mxu0 }
 0x19b   :  { %v2301_v37 = vmul.f32 1.442695, %v2082_v45  ;;  %v1956_v12 = vmul.f32 %v1828_v50, %v1828_v50  ;;  %v1702_v60 = vsub.f32 %v1496_v62, %v6505_v38  ;;  %v7138_v35 = vpop.eup %5418  ;;  %v7140_v11 = vpop.f32.mrb[30].mxu0 }
 0x19c   :  { %5430 = vpow2.f32 %v2299_v6  ;;  %v2083_v59 = vsub.f32 0.0, %v1955_v40  ;;  %v1829_v17 = vmul.f32 0.8, %v1701_v14  ;;  %8957 = vst [vmem:[#allocation5_spill] sm:$0xff] %v7140_v11  ;;  %v7142_v61 = vpop.eup %5420  ;;  %v7144_v39 = vpop.f32.mrb[31].mxu0 }
 0x19d   :  { %5432 = vpow2.f32 %v2301_v37  ;;  %v2084_v25 = vsub.f32 0.0, %v1956_v12  ;;  %v1830_v32 = vmul.f32 0.8, %v1702_v60  ;;  %v1500_v46 = vpop.f32.mrb[96].mxu1 }
 0x19e   :  { %v7146_v45 = vpop.eup %5422  ;;  %v2303_v50 = vmul.f32 1.442695, %v2083_v59  ;;  %v1957_v62 = vmul.f32 %v1829_v17, %v1829_v17  ;;  %v1703_v0 = vsub.f32 %v1500_v46, %v6500_v58  ;;  %v1502_v29 = vpop.f32.mrb[97].mxu1  ;;  %2785 = vmatmul.mubr.bf16.gmra.mrb[136].mxu0 %v2411_v63  ;;  %v8958_v59 = vpack.c.bf16 %v7087_v1, %v7080_v43 }
 0x19f   :  { %v7149_v6 = vpop.eup %5424  ;;  %v2305_v40 = vmul.f32 1.442695, %v2084_v25  ;;  %v1958_v14 = vmul.f32 %v1830_v32, %v1830_v32  ;;  %v1704_v37 = vsub.f32 %v1502_v29, %v6505_v38 }
 0x1a0   :  { %v2085_v60 = vsub.f32 0.0, %v1957_v62  ;;  %v1831_v11 = vmul.f32 0.8, %v1703_v0  ;;  %4702 = vmatprep.mubr.msk.bf16.mxu0 %vm2511_vm14, %v8958_v59  ;;  %5434 = vpow2.f32 %v2303_v50 }
 0x1a1   :  { %v2086_v17 = vsub.f32 0.0, %v1958_v14  ;;  %v1832_v25 = vmul.f32 0.8, %v1704_v37  ;;  %v1506_v32 = vpop.f32.mrb[98].mxu1  ;;  %v7164_v12 = vpop.f32.mrb[32].mxu0  ;;  %5436 = vpow2.f32 %v2305_v40 }
 0x1a2   :  { %v2307_v5 = vmul.f32 1.442695, %v2085_v60  ;;  %v1959_v52 = vmul.f32 %v1831_v11, %v1831_v11  ;;  %v1705_v63 = vsub.f32 %v1506_v32, %v6500_v58  ;;  %v1508_v29 = vpop.f32.mrb[99].mxu1  ;;  %8959 = vst [vmem:[#allocation6_spill] sm:$0xff] %v7164_v12  ;;  %v7167_v1 = vpop.f32.mrb[33].mxu0 }
 0x1a3   :  { %v2309_v0 = vmul.f32 1.442695, %v2086_v17  ;;  %v1960_v62 = vmul.f32 %v1832_v25, %v1832_v25  ;;  %v1706_v43 = vsub.f32 %v1508_v29, %v6505_v38  ;;  %8960 = vst [vmem:[#allocation7_spill] sm:$0xff] %v7167_v1  ;;  %v7169_v59 = vpop.eup %5426  ;;  %v7171_v50 = vpop.f32.mrb[34].mxu0 }
 0x1a4   :  { %5438 = vpow2.f32 %v2307_v5  ;;  %v2087_v14 = vsub.f32 0.0, %v1959_v52  ;;  %v1833_v37 = vmul.f32 0.8, %v1705_v63  ;;  %8961 = vst [vmem:[#allocation8_spill] sm:$0xff] %v7171_v50  ;;  %v7173_v11 = vpop.eup %5428  ;;  %v7175_v40 = vpop.f32.mrb[35].mxu0  ;;  %v8963_v50 = vpack.c.bf16 %v7084_v53, %v7076_v36 }
 0x1a5   :  { %5440 = vpow2.f32 %v2309_v0  ;;  %v2088_v60 = vsub.f32 0.0, %v1960_v62  ;;  %v1834_v32 = vmul.f32 0.8, %v1706_v43  ;;  %v1512_v46 = vpop.f32.mrb[100].mxu1  ;;  %8962 = vst [vmem:[#allocation9_spill] sm:$0xff] %v7175_v40 }
 0x1a6   :  { %v7177_v17 = vpop.eup %5430  ;;  %v2311_v25 = vmul.f32 1.442695, %v2087_v14  ;;  %v1961_v29 = vmul.f32 %v1833_v37, %v1833_v37  ;;  %v1707_v12 = vsub.f32 %v1512_v46, %v6500_v58  ;;  %v1514_v1 = vpop.f32.mrb[101].mxu1  ;;  %2793 = vmatmul.mubr.bf16.gmra.mrb[140].mxu0 %v8963_v50  ;;  %v8964_v14 = vpack.c.bf16 %v7118_v19, %v7111_v27 }
 0x1a7   :  { %v7180_v5 = vpop.eup %5432  ;;  %v2313_v52 = vmul.f32 1.442695, %v2088_v60  ;;  %v1962_v63 = vmul.f32 %v1834_v32, %v1834_v32  ;;  %v1708_v0 = vsub.f32 %v1514_v1, %v6505_v38 }
 0x1a8   :  { %v2089_v43 = vsub.f32 0.0, %v1961_v29  ;;  %v1835_v40 = vmul.f32 0.8, %v1707_v12  ;;  %4703 = vmatprep.mubr.msk.bf16.mxu0 %vm2511_vm14, %v8964_v14  ;;  %5442 = vpow2.f32 %v2311_v25 }
 0x1a9   :  { %v2090_v37 = vsub.f32 0.0, %v1962_v63  ;;  %v1836_v60 = vmul.f32 0.8, %v1708_v0  ;;  %v1518_v32 = vpop.f32.mrb[102].mxu1  ;;  %v7195_v62 = vpop.f32.mrb[36].mxu0  ;;  %5444 = vpow2.f32 %v2313_v52 }
 0x1aa   :  { %v2315_v36 = vmul.f32 1.442695, %v2089_v43  ;;  %v1963_v53 = vmul.f32 %v1835_v40, %v1835_v40  ;;  %v1709_v1 = vsub.f32 %v1518_v32, %v6500_v58  ;;  %v1520_v50 = vpop.f32.mrb[103].mxu1  ;;  %8965 = vst [vmem:[#allocation10_spill] sm:$0xff] %v7195_v62  ;;  %v7198_v19 = vpop.f32.mrb[37].mxu0 }
 0x1ab   :  { %v2317_v12 = vmul.f32 1.442695, %v2090_v37  ;;  %v1964_v29 = vmul.f32 %v1836_v60, %v1836_v60  ;;  %v1710_v27 = vsub.f32 %v1520_v50, %v6505_v38  ;;  %8966 = vst [vmem:[#allocation11_spill] sm:$0xff] %v7198_v19  ;;  %v7200_v14 = vpop.eup %5434  ;;  %v7202_v25 = vpop.f32.mrb[38].mxu0 }
 0x1ac   :  { %5446 = vpow2.f32 %v2315_v36  ;;  %v2091_v63 = vsub.f32 0.0, %v1963_v53  ;;  %v1837_v0 = vmul.f32 0.8, %v1709_v1  ;;  %8967 = vst [vmem:[#allocation12_spill] sm:$0xff] %v7202_v25  ;;  %v7204_v40 = vpop.eup %5436  ;;  %v7206_v52 = vpop.f32.mrb[39].mxu0  ;;  %v8969_v25 = vpack.c.bf16 %v7115_v56, %v7107_v18 }
 0x1ad   :  { %5448 = vpow2.f32 %v2317_v12  ;;  %v2092_v43 = vsub.f32 0.0, %v1964_v29  ;;  %v1838_v32 = vmul.f32 0.8, %v1710_v27  ;;  %v1524_v46 = vpop.f32.mrb[104].mxu1  ;;  %8968 = vst [vmem:[#allocation13_spill] sm:$0xff] %v7206_v52 }
 0x1ae   :  { %v7208_v37 = vpop.eup %5438  ;;  %v2319_v60 = vmul.f32 1.442695, %v2091_v63  ;;  %v1965_v50 = vmul.f32 %v1837_v0, %v1837_v0  ;;  %v1711_v62 = vsub.f32 %v1524_v46, %v6500_v58  ;;  %v1526_v19 = vpop.f32.mrb[105].mxu1  ;;  %2801 = vmatmul.mubr.bf16.gmra.mrb[144].mxu0 %v8969_v25  ;;  %v8970_v63 = vpack.c.bf16 %v7149_v6, %v7142_v61 }
 0x1af   :  { %v7211_v36 = vpop.eup %5440  ;;  %v2321_v53 = vmul.f32 1.442695, %v2092_v43  ;;  %v1966_v1 = vmul.f32 %v1838_v32, %v1838_v32  ;;  %v1712_v12 = vsub.f32 %v1526_v19, %v6505_v38 }
 0x1b0   :  { %v2093_v27 = vsub.f32 0.0, %v1965_v50  ;;  %v1839_v52 = vmul.f32 0.8, %v1711_v62  ;;  %4704 = vmatprep.mubr.msk.bf16.mxu0 %vm2511_vm14, %v8970_v63  ;;  %5450 = vpow2.f32 %v2319_v60 }
 0x1b1   :  { %v2094_v0 = vsub.f32 0.0, %v1966_v1  ;;  %v1840_v43 = vmul.f32 0.8, %v1712_v12  ;;  %v1530_v32 = vpop.f32.mrb[106].mxu1  ;;  %v7226_v29 = vpop.f32.mrb[40].mxu0  ;;  %5452 = vpow2.f32 %v2321_v53 }
 0x1b2   :  { %v2323_v18 = vmul.f32 1.442695, %v2093_v27  ;;  %v1967_v56 = vmul.f32 %v1839_v52, %v1839_v52  ;;  %v1713_v19 = vsub.f32 %v1530_v32, %v6500_v58  ;;  %v1532_v25 = vpop.f32.mrb[107].mxu1  ;;  %8971 = vst [vmem:[#allocation14_spill] sm:$0xff] %v7226_v29  ;;  %v7229_v6 = vpop.f32.mrb[41].mxu0 }
 0x1b3   :  { %v2325_v62 = vmul.f32 1.442695, %v2094_v0  ;;  %v1968_v50 = vmul.f32 %v1840_v43, %v1840_v43  ;;  %v1714_v61 = vsub.f32 %v1532_v25, %v6505_v38  ;;  %8972 = vst [vmem:[#allocation15_spill] sm:$0xff] %v7229_v6  ;;  %v7231_v63 = vpop.eup %5442  ;;  %v7233_v60 = vpop.f32.mrb[42].mxu0 }
 0x1b4   :  { %5454 = vpow2.f32 %v2323_v18  ;;  %v2095_v1 = vsub.f32 0.0, %v1967_v56  ;;  %v1841_v12 = vmul.f32 0.8, %v1713_v19  ;;  %8973 = vst [vmem:[#allocation16_spill] sm:$0xff] %v7233_v60  ;;  %v7235_v52 = vpop.eup %5444  ;;  %v7237_v53 = vpop.f32.mrb[43].mxu0  ;;  %v8975_v60 = vpack.c.bf16 %v7146_v45, %v7138_v35 }
 0x1b5   :  { %5456 = vpow2.f32 %v2325_v62  ;;  %v2096_v27 = vsub.f32 0.0, %v1968_v50  ;;  %v1842_v32 = vmul.f32 0.8, %v1714_v61  ;;  %v1536_v46 = vpop.f32.mrb[108].mxu1  ;;  %8974 = vst [vmem:[#allocation17_spill] sm:$0xff] %v7237_v53 }
 0x1b6   :  { %v7239_v0 = vpop.eup %5446  ;;  %v2327_v43 = vmul.f32 1.442695, %v2095_v1  ;;  %v1969_v25 = vmul.f32 %v1841_v12, %v1841_v12  ;;  %v1715_v29 = vsub.f32 %v1536_v46, %v6500_v58  ;;  %v1538_v6 = vpop.f32.mrb[109].mxu1  ;;  %2809 = vmatmul.mubr.bf16.gmra.mrb[148].mxu0 %v8975_v60  ;;  %v8976_v1 = vpack.c.bf16 %v7180_v5, %v7173_v11 }
 0x1b7   :  { %v7242_v18 = vpop.eup %5448  ;;  %v2329_v56 = vmul.f32 1.442695, %v2096_v27  ;;  %v1970_v19 = vmul.f32 %v1842_v32, %v1842_v32  ;;  %v1716_v62 = vsub.f32 %v1538_v6, %v6505_v38 }
 0x1b8   :  { %v2097_v61 = vsub.f32 0.0, %v1969_v25  ;;  %v1843_v53 = vmul.f32 0.8, %v1715_v29  ;;  %4705 = vmatprep.mubr.msk.bf16.mxu0 %vm2511_vm14, %v8976_v1  ;;  %5458 = vpow2.f32 %v2327_v43 }
 0x1b9   :  { %v2098_v12 = vsub.f32 0.0, %v1970_v19  ;;  %v1844_v27 = vmul.f32 0.8, %v1716_v62  ;;  %v1542_v32 = vpop.f32.mrb[110].mxu1  ;;  %v7257_v50 = vpop.f32.mrb[44].mxu0  ;;  %5460 = vpow2.f32 %v2329_v56 }
 0x1ba   :  { %v2331_v35 = vmul.f32 1.442695, %v2097_v61  ;;  %v1971_v45 = vmul.f32 %v1843_v53, %v1843_v53  ;;  %v1717_v6 = vsub.f32 %v1542_v32, %v6500_v58  ;;  %v1544_v60 = vpop.f32.mrb[111].mxu1  ;;  %8977 = vst [vmem:[#allocation18_spill] sm:$0xff] %v7257_v50  ;;  %v7260_v5 = vpop.f32.mrb[45].mxu0 }
 0x1bb   :  { %v2333_v29 = vmul.f32 1.442695, %v2098_v12  ;;  %v1972_v25 = vmul.f32 %v1844_v27, %v1844_v27  ;;  %v1718_v11 = vsub.f32 %v1544_v60, %v6505_v38  ;;  %8978 = vst [vmem:[#allocation19_spill] sm:$0xff] %v7260_v5  ;;  %v7262_v1 = vpop.eup %5450  ;;  %v7264_v43 = vpop.f32.mrb[46].mxu0 }
 0x1bc   :  { %5462 = vpow2.f32 %v2331_v35  ;;  %v2099_v19 = vsub.f32 0.0, %v1971_v45  ;;  %v1845_v62 = vmul.f32 0.8, %v1717_v6  ;;  %8979 = vst [vmem:[#allocation20_spill] sm:$0xff] %v7264_v43  ;;  %v7266_v53 = vpop.eup %5452  ;;  %v7268_v56 = vpop.f32.mrb[47].mxu0  ;;  %v8981_v43 = vpack.c.bf16 %v7177_v17, %v7169_v59 }
 0x1bd   :  { %5464 = vpow2.f32 %v2333_v29  ;;  %v2100_v61 = vsub.f32 0.0, %v1972_v25  ;;  %v1846_v32 = vmul.f32 0.8, %v1718_v11  ;;  %v1548_v46 = vpop.f32.mrb[112].mxu1  ;;  %8980 = vst [vmem:[#allocation21_spill] sm:$0xff] %v7268_v56 }
 0x1be   :  { %v7270_v12 = vpop.eup %5454  ;;  %v2335_v27 = vmul.f32 1.442695, %v2099_v19  ;;  %v1973_v60 = vmul.f32 %v1845_v62, %v1845_v62  ;;  %v1719_v50 = vsub.f32 %v1548_v46, %v6500_v58  ;;  %v1550_v5 = vpop.f32.mrb[113].mxu1  ;;  %2817 = vmatmul.mubr.bf16.gmra.mrb[152].mxu0 %v8981_v43  ;;  %v8982_v19 = vpack.c.bf16 %v7211_v36, %v7204_v40 }
 0x1bf   :  { %v7273_v35 = vpop.eup %5456  ;;  %v2337_v45 = vmul.f32 1.442695, %v2100_v61  ;;  %v1974_v6 = vmul.f32 %v1846_v32, %v1846_v32  ;;  %v1720_v29 = vsub.f32 %v1550_v5, %v6505_v38 }
 0x1c0   :  { %v2101_v11 = vsub.f32 0.0, %v1973_v60  ;;  %v1847_v56 = vmul.f32 0.8, %v1719_v50  ;;  %4706 = vmatprep.mubr.msk.bf16.mxu0 %vm2511_vm14, %v8982_v19  ;;  %5466 = vpow2.f32 %v2335_v27 }
 0x1c1   :  { %v2102_v62 = vsub.f32 0.0, %v1974_v6  ;;  %v1848_v61 = vmul.f32 0.8, %v1720_v29  ;;  %v1554_v32 = vpop.f32.mrb[114].mxu1  ;;  %v7288_v25 = vpop.f32.mrb[48].mxu0  ;;  %5468 = vpow2.f32 %v2337_v45 }
 0x1c2   :  { %v2339_v59 = vmul.f32 1.442695, %v2101_v11  ;;  %v1975_v17 = vmul.f32 %v1847_v56, %v1847_v56  ;;  %v1721_v5 = vsub.f32 %v1554_v32, %v6500_v58  ;;  %v1556_v43 = vpop.f32.mrb[115].mxu1  ;;  %8983 = vst [vmem:[#allocation22_spill] sm:$0xff] %v7288_v25  ;;  %v7291_v36 = vpop.f32.mrb[49].mxu0 }
 0x1c3   :  { %v2341_v50 = vmul.f32 1.442695, %v2102_v62  ;;  %v1976_v60 = vmul.f32 %v1848_v61, %v1848_v61  ;;  %v1722_v40 = vsub.f32 %v1556_v43, %v6505_v38  ;;  %8984 = vst [vmem:[#allocation23_spill] sm:$0xff] %v7291_v36  ;;  %v7293_v19 = vpop.eup %5458  ;;  %v7295_v27 = vpop.f32.mrb[50].mxu0 }
 0x1c4   :  { %5470 = vpow2.f32 %v2339_v59  ;;  %v2103_v6 = vsub.f32 0.0, %v1975_v17  ;;  %v1849_v29 = vmul.f32 0.8, %v1721_v5  ;;  %8985 = vst [vmem:[#allocation24_spill] sm:$0xff] %v7295_v27  ;;  %v7297_v56 = vpop.eup %5460  ;;  %v7299_v45 = vpop.f32.mrb[51].mxu0  ;;  %v8987_v27 = vpack.c.bf16 %v7208_v37, %v7200_v14 }
 0x1c5   :  { %5472 = vpow2.f32 %v2341_v50  ;;  %v2104_v11 = vsub.f32 0.0, %v1976_v60  ;;  %v1850_v32 = vmul.f32 0.8, %v1722_v40  ;;  %v1560_v46 = vpop.f32.mrb[116].mxu1  ;;  %8986 = vst [vmem:[#allocation25_spill] sm:$0xff] %v7299_v45 }
 0x1c6   :  { %v7301_v62 = vpop.eup %5462  ;;  %v2343_v61 = vmul.f32 1.442695, %v2103_v6  ;;  %v1977_v43 = vmul.f32 %v1849_v29, %v1849_v29  ;;  %v1723_v25 = vsub.f32 %v1560_v46, %v6500_v58  ;;  %v1562_v36 = vpop.f32.mrb[117].mxu1  ;;  %2825 = vmatmul.mubr.bf16.gmra.mrb[156].mxu0 %v8987_v27  ;;  %v8988_v6 = vpack.c.bf16 %v7242_v18, %v7235_v52 }
 0x1c7   :  { %v7304_v59 = vpop.eup %5464  ;;  %v2345_v17 = vmul.f32 1.442695, %v2104_v11  ;;  %v1978_v5 = vmul.f32 %v1850_v32, %v1850_v32  ;;  %v1724_v50 = vsub.f32 %v1562_v36, %v6505_v38 }
 0x1c8   :  { %v2105_v40 = vsub.f32 0.0, %v1977_v43  ;;  %v1851_v45 = vmul.f32 0.8, %v1723_v25  ;;  %4707 = vmatprep.mubr.msk.bf16.mxu0 %vm2511_vm14, %v8988_v6  ;;  %5474 = vpow2.f32 %v2343_v61 }
 0x1c9   :  { %v2106_v29 = vsub.f32 0.0, %v1978_v5  ;;  %v1852_v11 = vmul.f32 0.8, %v1724_v50  ;;  %v1566_v32 = vpop.f32.mrb[118].mxu1  ;;  %v7319_v60 = vpop.f32.mrb[52].mxu0  ;;  %5476 = vpow2.f32 %v2345_v17 }
 0x1ca   :  { %v2347_v14 = vmul.f32 1.442695, %v2105_v40  ;;  %v1979_v37 = vmul.f32 %v1851_v45, %v1851_v45  ;;  %v1725_v36 = vsub.f32 %v1566_v32, %v6500_v58  ;;  %v1568_v27 = vpop.f32.mrb[119].mxu1  ;;  %8989 = vst [vmem:[#allocation26_spill] sm:$0xff] %v7319_v60  ;;  %v7322_v18 = vpop.f32.mrb[53].mxu0 }
 0x1cb   :  { %v2349_v25 = vmul.f32 1.442695, %v2106_v29  ;;  %v1980_v43 = vmul.f32 %v1852_v11, %v1852_v11  ;;  %v1726_v52 = vsub.f32 %v1568_v27, %v6505_v38  ;;  %8990 = vst [vmem:[#allocation27_spill] sm:$0xff] %v7322_v18  ;;  %v7324_v6 = vpop.eup %5466  ;;  %v7326_v61 = vpop.f32.mrb[54].mxu0 }
 0x1cc   :  { %5478 = vpow2.f32 %v2347_v14  ;;  %v2107_v5 = vsub.f32 0.0, %v1979_v37  ;;  %v1853_v50 = vmul.f32 0.8, %v1725_v36  ;;  %8991 = vst [vmem:[#allocation28_spill] sm:$0xff] %v7326_v61  ;;  %v7328_v45 = vpop.eup %5468  ;;  %v7330_v17 = vpop.f32.mrb[55].mxu0  ;;  %v8993_v61 = vpack.c.bf16 %v7239_v0, %v7231_v63 }
 0x1cd   :  { %5480 = vpow2.f32 %v2349_v25  ;;  %v2108_v40 = vsub.f32 0.0, %v1980_v43  ;;  %v1854_v32 = vmul.f32 0.8, %v1726_v52  ;;  %v1572_v46 = vpop.f32.mrb[120].mxu1  ;;  %8992 = vst [vmem:[#allocation29_spill] sm:$0xff] %v7330_v17 }
 0x1ce   :  { %v7332_v29 = vpop.eup %5470  ;;  %v2351_v11 = vmul.f32 1.442695, %v2107_v5  ;;  %v1981_v27 = vmul.f32 %v1853_v50, %v1853_v50  ;;  %v1727_v60 = vsub.f32 %v1572_v46, %v6500_v58  ;;  %v1574_v18 = vpop.f32.mrb[121].mxu1  ;;  %2833 = vmatmul.mubr.bf16.gmra.mrb[160].mxu0 %v8993_v61  ;;  %v8994_v5 = vpack.c.bf16 %v7273_v35, %v7266_v53 }
 0x1cf   :  { %v7335_v14 = vpop.eup %5472  ;;  %v2353_v37 = vmul.f32 1.442695, %v2108_v40  ;;  %v1982_v36 = vmul.f32 %v1854_v32, %v1854_v32  ;;  %v1728_v25 = vsub.f32 %v1574_v18, %v6505_v38 }
 0x1d0   :  { %v2109_v52 = vsub.f32 0.0, %v1981_v27  ;;  %v1855_v17 = vmul.f32 0.8, %v1727_v60  ;;  %4708 = vmatprep.mubr.msk.bf16.mxu0 %vm2511_vm14, %v8994_v5  ;;  %5482 = vpow2.f32 %v2351_v11 }
 0x1d1   :  { %v2110_v50 = vsub.f32 0.0, %v1982_v36  ;;  %v1856_v40 = vmul.f32 0.8, %v1728_v25  ;;  %v1578_v32 = vpop.f32.mrb[122].mxu1  ;;  %v7349_v18 = vpop.f32.mrb[56].mxu0  ;;  %5484 = vpow2.f32 %v2353_v37 }
 0x1d2   :  { %v2355_v63 = vmul.f32 1.442695, %v2109_v52  ;;  %v1983_v0 = vmul.f32 %v1855_v17, %v1855_v17  ;;  %8995 = vst [vmem:[#allocation30_spill] sm:$0xff] %v7349_v18  ;;  %v1729_v61 = vsub.f32 %v1578_v32, %v6500_v58  ;;  %v1580_v27 = vpop.f32.mrb[123].mxu1  ;;  %v7352_v53 = vpop.f32.mrb[57].mxu0 }
 0x1d3   :  { %v2357_v60 = vmul.f32 1.442695, %v2110_v50  ;;  %v1984_v43 = vmul.f32 %v1856_v40, %v1856_v40  ;;  %8996 = vst [vmem:[#allocation31_spill] sm:$0xff] %v7352_v53  ;;  %v1730_v35 = vsub.f32 %v1580_v27, %v6505_v38  ;;  %v7355_v5 = vpop.eup %5474  ;;  %v7357_v11 = vpop.f32.mrb[58].mxu0 }
 0x1d4   :  { %5486 = vpow2.f32 %v2355_v63  ;;  %v2111_v36 = vsub.f32 0.0, %v1983_v0  ;;  %v1857_v25 = vmul.f32 0.8, %v1729_v61  ;;  %8997 = vst [vmem:[#allocation32_spill] sm:$0xff] %v7357_v11  ;;  %v7359_v17 = vpop.eup %5476  ;;  %v7361_v46 = vpop.f32.mrb[59].mxu0  ;;  %v8999_v11 = vpack.c.bf16 %v7270_v12, %v7262_v1 }
 0x1d5   :  { %5488 = vpow2.f32 %v2357_v60  ;;  %v2112_v52 = vsub.f32 0.0, %v1984_v43  ;;  %v1858_v32 = vmul.f32 0.8, %v1730_v35  ;;  %8998 = vst [vmem:[#allocation33_spill] sm:$0xff] %v7361_v46  ;;  %v1584_v37 = vpop.f32.mrb[124].mxu1 }
 0x1d6   :  { %v7363_v50 = vpop.eup %5478  ;;  %v2359_v40 = vmul.f32 1.442695, %v2111_v36  ;;  %v1985_v18 = vmul.f32 %v1857_v25, %v1857_v25  ;;  %v1731_v27 = vsub.f32 %v1584_v37, %v6500_v58  ;;  %v1586_v53 = vpop.f32.mrb[125].mxu1  ;;  %2841 = vmatmul.mubr.bf16.gmra.mrb[164].mxu0 %v8999_v11  ;;  %v9000_v36 = vpack.c.bf16 %v7304_v59, %v7297_v56 }
 0x1d7   :  { %v7366_v63 = vpop.eup %5480  ;;  %v2361_v0 = vmul.f32 1.442695, %v2112_v52  ;;  %v1986_v61 = vmul.f32 %v1858_v32, %v1858_v32  ;;  %v1732_v43 = vsub.f32 %v1586_v53, %v6505_v38 }
 0x1d8   :  { %v2113_v35 = vsub.f32 0.0, %v1985_v18  ;;  %v1859_v46 = vmul.f32 0.8, %v1731_v27  ;;  %4709 = vmatprep.mubr.msk.bf16.mxu0 %vm2511_vm14, %v9000_v36  ;;  %v2432_v25 = vpack.c.bf16 %v7366_v63, %v7359_v17  ;;  %5490 = vpow2.f32 %v2359_v40 }
 0x1d9   :  { %v2114_v52 = vsub.f32 0.0, %v1986_v61  ;;  %v1860_v32 = vmul.f32 0.8, %v1732_v43  ;;  %v1590_v37 = vpop.f32.mrb[126].mxu1  ;;  %v7380_v53 = vpop.f32.mrb[60].mxu0  ;;  %5492 = vpow2.f32 %v2361_v0 }
 0x1da   :  { %v2363_v1 = vmul.f32 1.442695, %v2113_v35  ;;  %v1987_v12 = vmul.f32 %v1859_v46, %v1859_v46  ;;  %v1733_v11 = vsub.f32 %v1590_v37, %v6500_v58  ;;  %v1592_v18 = vpop.f32.mrb[127].mxu1  ;;  %v7383_v56 = vpop.f32.mrb[61].mxu0  ;;  %v7397_v35 = vld [vmem:[%s8910_s2] ss:$0 sm:$0xff] }
 0x1db   :  { %v2365_v27 = vmul.f32 1.442695, %v2114_v52  ;;  %v1988_v60 = vmul.f32 %v1860_v32, %v1860_v32  ;;  %v1734_v59 = vsub.f32 %v1592_v18, %v6505_v38  ;;  %v7386_v36 = vpop.eup %5482  ;;  %v7388_v40 = vpop.f32.mrb[62].mxu0  ;;  %v9002_v18 = vpack.c.bf16 %v7335_v14, %v7328_v45 }
 0x1dc   :  { %5494 = vpow2.f32 %v2363_v1  ;;  %v2115_v17 = vsub.f32 0.0, %v1987_v12  ;;  %v1861_v63 = vmul.f32 0.8, %v1733_v11  ;;  %v5485_v46 = vpop.eup %5484  ;;  %v7390_v58 = vpop.f32.mrb[63].mxu0  ;;  %v9001_v12 = vpack.c.bf16 %v7301_v62, %v7293_v19 }
 0x1dd   :  { %5496 = vpow2.f32 %v2365_v27  ;;  %v2116_v61 = vsub.f32 0.0, %v1988_v60  ;;  %v1862_v43 = vmul.f32 0.8, %v1734_v59  ;;  %v686_v59 = vadd.f32 %v7397_v35, %v6910_v31 }
 0x1de   :  { %v7392_v0 = vpop.eup %5486  ;;  %v2367_v38 = vmul.f32 1.442695, %v2115_v17  ;;  %v1989_v52 = vmul.f32 %v1861_v63, %v1861_v63  ;;  %2849 = vmatmul.mubr.bf16.gmra.mrb[168].mxu0 %v9001_v12  ;;  %v689_v19 = vadd.f32 %v7397_v35, %v6918_v20 }
 0x1df   :  { %v5489_v32 = vpop.eup %5488  ;;  %v2369_v37 = vmul.f32 1.442695, %v2116_v61  ;;  %v1990_v1 = vmul.f32 %v1862_v43, %v1862_v43  ;;  %v2433_v60 = vpack.c.bf16 %v7392_v0, %v7386_v36  ;;  %4710 = vmatprep.mubr.msk.bf16.mxu0 %vm2511_vm14, %v9002_v18 }
 0x1e0   :  { %v2117_v11 = vsub.f32 0.0, %v1989_v52  ;;  %v2434_v27 = vpack.c.bf16 %v5489_v32, %v5485_v46  ;;  %5498 = vpow2.f32 %v2367_v38  ;;  %v9003_v32 = vpack.c.bf16 %v7332_v29, %v7324_v6 }
 0x1e1   :  { %v2118_v17 = vsub.f32 0.0, %v1990_v1  ;;  %v2642_v61 = vpop.f32.mrb[64].mxu0  ;;  %5500 = vpow2.f32 %v2369_v37  ;;  %v694_v1 = vadd.f32 %v6907_v10, %v7397_v35 }
 0x1e2   :  { %v2371_v63 = vmul.f32 1.442695, %v2117_v11  ;;  %v7412_v36 = vadd.f32 %v2642_v61, %v686_v59  ;;  %v2644_v43 = vpop.f32.mrb[65].mxu0  ;;  %v5491_v0 = vpop.eup %5490  ;;  %v697_v11 = vadd.f32 %v6914_v48, %v7397_v35  ;;  %v702_v48 = vadd.f32 %v7397_v35, %v6941_v16  ;;  %v5634_v16 = vld [vmem:[%s8908_s0] sm:$0xff] }
 0x1e3   :  { %v2373_v62 = vmul.f32 1.442695, %v2118_v17  ;;  %v2645_v45 = vpop.f32.mrb[66].mxu0  ;;  %v5493_v14 = vpop.eup %5492 }
 0x1e4   :  { %5502 = vpow2.f32 %v2371_v63  ;;  %v7414_v46 = vadd.f32 %v2645_v45, %v689_v19  ;;  %v2647_v31 = vpop.f32.mrb[67].mxu0  ;;  %v2963_v45 = vld [vmem:[%s8914_s6 + $0x10] sm:$0x1] }
 0x1e5   :  { %5504 = vpow2.f32 %v2373_v62 }
 0x1e6   :  { %v5495_v52 = vpop.eup %5494  ;;  %2857 = vmatmul.mubr.bf16.gmra.mrb[172].mxu0 %v9003_v32 }
 0x1e7   :  { %v5497_v38 = vpop.eup %5496  ;;  %v2435_v20 = vpack.c.bf16 %v5495_v52, %v5491_v0  ;;  %4711 = vmatprep.mubr.msk.bf16.mxu0 %vm2511_vm14, %v2432_v25  ;;  %v9004_v25 = vpack.c.bf16 %v7363_v50, %v7355_v5 }
 0x1e8   :  { %v2436_v37 = vpack.c.bf16 %v5497_v38, %v5493_v14  ;;  %v705_v14 = vadd.f32 %v7397_v35, %v6949_v7  ;;  %v710_v7 = vadd.f32 %v6938_v4, %v7397_v35  ;;  %v713_v38 = vadd.f32 %v6945_v23, %v7397_v35  ;;  %v5637_v23 = vld [vmem:[%s8908_s0 + $0x18] sm:$0xff] }
 0x1e9   :  { %v2650_v12 = vpop.f32.mrb[68].mxu0 }
 0x1ea   :  { %v7424_v18 = vadd.f32 %v2650_v12, %v694_v1  ;;  %v2652_v59 = vpop.f32.mrb[69].mxu0  ;;  %v5499_v17 = vpop.eup %5498  ;;  %v5635_v12 = vld [vmem:[%s8908_s0 + $0x8] sm:$0xff] }
 0x1eb   :  { %v2653_v63 = vpop.f32.mrb[70].mxu0  ;;  %v5501_v61 = vpop.eup %5500  ;;  %v5638_v59 = vld [vmem:[%s8908_s0 + $0x20] sm:$0xff] }
 0x1ec   :  { %v7426_v19 = vadd.f32 %v2653_v63, %v697_v11  ;;  %v2655_v6 = vpop.f32.mrb[71].mxu0 }
 0x1ee   :  { %v5503_v29 = vpop.eup %5502  ;;  %2865 = vmatmul.mubr.bf16.gmra.mrb[176].mxu0 %v9004_v25  ;;  %v5640_v25 = vld [vmem:[%s8908_s0 + $0x30] sm:$0xff] }
 0x1ef   :  { %v5505_v62 = vpop.eup %5504  ;;  %v2437_v10 = vpack.c.bf16 %v5503_v29, %v5499_v17  ;;  %4712 = vmatprep.mubr.msk.bf16.mxu0 %vm2511_vm14, %v2434_v27  ;;  %v718_v17 = vadd.f32 %v7397_v35, %v6972_v55  ;;  %v5639_v29 = vld [vmem:[%s8908_s0 + $0x28] sm:$0xff] }
 0x1f0   :  { %v2438_v43 = vpack.c.bf16 %v5505_v62, %v5501_v61  ;;  %v721_v61 = vadd.f32 %v7397_v35, %v6980_v21  ;;  %v5641_v21 = vld [vmem:[%s8908_s0 + $0x38] sm:$0xff] }
 0x1f1   :  { %v2658_v0 = vpop.f32.mrb[72].mxu0 }
 0x1f2   :  { %4714 = vmatprep.mubr.msk.bf16.mxu1 %vm2511_vm14, %v2438_v43  ;;  %v7440_v31 = vadd.f32 %v2658_v0, %v702_v48  ;;  %v2660_v5 = vpop.f32.mrb[73].mxu0  ;;  %v5642_v43 = vld [vmem:[%s8908_s0 + $0x40] sm:$0xff]  ;;  %v726_v48 = vadd.f32 %v6969_v9, %v7397_v35 }
 0x1f3   :  { %2889 = vmatmul.mubr.bf16.vlgmr.msra.gmra.mrb[128].mxu1 %v2437_v10  ;;  %v2661_v50 = vpop.f32.mrb[74].mxu0 }
 0x1f4   :  { %5078 = vmatpush3.bf16.msra.mxu1 %v7005_v30  ;;  %4975 = vmatprep.mubr.msk.f32.mxu1 %vm946_vm1, %v5634_v16  ;;  %v7447_v27 = vadd.f32 %v2661_v50, %v705_v14  ;;  %v2663_v52 = vpop.f32.mrb[75].mxu0  ;;  %v5643_v50 = vld [vmem:[%s8908_s0 + $0x48] sm:$0xff] }
 0x1f5   :  { %4973 = vmatprep.subr.msk.mxu1 %vm1139_vm0, %v2963_v45  ;;  %v5644_v52 = vld [vmem:[%s8908_s0 + $0x50] sm:$0xff] }
 0x1f6   :  { %2873 = vmatmul.mubr.bf16.gmra.mrb[180].mxu0 %v2433_v60 }
 0x1f7   :  { %4713 = vmatprep.mubr.msk.bf16.mxu0 %vm2511_vm14, %v2436_v37  ;;  %v5636_v37 = vld [vmem:[%s8908_s0 + $0x10] sm:$0xff] }
 0x1f8   :  { %4974 = vmatpush3.msk.msra.mxu1 %vm1139_vm0, %v2963_v45  ;;  %v729_v45 = vadd.f32 %v6976_v47, %v7397_v35  ;;  %v5645_v47 = vld [vmem:[%s8908_s0 + $0x58] sm:$0xff]  ;;  %vm3416_vm0 = vcmask 523264  }
 0x1f9   :  { %v2666_v30 = vpop.f32.mrb[76].mxu0 }
 0x1fa   :  { %v7456_v32 = vadd.f32 %v2666_v30, %v710_v7  ;;  %v2668_v1 = vpop.f32.mrb[77].mxu0  ;;  %v5646_v30 = vld [vmem:[%s8908_s0 + $0x60] sm:$0xff] }
 0x1fb   :  { %4976 = vmatmul.mubr.msk.f32.vlgmr.msra.gmra.mrb[132].mxu1 %vm946_vm1, %v5635_v12  ;;  %v2669_v60 = vpop.f32.mrb[78].mxu0  ;;  %v737_v12 = vadd.f32 %v7397_v35, %v7020_v22  ;;  %v5649_v22 = vld [vmem:[%s8908_s0 + $0x78] sm:$0xff] }
 0x1fc   :  { %4978 = vmatprep.mubr.msk.f32.mxu1 %vm946_vm1, %v5636_v37  ;;  %v7466_v4 = vadd.f32 %v2669_v60, %v713_v38  ;;  %v2671_v11 = vpop.f32.mrb[79].mxu0  ;;  %v734_v38 = vadd.f32 %v7397_v35, %v7011_v57 }
 0x1fd   :  { %v5647_v11 = vld [vmem:[%s8908_s0 + $0x68] sm:$0xff] }
 0x1fe   :  { %2881 = vmatmul.mubr.bf16.gmra.mrb[184].mxu0 %v2435_v20 }
 0x1ff   :  { %4979 = vmatmul.mubr.msk.f32.gmra.mrb[134].mxu1 %vm946_vm1, %v5637_v23 }
 0x200   :  { %4981 = vmatprep.mubr.msk.f32.mxu1 %vm946_vm1, %v5638_v59  ;;  %v5648_v59 = vld [vmem:[%s8908_s0 + $0x70] sm:$0xff] }
 0x201   :  { %v2674_v63 = vpop.f32.mrb[80].mxu0 }
 0x202   :  { %v7480_v20 = vadd.f32 %v2674_v63, %v718_v17  ;;  %v2676_v6 = vpop.f32.mrb[81].mxu0  ;;  %v5650_v63 = vld [vmem:[%s8908_s0 + $0x80] sm:$0xff] }
 0x203   :  { %4982 = vmatmul.mubr.msk.f32.gmra.mrb[136].mxu1 %vm946_vm1, %v5639_v29  ;;  %v2677_v62 = vpop.f32.mrb[82].mxu0  ;;  %v745_v29 = vadd.f32 %v7016_v13, %v7397_v35  ;;  %v5653_v13 = vld [vmem:[%s8908_s0 + $0x98] sm:$0xff] }
 0x204   :  { %4984 = vmatprep.mubr.msk.f32.mxu1 %vm946_vm1, %v5640_v25  ;;  %v7490_v55 = vadd.f32 %v2677_v62, %v721_v61  ;;  %v2679_v10 = vpop.f32.mrb[83].mxu0  ;;  %v742_v61 = vadd.f32 %v7008_v15, %v7397_v35 }
 0x205   :  { %v5651_v10 = vld [vmem:[%s8908_s0 + $0x88] sm:$0xff] }
 0x207   :  { %4985 = vmatmul.mubr.msk.f32.gmra.mrb[138].mxu1 %vm946_vm1, %v5641_v21 }
 0x208   :  { %4987 = vmatprep.mubr.msk.f32.mxu1 %vm946_vm1, %v5642_v43  ;;  %v5652_v43 = vld [vmem:[%s8908_s0 + $0x90] sm:$0xff] }
 0x209   :  { %v2682_v0 = vpop.f32.mrb[84].mxu0 }
 0x20a   :  { %v7504_v14 = vadd.f32 %v2682_v0, %v726_v48  ;;  %v2684_v5 = vpop.f32.mrb[85].mxu0  ;;  %v5654_v0 = vld [vmem:[%s8908_s0 + $0xa0] sm:$0xff] }
 0x20b   :  { %4988 = vmatmul.mubr.msk.f32.gmra.mrb[140].mxu1 %vm946_vm1, %v5643_v50  ;;  %v2685_v16 = vpop.f32.mrb[86].mxu0  ;;  %v753_v50 = vadd.f32 %v7397_v35, %v7051_v8  ;;  %v5657_v8 = vld [vmem:[%s8908_s0 + $0xb8] sm:$0xff] }
 0x20c   :  { %4990 = vmatprep.mubr.msk.f32.mxu1 %vm946_vm1, %v5644_v52  ;;  %v7514_v9 = vadd.f32 %v2685_v16, %v729_v45  ;;  %v2687_v7 = vpop.f32.mrb[87].mxu0  ;;  %v750_v45 = vadd.f32 %v7397_v35, %v7043_v54 }
 0x20d   :  { %v5655_v7 = vld [vmem:[%s8908_s0 + $0xa8] sm:$0xff] }
 0x20f   :  { %4991 = vmatmul.mubr.msk.f32.gmra.mrb[142].mxu1 %vm946_vm1, %v5645_v47 }
 0x210   :  { %4993 = vmatprep.mubr.msk.f32.mxu1 %vm946_vm1, %v5646_v30  ;;  %v5656_v30 = vld [vmem:[%s8908_s0 + $0xb0] sm:$0xff] }
 0x211   :  { %v2690_v1 = vpop.f32.mrb[88].mxu0 }
 0x212   :  { %v7528_v60 = vadd.f32 %v2690_v1, %v734_v38  ;;  %v2692_v37 = vpop.f32.mrb[89].mxu0  ;;  %v5658_v1 = vld [vmem:[%s8908_s0 + $0xc0] sm:$0xff] }
 0x213   :  { %4994 = vmatmul.mubr.msk.f32.gmra.mrb[144].mxu1 %vm946_vm1, %v5647_v11  ;;  %v2693_v23 = vpop.f32.mrb[90].mxu0  ;;  %v761_v11 = vadd.f32 %v7047_v28, %v7397_v35  ;;  %v5661_v28 = vld [vmem:[%s8908_s0 + $0xd8] sm:$0xff] }
 0x214   :  { %4996 = vmatprep.mubr.msk.f32.mxu1 %vm946_vm1, %v5648_v59  ;;  %v7538_v57 = vadd.f32 %v2693_v23, %v737_v12  ;;  %v2695_v17 = vpop.f32.mrb[91].mxu0  ;;  %v758_v12 = vadd.f32 %v7040_v49, %v7397_v35 }
 0x215   :  { %v5659_v17 = vld [vmem:[%s8908_s0 + $0xc8] sm:$0xff] }
 0x217   :  { %4997 = vmatmul.mubr.msk.f32.gmra.mrb[146].mxu1 %vm946_vm1, %v5649_v22 }
 0x218   :  { %4999 = vmatprep.mubr.msk.f32.mxu1 %vm946_vm1, %v5650_v63  ;;  %v5660_v63 = vld [vmem:[%s8908_s0 + $0xd0] sm:$0xff] }
 0x219   :  { %v2698_v6 = vpop.f32.mrb[92].mxu0 }
 0x21a   :  { %v7552_v62 = vadd.f32 %v2698_v6, %v742_v61  ;;  %v2700_v25 = vpop.f32.mrb[93].mxu0  ;;  %v5662_v6 = vld [vmem:[%s8908_s0 + $0xe0] sm:$0xff] }
 0x21b   :  { %5000 = vmatmul.mubr.msk.f32.gmra.mrb[148].mxu1 %vm946_vm1, %v5651_v10  ;;  %v2701_v21 = vpop.f32.mrb[94].mxu0  ;;  %v769_v10 = vadd.f32 %v7397_v35, %v7082_v33  ;;  %v5665_v33 = vld [vmem:[%s8908_s0 + $0xf8] sm:$0xff] }
 0x21c   :  { %5002 = vmatprep.mubr.msk.f32.mxu1 %vm946_vm1, %v5652_v43  ;;  %v7562_v15 = vadd.f32 %v2701_v21, %v745_v29  ;;  %v2703_v48 = vpop.f32.mrb[95].mxu0  ;;  %v766_v29 = vadd.f32 %v7397_v35, %v7074_v24 }
 0x21d   :  { %v5663_v48 = vld [vmem:[%s8908_s0 + $0xe8] sm:$0xff] }
 0x21f   :  { %5003 = vmatmul.mubr.msk.f32.gmra.mrb[150].mxu1 %vm946_vm1, %v5653_v13 }
 0x220   :  { %5005 = vmatprep.mubr.msk.f32.mxu1 %vm946_vm1, %v5654_v0  ;;  %v5664_v0 = vld [vmem:[%s8908_s0 + $0xf0] sm:$0xff] }
 0x221   :  { %v2706_v5 = vpop.f32.mrb[96].mxu0 }
 0x222   :  { %v7576_v16 = vadd.f32 %v2706_v5, %v750_v45  ;;  %v2708_v52 = vpop.f32.mrb[97].mxu0  ;;  %v5666_v5 = vld [vmem:[%s8908_s0 + $0x100] sm:$0xff] }
 0x223   :  { %5006 = vmatmul.mubr.msk.f32.gmra.mrb[152].mxu1 %vm946_vm1, %v5655_v7  ;;  %v2709_v47 = vpop.f32.mrb[98].mxu0  ;;  %v777_v7 = vadd.f32 %v7078_v51, %v7397_v35  ;;  %v5669_v51 = vld [vmem:[%s8908_s0 + $0x118] sm:$0xff] }
 0x224   :  { %5008 = vmatprep.mubr.msk.f32.mxu1 %vm946_vm1, %v5656_v30  ;;  %v7586_v54 = vadd.f32 %v2709_v47, %v753_v50  ;;  %v2711_v38 = vpop.f32.mrb[99].mxu0  ;;  %v774_v50 = vadd.f32 %v7071_v2, %v7397_v35 }
 0x225   :  { %v5667_v38 = vld [vmem:[%s8908_s0 + $0x108] sm:$0xff] }
 0x227   :  { %5009 = vmatmul.mubr.msk.f32.gmra.mrb[154].mxu1 %vm946_vm1, %v5657_v8 }
 0x228   :  { %5011 = vmatprep.mubr.msk.f32.mxu1 %vm946_vm1, %v5658_v1  ;;  %v5668_v1 = vld [vmem:[%s8908_s0 + $0x110] sm:$0xff] }
 0x229   :  { %v2714_v37 = vpop.f32.mrb[100].mxu0 }
 0x22a   :  { %v7600_v23 = vadd.f32 %v2714_v37, %v758_v12  ;;  %v2716_v59 = vpop.f32.mrb[101].mxu0  ;;  %v5670_v37 = vld [vmem:[%s8908_s0 + $0x120] sm:$0xff] }
 0x22b   :  { %5012 = vmatmul.mubr.msk.f32.gmra.mrb[156].mxu1 %vm946_vm1, %v5659_v17  ;;  %v2717_v22 = vpop.f32.mrb[102].mxu0  ;;  %v785_v17 = vadd.f32 %v7397_v35, %v7113_v42  ;;  %v5673_v42 = vld [vmem:[%s8908_s0 + $0x138] sm:$0xff] }
 0x22c   :  { %5014 = vmatprep.mubr.msk.f32.mxu1 %vm946_vm1, %v5660_v63  ;;  %v7610_v49 = vadd.f32 %v2717_v22, %v761_v11  ;;  %v2719_v61 = vpop.f32.mrb[103].mxu0  ;;  %v782_v11 = vadd.f32 %v7397_v35, %v7105_v44 }
 0x22d   :  { %v5671_v61 = vld [vmem:[%s8908_s0 + $0x128] sm:$0xff] }
 0x22f   :  { %5015 = vmatmul.mubr.msk.f32.gmra.mrb[158].mxu1 %vm946_vm1, %v5661_v28 }
 0x230   :  { %5017 = vmatprep.mubr.msk.f32.mxu1 %vm946_vm1, %v5662_v6  ;;  %v5672_v6 = vld [vmem:[%s8908_s0 + $0x130] sm:$0xff] }
 0x231   :  { %v2722_v25 = vpop.f32.mrb[104].mxu0 }
 0x232   :  { %v7624_v21 = vadd.f32 %v2722_v25, %v766_v29  ;;  %v2724_v43 = vpop.f32.mrb[105].mxu0  ;;  %v5674_v25 = vld [vmem:[%s8908_s0 + $0x140] sm:$0xff] }
 0x233   :  { %5018 = vmatmul.mubr.msk.f32.gmra.mrb[160].mxu1 %vm946_vm1, %v5663_v48  ;;  %v2725_v13 = vpop.f32.mrb[106].mxu0  ;;  %v793_v48 = vadd.f32 %v7109_v41, %v7397_v35  ;;  %v5677_v41 = vld [vmem:[%s8908_s0 + $0x158] sm:$0xff] }
 0x234   :  { %5020 = vmatprep.mubr.msk.f32.mxu1 %vm946_vm1, %v5664_v0  ;;  %v7634_v24 = vadd.f32 %v2725_v13, %v769_v10  ;;  %v2727_v45 = vpop.f32.mrb[107].mxu0  ;;  %v790_v10 = vadd.f32 %v7102_v26, %v7397_v35 }
 0x235   :  { %v5675_v45 = vld [vmem:[%s8908_s0 + $0x148] sm:$0xff] }
 0x237   :  { %5021 = vmatmul.mubr.msk.f32.gmra.mrb[162].mxu1 %vm946_vm1, %v5665_v33 }
 0x238   :  { %5023 = vmatprep.mubr.msk.f32.mxu1 %vm946_vm1, %v5666_v5  ;;  %v5676_v5 = vld [vmem:[%s8908_s0 + $0x150] sm:$0xff] }
 0x239   :  { %v2730_v52 = vpop.f32.mrb[108].mxu0 }
 0x23a   :  { %v7648_v47 = vadd.f32 %v2730_v52, %v774_v50  ;;  %v2732_v30 = vpop.f32.mrb[109].mxu0  ;;  %v5678_v52 = vld [vmem:[%s8908_s0 + $0x160] sm:$0xff] }
 0x23b   :  { %5024 = vmatmul.mubr.msk.f32.gmra.mrb[164].mxu1 %vm946_vm1, %v5667_v38  ;;  %v2733_v8 = vpop.f32.mrb[110].mxu0  ;;  %v801_v38 = vadd.f32 %v7397_v35, %v7144_v39  ;;  %v5681_v39 = vld [vmem:[%s8908_s0 + $0x178] sm:$0xff] }
 0x23c   :  { %5026 = vmatprep.mubr.msk.f32.mxu1 %vm946_vm1, %v5668_v1  ;;  %v7658_v2 = vadd.f32 %v2733_v8, %v777_v7  ;;  %v2735_v12 = vpop.f32.mrb[111].mxu0  ;;  %v798_v7 = vadd.f32 %v7397_v35, %v7136_v3 }
 0x23d   :  { %v5679_v12 = vld [vmem:[%s8908_s0 + $0x168] sm:$0xff] }
 0x23f   :  { %5027 = vmatmul.mubr.msk.f32.gmra.mrb[166].mxu1 %vm946_vm1, %v5669_v51 }
 0x240   :  { %5029 = vmatprep.mubr.msk.f32.mxu1 %vm946_vm1, %v5670_v37  ;;  %v5680_v37 = vld [vmem:[%s8908_s0 + $0x170] sm:$0xff] }
 0x241   :  { %v2738_v59 = vpop.f32.mrb[112].mxu0 }
 0x242   :  { %v7672_v22 = vadd.f32 %v2738_v59, %v782_v11  ;;  %v2740_v63 = vpop.f32.mrb[113].mxu0  ;;  %v5682_v59 = vld [vmem:[%s8908_s0 + $0x180] sm:$0xff] }
 0x243   :  { %5030 = vmatmul.mubr.msk.f32.gmra.mrb[168].mxu1 %vm946_vm1, %v5671_v61  ;;  %v2741_v28 = vpop.f32.mrb[114].mxu0  ;;  %v9005_v61 = vld [vmem:[#allocation5_spill] sm:$0xff] }
 0x244   :  { %5032 = vmatprep.mubr.msk.f32.mxu1 %vm946_vm1, %v5672_v6  ;;  %v7682_v44 = vadd.f32 %v2741_v28, %v785_v17  ;;  %v2743_v29 = vpop.f32.mrb[115].mxu0  ;;  %v806_v17 = vadd.f32 %v7133_v34, %v7397_v35  ;;  %v809_v28 = vadd.f32 %v9005_v61, %v7397_v35 }
 0x247   :  { %5033 = vmatmul.mubr.msk.f32.gmra.mrb[170].mxu1 %vm946_vm1, %v5673_v42  ;;  %v5683_v42 = vld [vmem:[%s8908_s0 + $0x188] sm:$0xff] }
 0x248   :  { %5035 = vmatprep.mubr.msk.f32.mxu1 %vm946_vm1, %v5674_v25 }
 0x249   :  { %v2746_v43 = vpop.f32.mrb[116].mxu0 }
 0x24a   :  { %v7696_v13 = vadd.f32 %v2746_v43, %v790_v10  ;;  %v2748_v0 = vpop.f32.mrb[117].mxu0  ;;  %v5684_v10 = vld [vmem:[%s8908_s0 + $0x190] sm:$0xff] }
 0x24b   :  { %5036 = vmatmul.mubr.msk.f32.gmra.mrb[172].mxu1 %vm946_vm1, %v5675_v45  ;;  %v2749_v33 = vpop.f32.mrb[118].mxu0  ;;  %v5686_v0 = vld [vmem:[%s8908_s0 + $0x1a0] sm:$0xff]  ;;  %v9006_v45 = vld [vmem:[#allocation7_spill] sm:$0xff] }
 0x24c   :  { %5038 = vmatprep.mubr.msk.f32.mxu1 %vm946_vm1, %v5676_v5  ;;  %v7706_v26 = vadd.f32 %v2749_v33, %v793_v48  ;;  %v2751_v50 = vpop.f32.mrb[119].mxu0  ;;  %v5685_v48 = vld [vmem:[%s8908_s0 + $0x198] sm:$0xff]  ;;  %v814_v33 = vadd.f32 %v7397_v35, %v9006_v45  ;;  %v5694_v45 = vld [vmem:[%s8908_s0 + $0x1e0] sm:$0xff] }
 0x24d   :  { %v9007_v50 = vld [vmem:[#allocation9_spill] sm:$0xff] }
 0x24f   :  { %5039 = vmatmul.mubr.msk.f32.gmra.mrb[174].mxu1 %vm946_vm1, %v5677_v41  ;;  %v817_v41 = vadd.f32 %v7397_v35, %v9007_v50 }
 0x250   :  { %5041 = vmatprep.mubr.msk.f32.mxu1 %vm946_vm1, %v5678_v52 }
 0x251   :  { %v2754_v30 = vpop.f32.mrb[120].mxu0 }
 0x252   :  { %v7720_v8 = vadd.f32 %v2754_v30, %v798_v7  ;;  %v2756_v1 = vpop.f32.mrb[121].mxu0  ;;  %v5687_v30 = vld [vmem:[%s8908_s0 + $0x1a8] sm:$0xff] }
 0x253   :  { %5042 = vmatmul.mubr.msk.f32.gmra.mrb[176].mxu1 %vm946_vm1, %v5679_v12  ;;  %v2757_v51 = vpop.f32.mrb[122].mxu0  ;;  %v5688_v1 = vld [vmem:[%s8908_s0 + $0x1b0] sm:$0xff] }
 0x254   :  { %5044 = vmatprep.mubr.msk.f32.mxu1 %vm946_vm1, %v5680_v37  ;;  %v7730_v3 = vadd.f32 %v2757_v51, %v801_v38  ;;  %v2759_v11 = vpop.f32.mrb[123].mxu0  ;;  %v5689_v37 = vld [vmem:[%s8908_s0 + $0x1b8] sm:$0xff] }
 0x255   :  { %v5690_v11 = vld [vmem:[%s8908_s0 + $0x1c0] sm:$0xff] }
 0x257   :  { %5045 = vmatmul.mubr.msk.f32.gmra.mrb[178].mxu1 %vm946_vm1, %v5681_v39  ;;  %v9008_v39 = vld [vmem:[#allocation6_spill] sm:$0xff] }
 0x258   :  { %5047 = vmatprep.mubr.msk.f32.mxu1 %vm946_vm1, %v5682_v59  ;;  %v822_v59 = vadd.f32 %v9008_v39, %v7397_v35 }
 0x259   :  { %v2762_v63 = vpop.f32.mrb[124].mxu0 }
 0x25a   :  { %v7744_v6 = vadd.f32 %v2762_v63, %v806_v17  ;;  %v2764_v29 = vpop.f32.mrb[125].mxu0  ;;  %v9009_v63 = vld [vmem:[#allocation8_spill] sm:$0xff] }
 0x25b   :  { %5048 = vmatmul.mubr.msk.f32.gmra.mrb[180].mxu1 %vm946_vm1, %v5683_v42  ;;  %v2765_v25 = vpop.f32.mrb[126].mxu0  ;;  %v825_v61 = vadd.f32 %v9009_v63, %v7397_v35  ;;  %v5691_v42 = vld [vmem:[%s8908_s0 + $0x1c8] sm:$0xff] }
 0x25c   :  { %5050 = vmatprep.mubr.msk.f32.mxu1 %vm946_vm1, %v5684_v10  ;;  %v7754_v34 = vadd.f32 %v2765_v25, %v809_v28  ;;  %v2767_v43 = vpop.f32.mrb[127].mxu0  ;;  %v5692_v10 = vld [vmem:[%s8908_s0 + $0x1d0] sm:$0xff] }
 0x25f   :  { %5051 = vmatmul.mubr.msk.f32.gmra.mrb[182].mxu1 %vm946_vm1, %v5685_v48 }
 0x260   :  { %5053 = vmatprep.mubr.msk.f32.mxu1 %vm946_vm1, %v5686_v0  ;;  %v5693_v0 = vld [vmem:[%s8908_s0 + $0x1d8] sm:$0xff] }
 0x261   :  { %v2770_v5 = vpop.f32.mrb[128].mxu0 }
 0x262   :  { %v7768_v52 = vadd.f32 %v2770_v5, %v814_v33  ;;  %v2772_v7 = vpop.f32.mrb[129].mxu0  ;;  %v9010_v33 = vld [vmem:[#allocation11_spill] sm:$0xff] }
 0x263   :  { %5054 = vmatmul.mubr.msk.f32.gmra.mrb[184].mxu1 %vm946_vm1, %v5687_v30  ;;  %v2773_v38 = vpop.f32.mrb[130].mxu0  ;;  %v830_v5 = vadd.f32 %v7397_v35, %v9010_v33  ;;  %v9014_v33 = vld [vmem:[#allocation15_spill] sm:$0xff] }
 0x264   :  { %5056 = vmatprep.mubr.msk.f32.mxu1 %vm946_vm1, %v5688_v1  ;;  %v7778_v12 = vadd.f32 %v2773_v38, %v817_v41  ;;  %v2775_v51 = vpop.f32.mrb[131].mxu0  ;;  %v9011_v41 = vld [vmem:[#allocation13_spill] sm:$0xff]  ;;  %v5695_v1 = vld [vmem:[%s8908_s0 + $0x1e8] sm:$0xff] }
 0x265   :  { %v833_v7 = vadd.f32 %v7397_v35, %v9011_v41  ;;  %v9015_v41 = vld [vmem:[#allocation17_spill] sm:$0xff] }
 0x267   :  { %5057 = vmatmul.mubr.msk.f32.gmra.mrb[186].mxu1 %vm946_vm1, %v5689_v37  ;;  %v5696_v37 = vld [vmem:[%s8908_s0 + $0x1f0] sm:$0xff] }
 0x268   :  { %5059 = vmatprep.mubr.msk.f32.mxu1 %vm946_vm1, %v5690_v11 }
 0x269   :  { %v2778_v17 = vpop.f32.mrb[132].mxu0 }
 0x26a   :  { %v7792_v28 = vadd.f32 %v2778_v17, %v822_v59  ;;  %v2780_v29 = vpop.f32.mrb[133].mxu0  ;;  %v5697_v59 = vld [vmem:[%s8908_s0 + $0x1f8] sm:$0xff]  ;;  %v9012_v17 = vld [vmem:[#allocation10_spill] sm:$0xff] }
 0x26b   :  { %5060 = vmatmul.mubr.msk.f32.gmra.mrb[188].mxu1 %vm946_vm1, %v5691_v42  ;;  %v2781_v25 = vpop.f32.mrb[134].mxu0  ;;  %v838_v63 = vadd.f32 %v9012_v17, %v7397_v35  ;;  %v9013_v29 = vld [vmem:[#allocation12_spill] sm:$0xff] }
 0x26c   :  { %5062 = vmatprep.mubr.msk.f32.mxu1 %vm946_vm1, %v5692_v10  ;;  %v7802_v43 = vadd.f32 %v2781_v25, %v825_v61  ;;  %v2783_v48 = vpop.f32.mrb[135].mxu0  ;;  %v841_v42 = vadd.f32 %v9013_v29, %v7397_v35 }
 0x26f   :  { %5063 = vmatmul.mubr.msk.f32.gmra.mrb[190].mxu1 %vm946_vm1, %v5693_v0 }
 0x270   :  { %5065 = vmatprep.mubr.msk.f32.mxu1 %vm946_vm1, %v5694_v45 }
 0x271   :  { %v2786_v50 = vpop.f32.mrb[136].mxu0 }
 0x272   :  { %v7816_v30 = vadd.f32 %v2786_v50, %v830_v5  ;;  %v2788_v38 = vpop.f32.mrb[137].mxu0  ;;  %v846_v5 = vadd.f32 %v7397_v35, %v9014_v33 }
 0x273   :  { %5066 = vmatmul.mubr.msk.f32.gmra.mrb[192].mxu1 %vm946_vm1, %v5695_v1  ;;  %v2789_v51 = vpop.f32.mrb[138].mxu0 }
 0x274   :  { %5068 = vmatprep.mubr.msk.f32.mxu1 %vm946_vm1, %v5696_v37  ;;  %v7826_v11 = vadd.f32 %v2789_v51, %v833_v7  ;;  %v2791_v39 = vpop.f32.mrb[139].mxu0  ;;  %v849_v7 = vadd.f32 %v7397_v35, %v9015_v41 }
 0x277   :  { %5069 = vmatmul.mubr.msk.f32.gmra.mrb[194].mxu1 %vm946_vm1, %v5697_v59  ;;  %v9017_v59 = vld [vmem:[#allocation14_spill] sm:$0xff] }
 0x278   :  { %v854_v17 = vadd.f32 %v9017_v59, %v7397_v35 }
 0x279   :  { %v2794_v61 = vpop.f32.mrb[140].mxu0 }
 0x27a   :  { %v7836_v25 = vadd.f32 %v2794_v61, %v838_v63  ;;  %v2796_v10 = vpop.f32.mrb[141].mxu0  ;;  %v9018_v61 = vld [vmem:[#allocation16_spill] sm:$0xff] }
 0x27b   :  { %v2797_v48 = vpop.f32.mrb[142].mxu0  ;;  %v857_v29 = vadd.f32 %v9018_v61, %v7397_v35 }
 0x27c   :  { %v7838_v0 = vadd.f32 %v2797_v48, %v841_v42  ;;  %v2799_v45 = vpop.f32.mrb[143].mxu0 }
 0x281   :  { %v2802_v50 = vpop.f32.mrb[144].mxu0 }
 0x282   :  { %v7844_v38 = vadd.f32 %v2802_v50, %v846_v5  ;;  %v2804_v1 = vpop.f32.mrb[145].mxu0  ;;  %v9021_v5 = vld [vmem:[#allocation19_spill] sm:$0xff] }
 0x283   :  { %v2805_v51 = vpop.f32.mrb[146].mxu0  ;;  %v862_v50 = vadd.f32 %v7397_v35, %v9021_v5 }
 0x284   :  { %9016 = vst [vmem:[#allocation5_spill] sm:$0xff] %v7844_v38  ;;  %v7846_v37 = vadd.f32 %v2805_v51, %v849_v7  ;;  %v2807_v39 = vpop.f32.mrb[147].mxu0  ;;  %v9022_v7 = vld [vmem:[#allocation21_spill] sm:$0xff] }
 0x285   :  { %v865_v1 = vadd.f32 %v7397_v35, %v9022_v7 }
 0x289   :  { %v2810_v63 = vpop.f32.mrb[148].mxu0 }
 0x28a   :  { %v7852_v42 = vadd.f32 %v2810_v63, %v854_v17  ;;  %v2812_v10 = vpop.f32.mrb[149].mxu0  ;;  %v9025_v63 = vld [vmem:[#allocation18_spill] sm:$0xff] }
 0x28b   :  { %v2813_v48 = vpop.f32.mrb[150].mxu0  ;;  %v870_v61 = vadd.f32 %v9025_v63, %v7397_v35  ;;  %v9026_v10 = vld [vmem:[#allocation20_spill] sm:$0xff] }
 0x28c   :  { %9019 = vst [vmem:[#allocation7_spill] sm:$0xff] %v7852_v42  ;;  %v7854_v45 = vadd.f32 %v2813_v48, %v857_v29  ;;  %v2815_v33 = vpop.f32.mrb[151].mxu0  ;;  %v873_v48 = vadd.f32 %v9026_v10, %v7397_v35 }
 0x28e   :  { %9020 = vst [vmem:[#allocation9_spill] sm:$0xff] %v7854_v45 }
 0x291   :  { %v2818_v41 = vpop.f32.mrb[152].mxu0 }
 0x292   :  { %v7860_v51 = vadd.f32 %v2818_v41, %v862_v50  ;;  %v2820_v39 = vpop.f32.mrb[153].mxu0  ;;  %v9029_v41 = vld [vmem:[#allocation23_spill] sm:$0xff] }
 0x293   :  { %v2821_v59 = vpop.f32.mrb[154].mxu0  ;;  %v878_v7 = vadd.f32 %v7397_v35, %v9029_v41  ;;  %v9030_v39 = vld [vmem:[#allocation25_spill] sm:$0xff] }
 0x294   :  { %9023 = vst [vmem:[#allocation6_spill] sm:$0xff] %v7860_v51  ;;  %v7862_v38 = vadd.f32 %v2821_v59, %v865_v1  ;;  %v2823_v17 = vpop.f32.mrb[155].mxu0  ;;  %v881_v59 = vadd.f32 %v7397_v35, %v9030_v39 }
 0x296   :  { %9024 = vst [vmem:[#allocation8_spill] sm:$0xff] %v7862_v38 }
 0x299   :  { %v2826_v29 = vpop.f32.mrb[156].mxu0 }
 0x29a   :  { %v7868_v33 = vadd.f32 %v2826_v29, %v870_v61  ;;  %v2828_v5 = vpop.f32.mrb[157].mxu0  ;;  %v9033_v29 = vld [vmem:[#allocation22_spill] sm:$0xff] }
 0x29b   :  { %v2829_v42 = vpop.f32.mrb[158].mxu0  ;;  %v886_v10 = vadd.f32 %v9033_v29, %v7397_v35 }
 0x29c   :  { %9027 = vst [vmem:[#allocation11_spill] sm:$0xff] %v7868_v33  ;;  %v7870_v45 = vadd.f32 %v2829_v42, %v873_v48  ;;  %v2831_v50 = vpop.f32.mrb[159].mxu0  ;;  %v9034_v48 = vld [vmem:[#allocation24_spill] sm:$0xff] }
 0x29d   :  { %v889_v5 = vadd.f32 %v9034_v48, %v7397_v35 }
 0x29e   :  { %9028 = vst [vmem:[#allocation13_spill] sm:$0xff] %v7870_v45 }
 0x2a1   :  { %v2834_v1 = vpop.f32.mrb[160].mxu0 }
 0x2a2   :  { %v7876_v17 = vadd.f32 %v2834_v1, %v878_v7  ;;  %v2836_v63 = vpop.f32.mrb[161].mxu0  ;;  %v9037_v1 = vld [vmem:[#allocation27_spill] sm:$0xff] }
 0x2a3   :  { %v2837_v51 = vpop.f32.mrb[162].mxu0  ;;  %v894_v39 = vadd.f32 %v7397_v35, %v9037_v1 }
 0x2a4   :  { %9031 = vst [vmem:[#allocation10_spill] sm:$0xff] %v7876_v17  ;;  %v7878_v38 = vadd.f32 %v2837_v51, %v881_v59  ;;  %v2839_v61 = vpop.f32.mrb[163].mxu0  ;;  %v9038_v59 = vld [vmem:[#allocation29_spill] sm:$0xff] }
 0x2a5   :  { %v897_v63 = vadd.f32 %v7397_v35, %v9038_v59 }
 0x2a6   :  { %9032 = vst [vmem:[#allocation12_spill] sm:$0xff] %v7878_v38 }
 0x2a9   :  { %v2842_v42 = vpop.f32.mrb[164].mxu0 }
 0x2aa   :  { %v7884_v50 = vadd.f32 %v2842_v42, %v886_v10  ;;  %v2844_v41 = vpop.f32.mrb[165].mxu0  ;;  %v9040_v42 = vld [vmem:[#allocation26_spill] sm:$0xff] }
 0x2ab   :  { %v2845_v33 = vpop.f32.mrb[166].mxu0  ;;  %v902_v48 = vadd.f32 %v9040_v42, %v7397_v35 }
 0x2ac   :  { %9035 = vst [vmem:[#allocation15_spill] sm:$0xff] %v7884_v50  ;;  %v7886_v45 = vadd.f32 %v2845_v33, %v889_v5  ;;  %v2847_v7 = vpop.f32.mrb[167].mxu0  ;;  %v9041_v5 = vld [vmem:[#allocation28_spill] sm:$0xff] }
 0x2ad   :  { %v905_v41 = vadd.f32 %v9041_v5, %v7397_v35 }
 0x2ae   :  { %9036 = vst [vmem:[#allocation17_spill] sm:$0xff] %v7886_v45 }
 0x2b1   :  { %v2850_v51 = vpop.f32.mrb[168].mxu0 }
 0x2b2   :  { %v7892_v61 = vadd.f32 %v2850_v51, %v894_v39  ;;  %v2852_v29 = vpop.f32.mrb[169].mxu0  ;;  %v9043_v51 = vld [vmem:[#allocation31_spill] sm:$0xff] }
 0x2b3   :  { %v2853_v17 = vpop.f32.mrb[170].mxu0  ;;  %v910_v59 = vadd.f32 %v7397_v35, %v9043_v51 }
 0x2b4   :  { %9039 = vst [vmem:[#allocation14_spill] sm:$0xff] %v7892_v61  ;;  %v7894_v38 = vadd.f32 %v2853_v17, %v897_v63  ;;  %v2855_v10 = vpop.f32.mrb[171].mxu0  ;;  %v9044_v63 = vld [vmem:[#allocation33_spill] sm:$0xff] }
 0x2b5   :  { %v913_v29 = vadd.f32 %v7397_v35, %v9044_v63  ;;  %v9047_v63 = vld [vmem:[#allocation30_spill] sm:$0xff] }
 0x2b9   :  { %v2858_v33 = vpop.f32.mrb[172].mxu0 }
 0x2ba   :  { %v7900_v7 = vadd.f32 %v2858_v33, %v902_v48  ;;  %v2860_v1 = vpop.f32.mrb[173].mxu0  ;;  %v934_v48 = vadd.f32 %v7380_v53, %v7397_v35  ;;  %v9048_v53 = vld [vmem:[#allocation32_spill] sm:$0xff] }
 0x2bb   :  { %v2861_v50 = vpop.f32.mrb[174].mxu0 }
 0x2bc   :  { %9042 = vst [vmem:[#allocation16_spill] sm:$0xff] %v7900_v7  ;;  %v7902_v45 = vadd.f32 %v2861_v50, %v905_v41  ;;  %v2863_v39 = vpop.f32.mrb[175].mxu0  ;;  %v937_v41 = vadd.f32 %v7388_v40, %v7397_v35 }
 0x2c1   :  { %v2866_v17 = vpop.f32.mrb[176].mxu0 }
 0x2c2   :  { %v7908_v10 = vadd.f32 %v2866_v17, %v910_v59  ;;  %v2868_v42 = vpop.f32.mrb[177].mxu0  ;;  %v918_v59 = vadd.f32 %v9047_v63, %v7397_v35 }
 0x2c3   :  { %v2869_v61 = vpop.f32.mrb[178].mxu0 }
 0x2c4   :  { %9045 = vst [vmem:[#allocation19_spill] sm:$0xff] %v7908_v10  ;;  %v7912_v33 = vadd.f32 %v2869_v61, %v913_v29  ;;  %v2871_v5 = vpop.f32.mrb[179].mxu0  ;;  %v921_v61 = vadd.f32 %v9048_v53, %v7397_v35 }
 0x2c6   :  { %9046 = vst [vmem:[#allocation21_spill] sm:$0xff] %v7912_v33  ;;  %v2890_v50 = vpop.f32.mrb[128].mxu1 }
 0x2c7   :  { %v7916_v1 = vadd.f32 %v2890_v50, %v934_v48  ;;  %v2892_v39 = vpop.f32.mrb[129].mxu1 }
 0x2c8   :  { %v2893_v51 = vpop.f32.mrb[130].mxu1 }
 0x2c9   :  { %v7920_v17 = vadd.f32 %v2893_v51, %v937_v41  ;;  %v2895_v42 = vpop.f32.mrb[131].mxu1  ;;  %v2874_v10 = vpop.f32.mrb[180].mxu0  ;;  %v926_v51 = vadd.f32 %v7397_v35, %v7383_v56 }
 0x2ca   :  { %v7924_v29 = vadd.f32 %v2874_v10, %v918_v59  ;;  %v2876_v5 = vpop.f32.mrb[181].mxu0 }
 0x2cb   :  { %v2877_v33 = vpop.f32.mrb[182].mxu0 }
 0x2cc   :  { %v7926_v7 = vadd.f32 %v2877_v33, %v921_v61  ;;  %v2879_v40 = vpop.f32.mrb[183].mxu0 }
 0x2ce   :  { %v4977_v48 = vpop.f32.mrb[132].mxu1 }
 0x2cf   :  { %v7929_v50 = vadd.f32 %v4977_v48, %v7414_v46  ;;  %v3033_v39 = vpop.f32.mrb[133].mxu1  ;;  %v929_v46 = vadd.f32 %v7397_v35, %v7390_v58 }
 0x2d0   :  { %v7932_v41 = vadd.f32 %v3033_v39, %v7412_v36 }
 0x2d1   :  { %v3420_v10 = vsel %vm3416_vm0, %v7929_v50, 0.0  ;;  %v2882_v63 = vpop.f32.mrb[184].mxu0 }
 0x2d2   :  { %v4980_v59 = vpop.f32.mrb[134].mxu1  ;;  %3421 = vadd.xlane.f32.xlu1 %v3420_v10  ;;  %v3417_v33 = vsel %vm3416_vm0, %v7932_v41, 0.0  ;;  %v7942_v42 = vadd.f32 %v2882_v63, %v926_v51  ;;  %v2884_v53 = vpop.f32.mrb[185].mxu0 }
 0x2d3   :  { %v7945_v36 = vadd.f32 %v4980_v59, %v7426_v19  ;;  %v3043_v61 = vpop.f32.mrb[135].mxu1  ;;  %3418 = vadd.xlane.f32.xlu0 %v3417_v33  ;;  %v2885_v56 = vpop.f32.mrb[186].mxu0 }
 0x2d4   :  { %v7948_v5 = vadd.f32 %v3043_v61, %v7424_v18  ;;  %v7950_v40 = vadd.f32 %v2885_v56, %v929_v46  ;;  %v2887_v48 = vpop.f32.mrb[187].mxu0 }
 0x2d5   :  { %v3426_v39 = vsel %vm3416_vm0, %v7945_v36, 0.0 }
 0x2d6   :  { %v4983_v10 = vpop.f32.mrb[136].mxu1  ;;  %v3423_v18 = vsel %vm3416_vm0, %v7948_v5, 0.0 }
 0x2d7   :  { %v7955_v58 = vadd.f32 %v4983_v10, %v7447_v27  ;;  %v3053_v35 = vpop.f32.mrb[137].mxu1  ;;  %3427 = vadd.xlane.f32.xlu0 %v3426_v39 }
 0x2d8   :  { %v7958_v19 = vadd.f32 %v3053_v35, %v7440_v31 }
 0x2d9   :  { %v3432_v31 = vsel %vm3416_vm0, %v7955_v58, 0.0 }
 0x2da   :  { %v4986_v51 = vpop.f32.mrb[138].mxu1  ;;  %v3429_v63 = vsel %vm3416_vm0, %v7958_v19, 0.0 }
 0x2db   :  { %v7965_v59 = vadd.f32 %v4986_v51, %v7466_v4  ;;  %v3063_v33 = vpop.f32.mrb[139].mxu1  ;;  %3424 = vadd.xlane.f32.xlu0 %v3423_v18  ;;  %3430 = vadd.xlane.f32.xlu1 %v3429_v63 }
 0x2dc   :  { %v7968_v27 = vadd.f32 %v3063_v33, %v7456_v32 }
 0x2dd   :  { %v3438_v32 = vsel %vm3416_vm0, %v7965_v59, 0.0 }
 0x2de   :  { %v4989_v46 = vpop.f32.mrb[140].mxu1  ;;  %v3435_v53 = vsel %vm3416_vm0, %v7968_v27, 0.0 }
 0x2df   :  { %v7975_v61 = vadd.f32 %v4989_v46, %v7490_v55  ;;  %v3073_v56 = vpop.f32.mrb[141].mxu1  ;;  %3433 = vadd.xlane.f32.xlu0 %v3432_v31  ;;  %3436 = vadd.xlane.f32.xlu1 %v3435_v53 }
 0x2e0   :  { %v7978_v4 = vadd.f32 %v3073_v56, %v7480_v20 }
 0x2e1   :  { %v3444_v20 = vsel %vm3416_vm0, %v7975_v61, 0.0 }
 0x2e2   :  { %v4992_v48 = vpop.f32.mrb[142].mxu1  ;;  %v3441_v39 = vsel %vm3416_vm0, %v7978_v4, 0.0 }
 0x2e3   :  { %v7985_v10 = vadd.f32 %v4992_v48, %v7514_v9  ;;  %v3083_v35 = vpop.f32.mrb[143].mxu1  ;;  %3439 = vadd.xlane.f32.xlu0 %v3438_v32  ;;  %3442 = vadd.xlane.f32.xlu1 %v3441_v39 }
 0x2e4   :  { %v7988_v55 = vadd.f32 %v3083_v35, %v7504_v14 }
 0x2e5   :  { %v3450_v14 = vsel %vm3416_vm0, %v7985_v10, 0.0 }
 0x2e6   :  { %v4995_v51 = vpop.f32.mrb[144].mxu1  ;;  %v3447_v18 = vsel %vm3416_vm0, %v7988_v55, 0.0 }
 0x2e7   :  { %v7995_v63 = vadd.f32 %v4995_v51, %v7538_v57  ;;  %v3093_v33 = vpop.f32.mrb[145].mxu1  ;;  %3445 = vadd.xlane.f32.xlu0 %v3444_v20  ;;  %3448 = vadd.xlane.f32.xlu1 %v3447_v18 }
 0x2e8   :  { %v7998_v9 = vadd.f32 %v3093_v33, %v7528_v60 }
 0x2e9   :  { %v3456_v60 = vsel %vm3416_vm0, %v7995_v63, 0.0 }
 0x2ea   :  { %v4998_v46 = vpop.f32.mrb[146].mxu1  ;;  %v3453_v31 = vsel %vm3416_vm0, %v7998_v9, 0.0 }
 0x2eb   :  { %v8005_v53 = vadd.f32 %v4998_v46, %v7562_v15  ;;  %v3103_v56 = vpop.f32.mrb[147].mxu1  ;;  %3451 = vadd.xlane.f32.xlu0 %v3450_v14  ;;  %3454 = vadd.xlane.f32.xlu1 %v3453_v31 }
 0x2ec   :  { %v8008_v57 = vadd.f32 %v3103_v56, %v7552_v62 }
 0x2ed   :  { %v3462_v62 = vsel %vm3416_vm0, %v8005_v53, 0.0 }
 0x2ee   :  { %v5001_v48 = vpop.f32.mrb[148].mxu1  ;;  %v3459_v32 = vsel %vm3416_vm0, %v8008_v57, 0.0 }
 0x2ef   :  { %v8015_v39 = vadd.f32 %v5001_v48, %v7586_v54  ;;  %v3113_v35 = vpop.f32.mrb[149].mxu1  ;;  %3457 = vadd.xlane.f32.xlu0 %v3456_v60  ;;  %3460 = vadd.xlane.f32.xlu1 %v3459_v32 }
 0x2f0   :  { %v8018_v15 = vadd.f32 %v3113_v35, %v7576_v16 }
 0x2f1   :  { %v3468_v16 = vsel %vm3416_vm0, %v8015_v39, 0.0 }
 0x2f2   :  { %v5004_v51 = vpop.f32.mrb[150].mxu1  ;;  %v3465_v20 = vsel %vm3416_vm0, %v8018_v15, 0.0 }
 0x2f3   :  { %v8025_v18 = vadd.f32 %v5004_v51, %v7610_v49  ;;  %v3123_v33 = vpop.f32.mrb[151].mxu1  ;;  %3463 = vadd.xlane.f32.xlu0 %v3462_v62  ;;  %3466 = vadd.xlane.f32.xlu1 %v3465_v20 }
 0x2f4   :  { %v8028_v54 = vadd.f32 %v3123_v33, %v7600_v23 }
 0x2f5   :  { %v3474_v23 = vsel %vm3416_vm0, %v8025_v18, 0.0 }
 0x2f6   :  { %v5007_v46 = vpop.f32.mrb[152].mxu1  ;;  %v3471_v14 = vsel %vm3416_vm0, %v8028_v54, 0.0 }
 0x2f7   :  { %v8035_v31 = vadd.f32 %v5007_v46, %v7634_v24  ;;  %v3133_v56 = vpop.f32.mrb[153].mxu1  ;;  %3469 = vadd.xlane.f32.xlu0 %v3468_v16  ;;  %3472 = vadd.xlane.f32.xlu1 %v3471_v14 }
 0x2f8   :  { %v8038_v49 = vadd.f32 %v3133_v56, %v7624_v21 }
 0x2f9   :  { %v3480_v21 = vsel %vm3416_vm0, %v8035_v31, 0.0 }
 0x2fa   :  { %v5010_v48 = vpop.f32.mrb[154].mxu1  ;;  %v3477_v60 = vsel %vm3416_vm0, %v8038_v49, 0.0 }
 0x2fb   :  { %v8045_v32 = vadd.f32 %v5010_v48, %v7658_v2  ;;  %v3143_v35 = vpop.f32.mrb[155].mxu1  ;;  %3475 = vadd.xlane.f32.xlu0 %v3474_v23  ;;  %3478 = vadd.xlane.f32.xlu1 %v3477_v60 }
 0x2fc   :  { %v8048_v24 = vadd.f32 %v3143_v35, %v7648_v47 }
 0x2fd   :  { %v3486_v47 = vsel %vm3416_vm0, %v8045_v32, 0.0 }
 0x2fe   :  { %v5013_v51 = vpop.f32.mrb[156].mxu1  ;;  %v3483_v62 = vsel %vm3416_vm0, %v8048_v24, 0.0 }
 0x2ff   :  { %v8055_v20 = vadd.f32 %v5013_v51, %v7682_v44  ;;  %v3153_v33 = vpop.f32.mrb[157].mxu1  ;;  %3481 = vadd.xlane.f32.xlu0 %v3480_v21  ;;  %3484 = vadd.xlane.f32.xlu1 %v3483_v62 }
 0x300   :  { %v8058_v2 = vadd.f32 %v3153_v33, %v7672_v22 }
 0x301   :  { %v3492_v22 = vsel %vm3416_vm0, %v8055_v20, 0.0 }
 0x302   :  { %v5016_v46 = vpop.f32.mrb[158].mxu1  ;;  %v3489_v16 = vsel %vm3416_vm0, %v8058_v2, 0.0 }
 0x303   :  { %v8065_v14 = vadd.f32 %v5016_v46, %v7706_v26  ;;  %v3163_v56 = vpop.f32.mrb[159].mxu1  ;;  %3487 = vadd.xlane.f32.xlu0 %v3486_v47  ;;  %3490 = vadd.xlane.f32.xlu1 %v3489_v16 }
 0x304   :  { %v8068_v44 = vadd.f32 %v3163_v56, %v7696_v13 }
 0x305   :  { %v3498_v13 = vsel %vm3416_vm0, %v8065_v14, 0.0 }
 0x306   :  { %v5019_v48 = vpop.f32.mrb[160].mxu1  ;;  %v3495_v23 = vsel %vm3416_vm0, %v8068_v44, 0.0 }
 0x307   :  { %v8075_v60 = vadd.f32 %v5019_v48, %v7730_v3  ;;  %v3173_v35 = vpop.f32.mrb[161].mxu1  ;;  %3493 = vadd.xlane.f32.xlu0 %v3492_v22  ;;  %3496 = vadd.xlane.f32.xlu1 %v3495_v23 }
 0x308   :  { %v8078_v26 = vadd.f32 %v3173_v35, %v7720_v8 }
 0x309   :  { %v3504_v8 = vsel %vm3416_vm0, %v8075_v60, 0.0 }
 0x30a   :  { %v5022_v51 = vpop.f32.mrb[162].mxu1  ;;  %v3501_v21 = vsel %vm3416_vm0, %v8078_v26, 0.0 }
 0x30b   :  { %v8085_v62 = vadd.f32 %v5022_v51, %v7754_v34  ;;  %v3183_v33 = vpop.f32.mrb[163].mxu1  ;;  %3499 = vadd.xlane.f32.xlu0 %v3498_v13  ;;  %3502 = vadd.xlane.f32.xlu1 %v3501_v21 }
 0x30c   :  { %v8088_v3 = vadd.f32 %v3183_v33, %v7744_v6 }
 0x30d   :  { %v3510_v6 = vsel %vm3416_vm0, %v8085_v62, 0.0 }
 0x30e   :  { %v5025_v46 = vpop.f32.mrb[164].mxu1  ;;  %v3507_v47 = vsel %vm3416_vm0, %v8088_v3, 0.0 }
 0x30f   :  { %v8095_v16 = vadd.f32 %v5025_v46, %v7778_v12  ;;  %v3193_v56 = vpop.f32.mrb[165].mxu1  ;;  %3505 = vadd.xlane.f32.xlu0 %v3504_v8  ;;  %3508 = vadd.xlane.f32.xlu1 %v3507_v47 }
 0x310   :  { %v8098_v34 = vadd.f32 %v3193_v56, %v7768_v52 }
 0x311   :  { %v3516_v52 = vsel %vm3416_vm0, %v8095_v16, 0.0 }
 0x312   :  { %v5028_v48 = vpop.f32.mrb[166].mxu1  ;;  %v3513_v22 = vsel %vm3416_vm0, %v8098_v34, 0.0 }
 0x313   :  { %v8105_v23 = vadd.f32 %v5028_v48, %v7802_v43  ;;  %v3203_v35 = vpop.f32.mrb[167].mxu1  ;;  %3511 = vadd.xlane.f32.xlu0 %v3510_v6  ;;  %3514 = vadd.xlane.f32.xlu1 %v3513_v22 }
 0x314   :  { %v8108_v12 = vadd.f32 %v3203_v35, %v7792_v28 }
 0x315   :  { %v3522_v28 = vsel %vm3416_vm0, %v8105_v23, 0.0 }
 0x316   :  { %v5031_v51 = vpop.f32.mrb[168].mxu1  ;;  %v3519_v13 = vsel %vm3416_vm0, %v8108_v12, 0.0 }
 0x317   :  { %v8115_v21 = vadd.f32 %v5031_v51, %v7826_v11  ;;  %v3213_v33 = vpop.f32.mrb[169].mxu1  ;;  %3517 = vadd.xlane.f32.xlu0 %v3516_v52  ;;  %3520 = vadd.xlane.f32.xlu1 %v3519_v13 }
 0x318   :  { %v8118_v43 = vadd.f32 %v3213_v33, %v7816_v30  ;;  %v9051_v33 = vld [vmem:[#allocation9_spill] sm:$0xff] }
 0x319   :  { %v3528_v30 = vsel %vm3416_vm0, %v8115_v21, 0.0 }
 0x31a   :  { %v5034_v46 = vpop.f32.mrb[170].mxu1  ;;  %v3525_v8 = vsel %vm3416_vm0, %v8118_v43, 0.0 }
 0x31b   :  { %v8125_v47 = vadd.f32 %v5034_v46, %v7838_v0  ;;  %v3223_v56 = vpop.f32.mrb[171].mxu1  ;;  %3523 = vadd.xlane.f32.xlu0 %v3522_v28  ;;  %3526 = vadd.xlane.f32.xlu1 %v3525_v8  ;;  %v9050_v0 = vld [vmem:[#allocation5_spill] sm:$0xff] }
 0x31c   :  { %v8128_v11 = vadd.f32 %v3223_v56, %v7836_v25 }
 0x31d   :  { %v3534_v25 = vsel %vm3416_vm0, %v8125_v47, 0.0 }
 0x31e   :  { %v5037_v48 = vpop.f32.mrb[172].mxu1  ;;  %v3531_v6 = vsel %vm3416_vm0, %v8128_v11, 0.0 }
 0x31f   :  { %v8135_v22 = vadd.f32 %v5037_v48, %v7846_v37  ;;  %v3233_v35 = vpop.f32.mrb[173].mxu1  ;;  %3529 = vadd.xlane.f32.xlu0 %v3528_v30  ;;  %3532 = vadd.xlane.f32.xlu1 %v3531_v6  ;;  %v9053_v37 = vld [vmem:[#allocation7_spill] sm:$0xff]  ;;  %v9055_v6 = vld [vmem:[#allocation8_spill] sm:$0xff] }
 0x320   :  { %v8138_v51 = vadd.f32 %v3233_v35, %v9050_v0 }
 0x321   :  { %9049 = vst [vmem:[#allocation18_spill] sm:$0xff] %v8135_v22  ;;  %v3540_v48 = vsel %vm3416_vm0, %v8135_v22, 0.0 }
 0x322   :  { %v5040_v52 = vpop.f32.mrb[174].mxu1  ;;  %v3537_v13 = vsel %vm3416_vm0, %v8138_v51, 0.0 }
 0x323   :  { %v8145_v46 = vadd.f32 %v5040_v52, %v9051_v33  ;;  %v3243_v28 = vpop.f32.mrb[175].mxu1  ;;  %3535 = vadd.xlane.f32.xlu0 %v3534_v25  ;;  %3538 = vadd.xlane.f32.xlu1 %v3537_v13  ;;  %v9057_v52 = vld [vmem:[#allocation6_spill] sm:$0xff] }
 0x324   :  { %v8148_v8 = vadd.f32 %v3243_v28, %v9053_v37  ;;  %v9059_v37 = vld [vmem:[#allocation13_spill] sm:$0xff] }
 0x325   :  { %9052 = vst [vmem:[#allocation20_spill] sm:$0xff] %v8145_v46  ;;  %v3546_v13 = vsel %vm3416_vm0, %v8145_v46, 0.0 }
 0x326   :  { %9054 = vst [vmem:[#allocation23_spill] sm:$0xff] %v8148_v8  ;;  %v5043_v56 = vpop.f32.mrb[176].mxu1  ;;  %v3543_v30 = vsel %vm3416_vm0, %v8148_v8, 0.0 }
 0x327   :  { %v8155_v35 = vadd.f32 %v5043_v56, %v9055_v6  ;;  %v3253_v0 = vpop.f32.mrb[177].mxu1  ;;  %3541 = vadd.xlane.f32.xlu0 %v3540_v48  ;;  %3544 = vadd.xlane.f32.xlu1 %v3543_v30  ;;  %v9060_v56 = vld [vmem:[#allocation11_spill] sm:$0xff] }
 0x328   :  { %v8158_v33 = vadd.f32 %v3253_v0, %v9057_v52  ;;  %v9062_v52 = vld [vmem:[#allocation12_spill] sm:$0xff] }
 0x329   :  { %9056 = vst [vmem:[#allocation25_spill] sm:$0xff] %v8155_v35  ;;  %v3552_v30 = vsel %vm3416_vm0, %v8155_v35, 0.0 }
 0x32a   :  { %9058 = vst [vmem:[#allocation22_spill] sm:$0xff] %v8158_v33  ;;  %v5046_v25 = vpop.f32.mrb[178].mxu1  ;;  %v3549_v28 = vsel %vm3416_vm0, %v8158_v33, 0.0 }
 0x32b   :  { %v8165_v22 = vadd.f32 %v5046_v25, %v9059_v37  ;;  %v3263_v8 = vpop.f32.mrb[179].mxu1  ;;  %3547 = vadd.xlane.f32.xlu0 %v3546_v13  ;;  %3550 = vadd.xlane.f32.xlu1 %v3549_v28  ;;  %v9063_v25 = vld [vmem:[#allocation10_spill] sm:$0xff] }
 0x32c   :  { %v8168_v6 = vadd.f32 %v3263_v8, %v9060_v56  ;;  %v9065_v56 = vld [vmem:[#allocation17_spill] sm:$0xff] }
 0x32d   :  { %v3558_v8 = vsel %vm3416_vm0, %v8165_v22, 0.0 }
 0x32e   :  { %9061 = vst [vmem:[#allocation24_spill] sm:$0xff] %v8168_v6  ;;  %v5049_v48 = vpop.f32.mrb[180].mxu1  ;;  %v3555_v0 = vsel %vm3416_vm0, %v8168_v6, 0.0 }
 0x32f   :  { %v8175_v46 = vadd.f32 %v5049_v48, %v9062_v52  ;;  %v3273_v33 = vpop.f32.mrb[181].mxu1  ;;  %3553 = vadd.xlane.f32.xlu0 %v3552_v30  ;;  %3556 = vadd.xlane.f32.xlu1 %v3555_v0  ;;  %v9067_v48 = vld [vmem:[#allocation15_spill] sm:$0xff] }
 0x330   :  { %v8178_v37 = vadd.f32 %v3273_v33, %v9063_v25 }
 0x331   :  { %v3564_v33 = vsel %vm3416_vm0, %v8175_v46, 0.0 }
 0x332   :  { %9064 = vst [vmem:[#allocation27_spill] sm:$0xff] %v8178_v37  ;;  %v5052_v13 = vpop.f32.mrb[182].mxu1  ;;  %v3561_v28 = vsel %vm3416_vm0, %v8178_v37, 0.0 }
 0x333   :  { %v8185_v35 = vadd.f32 %v5052_v13, %v9065_v56  ;;  %v3283_v6 = vpop.f32.mrb[183].mxu1  ;;  %3559 = vadd.xlane.f32.xlu0 %v3558_v8  ;;  %3562 = vadd.xlane.f32.xlu1 %v3561_v28  ;;  %v9069_v13 = vld [vmem:[#allocation14_spill] sm:$0xff] }
 0x334   :  { %v8188_v52 = vadd.f32 %v3283_v6, %v9067_v48 }
 0x335   :  { %9066 = vst [vmem:[#allocation29_spill] sm:$0xff] %v8185_v35  ;;  %v3570_v6 = vsel %vm3416_vm0, %v8185_v35, 0.0 }
 0x336   :  { %9068 = vst [vmem:[#allocation26_spill] sm:$0xff] %v8188_v52  ;;  %v5055_v30 = vpop.f32.mrb[184].mxu1  ;;  %v3567_v0 = vsel %vm3416_vm0, %v8188_v52, 0.0 }
 0x337   :  { %v8195_v25 = vadd.f32 %v5055_v30, %v7894_v38  ;;  %v3293_v37 = vpop.f32.mrb[185].mxu1  ;;  %3565 = vadd.xlane.f32.xlu0 %v3564_v33  ;;  %3568 = vadd.xlane.f32.xlu1 %v3567_v0  ;;  %v9071_v38 = vld [vmem:[#allocation16_spill] sm:$0xff] }
 0x338   :  { %v8198_v56 = vadd.f32 %v3293_v37, %v9069_v13  ;;  %v9073_v13 = vld [vmem:[#allocation21_spill] sm:$0xff] }
 0x339   :  { %v3576_v37 = vsel %vm3416_vm0, %v8195_v25, 0.0 }
 0x33a   :  { %9070 = vst [vmem:[#allocation28_spill] sm:$0xff] %v8198_v56  ;;  %v5058_v8 = vpop.f32.mrb[186].mxu1  ;;  %v3573_v28 = vsel %vm3416_vm0, %v8198_v56, 0.0 }
 0x33b   :  { %v8205_v48 = vadd.f32 %v5058_v8, %v7902_v45  ;;  %v3303_v52 = vpop.f32.mrb[187].mxu1  ;;  %3571 = vadd.xlane.f32.xlu0 %v3570_v6  ;;  %3574 = vadd.xlane.f32.xlu1 %v3573_v28  ;;  %v9074_v45 = vld [vmem:[#allocation19_spill] sm:$0xff] }
 0x33c   :  { %v8208_v30 = vadd.f32 %v3303_v52, %v9071_v38 }
 0x33d   :  { %v3582_v52 = vsel %vm3416_vm0, %v8205_v48, 0.0 }
 0x33e   :  { %9072 = vst [vmem:[#allocation31_spill] sm:$0xff] %v8208_v30  ;;  %v5061_v33 = vpop.f32.mrb[188].mxu1  ;;  %v3579_v0 = vsel %vm3416_vm0, %v8208_v30, 0.0 }
 0x33f   :  { %v8215_v35 = vadd.f32 %v5061_v33, %v9073_v13  ;;  %v3313_v56 = vpop.f32.mrb[189].mxu1  ;;  %3577 = vadd.xlane.f32.xlu0 %v3576_v37  ;;  %3580 = vadd.xlane.f32.xlu1 %v3579_v0 }
 0x340   :  { %v8218_v8 = vadd.f32 %v3313_v56, %v9074_v45 }
 0x341   :  { %v3588_v56 = vsel %vm3416_vm0, %v8215_v35, 0.0 }
 0x342   :  { %v5064_v6 = vpop.f32.mrb[190].mxu1  ;;  %v3585_v28 = vsel %vm3416_vm0, %v8218_v8, 0.0 }
 0x343   :  { %v8225_v38 = vadd.f32 %v5064_v6, %v7926_v7  ;;  %v3323_v30 = vpop.f32.mrb[191].mxu1  ;;  %3583 = vadd.xlane.f32.xlu0 %v3582_v52  ;;  %3586 = vadd.xlane.f32.xlu1 %v3585_v28 }
 0x344   :  { %v8228_v33 = vadd.f32 %v3323_v30, %v7924_v29 }
 0x345   :  { %v3594_v29 = vsel %vm3416_vm0, %v8225_v38, 0.0 }
 0x346   :  { %v5067_v37 = vpop.f32.mrb[192].mxu1  ;;  %v3591_v0 = vsel %vm3416_vm0, %v8228_v33, 0.0 }
 0x347   :  { %v8235_v13 = vadd.f32 %v5067_v37, %v7950_v40  ;;  %v3333_v45 = vpop.f32.mrb[193].mxu1  ;;  %3589 = vadd.xlane.f32.xlu0 %v3588_v56  ;;  %3592 = vadd.xlane.f32.xlu1 %v3591_v0 }
 0x348   :  { %v8238_v7 = vadd.f32 %v3333_v45, %v7942_v42 }
 0x349   :  { %v3600_v42 = vsel %vm3416_vm0, %v8235_v13, 0.0 }
 0x34a   :  { %v5070_v6 = vpop.f32.mrb[194].mxu1  ;;  %v3597_v30 = vsel %vm3416_vm0, %v8238_v7, 0.0 }
 0x34b   :  { %v8245_v52 = vadd.f32 %v5070_v6, %v7920_v17  ;;  %v3343_v28 = vpop.f32.mrb[195].mxu1  ;;  %3595 = vadd.xlane.f32.xlu0 %v3594_v29  ;;  %3598 = vadd.xlane.f32.xlu1 %v3597_v30 }
 0x34c   :  { %v8248_v40 = vadd.f32 %v3343_v28, %v7916_v1 }
 0x34d   :  { %v3606_v56 = vsel %vm3416_vm0, %v8245_v52, 0.0 }
 0x34e   :  { %v3603_v37 = vsel %vm3416_vm0, %v8248_v40, 0.0 }
 0x34f   :  { %3601 = vadd.xlane.f32.xlu0 %v3600_v42  ;;  %3604 = vadd.xlane.f32.xlu1 %v3603_v37 }
 0x353   :  { %3607 = vadd.xlane.f32.xlu0 %v3606_v56 }
 0x35f   :  { %v3422_v17 = vpop.xlane.xlu1 %3421 }
 0x360   :  { %v3610_v0 = vmul.f32 0.015625, %v3422_v17  ;;  %v3419_v45 = vpop.xlane.xlu0 %3418 }
 0x361   :  { %v3609_v6 = vmul.f32 0.015625, %v3419_v45 }
 0x362   :  { %v8257_v29 = vsub.f32 %v7929_v50, %v3610_v0 }
 0x363   :  { %v8260_v1 = vsub.f32 %v7932_v41, %v3609_v6 }
 0x364   :  { %9075 = vst [vmem:[#allocation33_spill] sm:$0xff] %v8257_v29  ;;  %v3428_v30 = vpop.xlane.xlu0 %3427  ;;  %v3738_v28 = vmul.f32 %v8257_v29, %v8257_v29 }
 0x365   :  { %9076 = vst [vmem:[#allocation30_spill] sm:$0xff] %v8260_v1  ;;  %v3612_v42 = vmul.f32 0.015625, %v3428_v30  ;;  %v3737_v37 = vmul.f32 %v8260_v1, %v8260_v1 }
 0x366   :  { %v3804_v56 = vsel %vm3416_vm0, %v3738_v28, 0.0 }
 0x367   :  { %v8268_v17 = vsub.f32 %v7945_v36, %v3612_v42  ;;  %3805 = vadd.xlane.f32.xlu0 %v3804_v56  ;;  %v3801_v50 = vsel %vm3416_vm0, %v3737_v37, 0.0 }
 0x368   :  { %v3425_v0 = vpop.xlane.xlu0 %3424  ;;  %v3431_v45 = vpop.xlane.xlu1 %3430  ;;  %3802 = vadd.xlane.f32.xlu1 %v3801_v50 }
 0x369   :  { %v3611_v41 = vmul.f32 0.015625, %v3425_v0  ;;  %v3613_v6 = vmul.f32 0.015625, %v3431_v45  ;;  %v3740_v29 = vmul.f32 %v8268_v17, %v8268_v17 }
 0x36b   :  { %v8274_v30 = vsub.f32 %v7948_v5, %v3611_v41  ;;  %v8277_v1 = vsub.f32 %v7958_v19, %v3613_v6  ;;  %v3810_v36 = vsel %vm3416_vm0, %v3740_v29, 0.0 }
 0x36c   :  { %v3434_v28 = vpop.xlane.xlu0 %3433  ;;  %v3437_v42 = vpop.xlane.xlu1 %3436  ;;  %3811 = vadd.xlane.f32.xlu0 %v3810_v36 }
 0x36d   :  { %9077 = vst [vmem:[#allocation32_spill] sm:$0xff] %v8277_v1  ;;  %v3614_v37 = vmul.f32 0.015625, %v3434_v28  ;;  %v3615_v56 = vmul.f32 0.015625, %v3437_v42  ;;  %v3739_v50 = vmul.f32 %v8274_v30, %v8274_v30  ;;  %v3741_v19 = vmul.f32 %v8277_v1, %v8277_v1 }
 0x36f   :  { %v8283_v0 = vsub.f32 %v7955_v58, %v3614_v37  ;;  %v8286_v45 = vsub.f32 %v7968_v27, %v3615_v56  ;;  %v3807_v5 = vsel %vm3416_vm0, %v3739_v50, 0.0  ;;  %v3813_v56 = vsel %vm3416_vm0, %v3741_v19, 0.0 }
 0x370   :  { %v3440_v29 = vpop.xlane.xlu0 %3439  ;;  %v3443_v41 = vpop.xlane.xlu1 %3442  ;;  %3808 = vadd.xlane.f32.xlu1 %v3807_v5 }
 0x371   :  { %9078 = vst [vmem:[#allocation5_spill] sm:$0xff] %v8286_v45  ;;  %v3616_v6 = vmul.f32 0.015625, %v3440_v29  ;;  %v3617_v36 = vmul.f32 0.015625, %v3443_v41  ;;  %v3742_v28 = vmul.f32 %v8283_v0, %v8283_v0  ;;  %v3743_v58 = vmul.f32 %v8286_v45, %v8286_v45 }
 0x373   :  { %v8296_v42 = vsub.f32 %v7965_v59, %v3616_v6  ;;  %v8299_v27 = vsub.f32 %v7978_v4, %v3617_v36  ;;  %v3816_v37 = vsel %vm3416_vm0, %v3742_v28, 0.0  ;;  %v3819_v45 = vsel %vm3416_vm0, %v3743_v58, 0.0 }
 0x374   :  { %v3446_v50 = vpop.xlane.xlu0 %3445  ;;  %v3449_v5 = vpop.xlane.xlu1 %3448  ;;  %3817 = vadd.xlane.f32.xlu0 %v3816_v37  ;;  %3814 = vadd.xlane.f32.xlu1 %v3813_v56 }
 0x375   :  { %v3618_v29 = vmul.f32 0.015625, %v3446_v50  ;;  %v3619_v41 = vmul.f32 0.015625, %v3449_v5  ;;  %v3744_v1 = vmul.f32 %v8296_v42, %v8296_v42  ;;  %v3745_v19 = vmul.f32 %v8299_v27, %v8299_v27 }
 0x377   :  { %v8307_v59 = vsub.f32 %v7975_v61, %v3618_v29  ;;  %v8310_v4 = vsub.f32 %v7988_v55, %v3619_v41  ;;  %v3822_v6 = vsel %vm3416_vm0, %v3744_v1, 0.0  ;;  %v3825_v5 = vsel %vm3416_vm0, %v3745_v19, 0.0 }
 0x378   :  { %v3452_v36 = vpop.xlane.xlu0 %3451  ;;  %v3455_v28 = vpop.xlane.xlu1 %3454  ;;  %3823 = vadd.xlane.f32.xlu0 %v3822_v6  ;;  %3820 = vadd.xlane.f32.xlu1 %v3819_v45 }
 0x379   :  { %v3620_v37 = vmul.f32 0.015625, %v3452_v36  ;;  %v3621_v56 = vmul.f32 0.015625, %v3455_v28  ;;  %v3746_v58 = vmul.f32 %v8307_v59, %v8307_v59  ;;  %v3747_v61 = vmul.f32 %v8310_v4, %v8310_v4 }
 0x37b   :  { %v8320_v55 = vsub.f32 %v7985_v10, %v3620_v37  ;;  %v8323_v1 = vsub.f32 %v7998_v9, %v3621_v56  ;;  %v3828_v50 = vsel %vm3416_vm0, %v3746_v58, 0.0  ;;  %v3831_v28 = vsel %vm3416_vm0, %v3747_v61, 0.0 }
 0x37c   :  { %v3458_v29 = vpop.xlane.xlu0 %3457  ;;  %v3461_v45 = vpop.xlane.xlu1 %3460  ;;  %3829 = vadd.xlane.f32.xlu0 %v3828_v50  ;;  %3826 = vadd.xlane.f32.xlu1 %v3825_v5 }
 0x37d   :  { %v3622_v41 = vmul.f32 0.015625, %v3458_v29  ;;  %v3623_v6 = vmul.f32 0.015625, %v3461_v45  ;;  %v3748_v36 = vmul.f32 %v8320_v55, %v8320_v55  ;;  %v3749_v19 = vmul.f32 %v8323_v1, %v8323_v1 }
 0x37f   :  { %v8331_v10 = vsub.f32 %v7995_v63, %v3622_v41  ;;  %v8334_v9 = vsub.f32 %v8008_v57, %v3623_v6  ;;  %v3834_v37 = vsel %vm3416_vm0, %v3748_v36, 0.0  ;;  %v3837_v41 = vsel %vm3416_vm0, %v3749_v19, 0.0 }
 0x380   :  { %v3464_v56 = vpop.xlane.xlu0 %3463  ;;  %v3467_v58 = vpop.xlane.xlu1 %3466  ;;  %3835 = vadd.xlane.f32.xlu0 %v3834_v37  ;;  %3832 = vadd.xlane.f32.xlu1 %v3831_v28 }
 0x381   :  { %v3624_v50 = vmul.f32 0.015625, %v3464_v56  ;;  %v3625_v5 = vmul.f32 0.015625, %v3467_v58  ;;  %v3750_v61 = vmul.f32 %v8331_v10, %v8331_v10  ;;  %v3751_v63 = vmul.f32 %v8334_v9, %v8334_v9 }
 0x383   :  { %v8344_v57 = vsub.f32 %v8005_v53, %v3624_v50  ;;  %v8347_v29 = vsub.f32 %v8018_v15, %v3625_v5  ;;  %v3840_v45 = vsel %vm3416_vm0, %v3750_v61, 0.0  ;;  %v3843_v58 = vsel %vm3416_vm0, %v3751_v63, 0.0 }
 0x384   :  { %v3470_v6 = vpop.xlane.xlu0 %3469  ;;  %v3473_v36 = vpop.xlane.xlu1 %3472  ;;  %3841 = vadd.xlane.f32.xlu0 %v3840_v45  ;;  %3838 = vadd.xlane.f32.xlu1 %v3837_v41 }
 0x385   :  { %v3626_v28 = vmul.f32 0.015625, %v3470_v6  ;;  %v3627_v37 = vmul.f32 0.015625, %v3473_v36  ;;  %v3752_v56 = vmul.f32 %v8344_v57, %v8344_v57  ;;  %v3753_v19 = vmul.f32 %v8347_v29, %v8347_v29 }
 0x387   :  { %v8355_v53 = vsub.f32 %v8015_v39, %v3626_v28  ;;  %v8358_v15 = vsub.f32 %v8028_v54, %v3627_v37  ;;  %v3846_v50 = vsel %vm3416_vm0, %v3752_v56, 0.0  ;;  %v3849_v28 = vsel %vm3416_vm0, %v3753_v19, 0.0 }
 0x388   :  { %v3476_v5 = vpop.xlane.xlu0 %3475  ;;  %v3479_v61 = vpop.xlane.xlu1 %3478  ;;  %3847 = vadd.xlane.f32.xlu0 %v3846_v50  ;;  %3844 = vadd.xlane.f32.xlu1 %v3843_v58 }
 0x389   :  { %v3628_v45 = vmul.f32 0.015625, %v3476_v5  ;;  %v3629_v41 = vmul.f32 0.015625, %v3479_v61  ;;  %v3754_v63 = vmul.f32 %v8355_v53, %v8355_v53  ;;  %v3755_v39 = vmul.f32 %v8358_v15, %v8358_v15 }
 0x38b   :  { %v8368_v54 = vsub.f32 %v8025_v18, %v3628_v45  ;;  %v8371_v6 = vsub.f32 %v8038_v49, %v3629_v41  ;;  %v3852_v36 = vsel %vm3416_vm0, %v3754_v63, 0.0  ;;  %v3855_v61 = vsel %vm3416_vm0, %v3755_v39, 0.0 }
 0x38c   :  { %v3482_v37 = vpop.xlane.xlu0 %3481  ;;  %v3485_v56 = vpop.xlane.xlu1 %3484  ;;  %3853 = vadd.xlane.f32.xlu0 %v3852_v36  ;;  %3850 = vadd.xlane.f32.xlu1 %v3849_v28 }
 0x38d   :  { %v3630_v58 = vmul.f32 0.015625, %v3482_v37  ;;  %v3631_v50 = vmul.f32 0.015625, %v3485_v56  ;;  %v3756_v5 = vmul.f32 %v8368_v54, %v8368_v54  ;;  %v3757_v19 = vmul.f32 %v8371_v6, %v8371_v6 }
 0x38f   :  { %v8379_v18 = vsub.f32 %v8035_v31, %v3630_v58  ;;  %v8382_v49 = vsub.f32 %v8048_v24, %v3631_v50  ;;  %v3858_v45 = vsel %vm3416_vm0, %v3756_v5, 0.0  ;;  %v3861_v58 = vsel %vm3416_vm0, %v3757_v19, 0.0 }
 0x390   :  { %v3488_v41 = vpop.xlane.xlu0 %3487  ;;  %v3491_v63 = vpop.xlane.xlu1 %3490  ;;  %3859 = vadd.xlane.f32.xlu0 %v3858_v45  ;;  %3856 = vadd.xlane.f32.xlu1 %v3855_v61 }
 0x391   :  { %v3632_v36 = vmul.f32 0.015625, %v3488_v41  ;;  %v3633_v28 = vmul.f32 0.015625, %v3491_v63  ;;  %v3758_v39 = vmul.f32 %v8379_v18, %v8379_v18  ;;  %v3759_v31 = vmul.f32 %v8382_v49, %v8382_v49 }
 0x393   :  { %v8392_v24 = vsub.f32 %v8045_v32, %v3632_v36  ;;  %v8395_v37 = vsub.f32 %v8058_v2, %v3633_v28  ;;  %v3864_v56 = vsel %vm3416_vm0, %v3758_v39, 0.0  ;;  %v3867_v63 = vsel %vm3416_vm0, %v3759_v31, 0.0 }
 0x394   :  { %v3494_v50 = vpop.xlane.xlu0 %3493  ;;  %v3497_v5 = vpop.xlane.xlu1 %3496  ;;  %3865 = vadd.xlane.f32.xlu0 %v3864_v56  ;;  %3862 = vadd.xlane.f32.xlu1 %v3861_v58 }
 0x395   :  { %v3634_v61 = vmul.f32 0.015625, %v3494_v50  ;;  %v3635_v45 = vmul.f32 0.015625, %v3497_v5  ;;  %v3760_v41 = vmul.f32 %v8392_v24, %v8392_v24  ;;  %v3761_v19 = vmul.f32 %v8395_v37, %v8395_v37 }
 0x397   :  { %v8403_v32 = vsub.f32 %v8055_v20, %v3634_v61  ;;  %v8406_v2 = vsub.f32 %v8068_v44, %v3635_v45  ;;  %v3870_v36 = vsel %vm3416_vm0, %v3760_v41, 0.0  ;;  %v3873_v61 = vsel %vm3416_vm0, %v3761_v19, 0.0 }
 0x398   :  { %v3500_v28 = vpop.xlane.xlu0 %3499  ;;  %v3503_v39 = vpop.xlane.xlu1 %3502  ;;  %3871 = vadd.xlane.f32.xlu0 %v3870_v36  ;;  %3868 = vadd.xlane.f32.xlu1 %v3867_v63 }
 0x399   :  { %v3636_v56 = vmul.f32 0.015625, %v3500_v28  ;;  %v3637_v58 = vmul.f32 0.015625, %v3503_v39  ;;  %v3762_v31 = vmul.f32 %v8403_v32, %v8403_v32  ;;  %v3763_v20 = vmul.f32 %v8406_v2, %v8406_v2 }
 0x39b   :  { %v8416_v44 = vsub.f32 %v8065_v14, %v3636_v56  ;;  %v8419_v50 = vsub.f32 %v8078_v26, %v3637_v58  ;;  %v3876_v5 = vsel %vm3416_vm0, %v3762_v31, 0.0  ;;  %v3879_v39 = vsel %vm3416_vm0, %v3763_v20, 0.0 }
 0x39c   :  { %v3506_v45 = vpop.xlane.xlu0 %3505  ;;  %v3509_v41 = vpop.xlane.xlu1 %3508  ;;  %3877 = vadd.xlane.f32.xlu0 %v3876_v5  ;;  %3874 = vadd.xlane.f32.xlu1 %v3873_v61 }
 0x39d   :  { %v3638_v63 = vmul.f32 0.015625, %v3506_v45  ;;  %v3639_v36 = vmul.f32 0.015625, %v3509_v41  ;;  %v3764_v28 = vmul.f32 %v8416_v44, %v8416_v44  ;;  %v3765_v19 = vmul.f32 %v8419_v50, %v8419_v50 }
 0x39f   :  { %v8427_v14 = vsub.f32 %v8075_v60, %v3638_v63  ;;  %v8430_v26 = vsub.f32 %v8088_v3, %v3639_v36  ;;  %v3882_v56 = vsel %vm3416_vm0, %v3764_v28, 0.0  ;;  %v3885_v63 = vsel %vm3416_vm0, %v3765_v19, 0.0 }
 0x3a0   :  { %v3512_v58 = vpop.xlane.xlu0 %3511  ;;  %v3515_v31 = vpop.xlane.xlu1 %3514  ;;  %3883 = vadd.xlane.f32.xlu0 %v3882_v56  ;;  %3880 = vadd.xlane.f32.xlu1 %v3879_v39 }
 0x3a1   :  { %v3640_v5 = vmul.f32 0.015625, %v3512_v58  ;;  %v3641_v61 = vmul.f32 0.015625, %v3515_v31  ;;  %v3766_v20 = vmul.f32 %v8427_v14, %v8427_v14  ;;  %v3767_v60 = vmul.f32 %v8430_v26, %v8430_v26 }
 0x3a3   :  { %v8440_v3 = vsub.f32 %v8085_v62, %v3640_v5  ;;  %v8443_v45 = vsub.f32 %v8098_v34, %v3641_v61  ;;  %v3888_v41 = vsel %vm3416_vm0, %v3766_v20, 0.0  ;;  %v3891_v31 = vsel %vm3416_vm0, %v3767_v60, 0.0 }
 0x3a4   :  { %v3518_v36 = vpop.xlane.xlu0 %3517  ;;  %v3521_v28 = vpop.xlane.xlu1 %3520  ;;  %3889 = vadd.xlane.f32.xlu0 %v3888_v41  ;;  %3886 = vadd.xlane.f32.xlu1 %v3885_v63 }
 0x3a5   :  { %v3642_v39 = vmul.f32 0.015625, %v3518_v36  ;;  %v3643_v56 = vmul.f32 0.015625, %v3521_v28  ;;  %v3768_v58 = vmul.f32 %v8440_v3, %v8440_v3  ;;  %v3769_v19 = vmul.f32 %v8443_v45, %v8443_v45 }
 0x3a7   :  { %v8451_v62 = vsub.f32 %v8095_v16, %v3642_v39  ;;  %v8454_v34 = vsub.f32 %v8108_v12, %v3643_v56  ;;  %v3894_v5 = vsel %vm3416_vm0, %v3768_v58, 0.0  ;;  %v3897_v39 = vsel %vm3416_vm0, %v3769_v19, 0.0 }
 0x3a8   :  { %v3524_v61 = vpop.xlane.xlu0 %3523  ;;  %v3527_v20 = vpop.xlane.xlu1 %3526  ;;  %3895 = vadd.xlane.f32.xlu0 %v3894_v5  ;;  %3892 = vadd.xlane.f32.xlu1 %v3891_v31 }
 0x3a9   :  { %v3644_v41 = vmul.f32 0.015625, %v3524_v61  ;;  %v3645_v63 = vmul.f32 0.015625, %v3527_v20  ;;  %v3770_v60 = vmul.f32 %v8451_v62, %v8451_v62  ;;  %v3771_v16 = vmul.f32 %v8454_v34, %v8454_v34 }
 0x3ab   :  { %v8464_v12 = vsub.f32 %v8105_v23, %v3644_v41  ;;  %v8467_v36 = vsub.f32 %v8118_v43, %v3645_v63  ;;  %v3900_v28 = vsel %vm3416_vm0, %v3770_v60, 0.0  ;;  %v3903_v20 = vsel %vm3416_vm0, %v3771_v16, 0.0 }
 0x3ac   :  { %v3530_v56 = vpop.xlane.xlu0 %3529  ;;  %v3533_v58 = vpop.xlane.xlu1 %3532  ;;  %3901 = vadd.xlane.f32.xlu0 %v3900_v28  ;;  %3898 = vadd.xlane.f32.xlu1 %v3897_v39 }
 0x3ad   :  { %v3646_v31 = vmul.f32 0.015625, %v3530_v56  ;;  %v3647_v5 = vmul.f32 0.015625, %v3533_v58  ;;  %v3772_v61 = vmul.f32 %v8464_v12, %v8464_v12  ;;  %v3773_v19 = vmul.f32 %v8467_v36, %v8467_v36 }
 0x3af   :  { %v8475_v23 = vsub.f32 %v8115_v21, %v3646_v31  ;;  %v8478_v43 = vsub.f32 %v8128_v11, %v3647_v5  ;;  %v3906_v41 = vsel %vm3416_vm0, %v3772_v61, 0.0  ;;  %v3909_v31 = vsel %vm3416_vm0, %v3773_v19, 0.0 }
 0x3b0   :  { %v3536_v63 = vpop.xlane.xlu0 %3535  ;;  %v3539_v60 = vpop.xlane.xlu1 %3538  ;;  %3907 = vadd.xlane.f32.xlu0 %v3906_v41  ;;  %3904 = vadd.xlane.f32.xlu1 %v3903_v20 }
 0x3b1   :  { %9079 = vst [vmem:[#allocation9_spill] sm:$0xff] %v8478_v43  ;;  %v3648_v28 = vmul.f32 0.015625, %v3536_v63  ;;  %v3649_v39 = vmul.f32 0.015625, %v3539_v60  ;;  %v3774_v16 = vmul.f32 %v8475_v23, %v8475_v23  ;;  %v3775_v21 = vmul.f32 %v8478_v43, %v8478_v43 }
 0x3b3   :  { %v8488_v11 = vsub.f32 %v8125_v47, %v3648_v28  ;;  %v8491_v56 = vsub.f32 %v8138_v51, %v3649_v39  ;;  %v3912_v58 = vsel %vm3416_vm0, %v3774_v16, 0.0  ;;  %v3915_v60 = vsel %vm3416_vm0, %v3775_v21, 0.0  ;;  %v9081_v47 = vld [vmem:[#allocation18_spill] sm:$0xff]  ;;  %v9083_v51 = vld [vmem:[#allocation23_spill] sm:$0xff] }
 0x3b4   :  { %v3542_v5 = vpop.xlane.xlu0 %3541  ;;  %v3545_v61 = vpop.xlane.xlu1 %3544  ;;  %3913 = vadd.xlane.f32.xlu0 %v3912_v58  ;;  %3910 = vadd.xlane.f32.xlu1 %v3909_v31 }
 0x3b5   :  { %9080 = vst [vmem:[#allocation7_spill] sm:$0xff] %v8491_v56  ;;  %v3650_v20 = vmul.f32 0.015625, %v3542_v5  ;;  %v3651_v41 = vmul.f32 0.015625, %v3545_v61  ;;  %v3776_v63 = vmul.f32 %v8488_v11, %v8488_v11  ;;  %v3777_v19 = vmul.f32 %v8491_v56, %v8491_v56 }
 0x3b7   :  { %v8499_v28 = vsub.f32 %v9081_v47, %v3650_v20  ;;  %v8502_v39 = vsub.f32 %v9083_v51, %v3651_v41  ;;  %v3918_v16 = vsel %vm3416_vm0, %v3776_v63, 0.0  ;;  %v9085_v47 = vld [vmem:[#allocation20_spill] sm:$0xff]  ;;  %v9086_v51 = vld [vmem:[#allocation22_spill] sm:$0xff]  ;;  %v3921_v43 = vsel %vm3416_vm0, %v3777_v19, 0.0 }
 0x3b8   :  { %v3548_v58 = vpop.xlane.xlu0 %3547  ;;  %v3551_v31 = vpop.xlane.xlu1 %3550  ;;  %3919 = vadd.xlane.f32.xlu0 %v3918_v16  ;;  %3916 = vadd.xlane.f32.xlu1 %v3915_v60 }
 0x3b9   :  { %9082 = vst [vmem:[#allocation8_spill] sm:$0xff] %v8499_v28  ;;  %9084 = vst [vmem:[#allocation6_spill] sm:$0xff] %v8502_v39  ;;  %v3652_v5 = vmul.f32 0.015625, %v3548_v58  ;;  %v3653_v61 = vmul.f32 0.015625, %v3551_v31  ;;  %v3778_v21 = vmul.f32 %v8499_v28, %v8499_v28  ;;  %v3779_v20 = vmul.f32 %v8502_v39, %v8502_v39 }
 0x3bb   :  { %v8512_v41 = vsub.f32 %v9085_v47, %v3652_v5  ;;  %v8515_v63 = vsub.f32 %v9086_v51, %v3653_v61  ;;  %v3924_v56 = vsel %vm3416_vm0, %v3778_v21, 0.0  ;;  %v3927_v39 = vsel %vm3416_vm0, %v3779_v20, 0.0  ;;  %v9088_v5 = vld [vmem:[#allocation25_spill] sm:$0xff]  ;;  %v9090_v61 = vld [vmem:[#allocation24_spill] sm:$0xff] }
 0x3bc   :  { %v3554_v16 = vpop.xlane.xlu0 %3553  ;;  %v3557_v60 = vpop.xlane.xlu1 %3556  ;;  %3925 = vadd.xlane.f32.xlu0 %v3924_v56  ;;  %3922 = vadd.xlane.f32.xlu1 %v3921_v43 }
 0x3bd   :  { %9087 = vst [vmem:[#allocation13_spill] sm:$0xff] %v8515_v63  ;;  %v3654_v58 = vmul.f32 0.015625, %v3554_v16  ;;  %v3655_v31 = vmul.f32 0.015625, %v3557_v60  ;;  %v3780_v28 = vmul.f32 %v8512_v41, %v8512_v41  ;;  %v3781_v19 = vmul.f32 %v8515_v63, %v8515_v63 }
 0x3bf   :  { %v8523_v47 = vsub.f32 %v9088_v5, %v3654_v58  ;;  %v8526_v51 = vsub.f32 %v9090_v61, %v3655_v31  ;;  %v3930_v21 = vsel %vm3416_vm0, %v3780_v28, 0.0  ;;  %v9092_v5 = vld [vmem:[#allocation27_spill] sm:$0xff]  ;;  %v3933_v63 = vsel %vm3416_vm0, %v3781_v19, 0.0 }
 0x3c0   :  { %v3560_v56 = vpop.xlane.xlu0 %3559  ;;  %v3563_v43 = vpop.xlane.xlu1 %3562  ;;  %3931 = vadd.xlane.f32.xlu0 %v3930_v21  ;;  %3928 = vadd.xlane.f32.xlu1 %v3927_v39 }
 0x3c1   :  { %9089 = vst [vmem:[#allocation11_spill] sm:$0xff] %v8523_v47  ;;  %9091 = vst [vmem:[#allocation12_spill] sm:$0xff] %v8526_v51  ;;  %v3656_v16 = vmul.f32 0.015625, %v3560_v56  ;;  %v3657_v60 = vmul.f32 0.015625, %v3563_v43  ;;  %v3782_v20 = vmul.f32 %v8523_v47, %v8523_v47  ;;  %v3783_v58 = vmul.f32 %v8526_v51, %v8526_v51 }
 0x3c3   :  { %v8536_v31 = vsub.f32 %v8165_v22, %v3656_v16  ;;  %v8539_v28 = vsub.f32 %v9092_v5, %v3657_v60  ;;  %v3936_v61 = vsel %vm3416_vm0, %v3782_v20, 0.0  ;;  %v3939_v51 = vsel %vm3416_vm0, %v3783_v58, 0.0  ;;  %v9095_v16 = vld [vmem:[#allocation26_spill] sm:$0xff] }
 0x3c4   :  { %v3566_v21 = vpop.xlane.xlu0 %3565  ;;  %v3569_v39 = vpop.xlane.xlu1 %3568  ;;  %3937 = vadd.xlane.f32.xlu0 %v3936_v61  ;;  %3934 = vadd.xlane.f32.xlu1 %v3933_v63 }
 0x3c5   :  { %9093 = vst [vmem:[#allocation10_spill] sm:$0xff] %v8539_v28  ;;  %v3658_v56 = vmul.f32 0.015625, %v3566_v21  ;;  %v3659_v43 = vmul.f32 0.015625, %v3569_v39  ;;  %v3784_v47 = vmul.f32 %v8536_v31, %v8536_v31  ;;  %v3785_v19 = vmul.f32 %v8539_v28, %v8539_v28  ;;  %v9097_v39 = vld [vmem:[#allocation29_spill] sm:$0xff] }
 0x3c7   :  { %v8547_v22 = vsub.f32 %v8175_v46, %v3658_v56  ;;  %v8550_v60 = vsub.f32 %v9095_v16, %v3659_v43  ;;  %v3942_v20 = vsel %vm3416_vm0, %v3784_v47, 0.0  ;;  %v9098_v43 = vld [vmem:[#allocation28_spill] sm:$0xff]  ;;  %v3945_v28 = vsel %vm3416_vm0, %v3785_v19, 0.0 }
 0x3c8   :  { %v3572_v5 = vpop.xlane.xlu0 %3571  ;;  %v3575_v63 = vpop.xlane.xlu1 %3574  ;;  %3943 = vadd.xlane.f32.xlu0 %v3942_v20  ;;  %3940 = vadd.xlane.f32.xlu1 %v3939_v51 }
 0x3c9   :  { %9094 = vst [vmem:[#allocation17_spill] sm:$0xff] %v8547_v22  ;;  %9096 = vst [vmem:[#allocation15_spill] sm:$0xff] %v8550_v60  ;;  %v3660_v61 = vmul.f32 0.015625, %v3572_v5  ;;  %v3661_v21 = vmul.f32 0.015625, %v3575_v63  ;;  %v3786_v58 = vmul.f32 %v8547_v22, %v8547_v22  ;;  %v3787_v46 = vmul.f32 %v8550_v60, %v8550_v60 }
 0x3cb   :  { %v8560_v56 = vsub.f32 %v9097_v39, %v3660_v61  ;;  %v8563_v47 = vsub.f32 %v9098_v43, %v3661_v21  ;;  %v3948_v16 = vsel %vm3416_vm0, %v3786_v58, 0.0  ;;  %v3951_v60 = vsel %vm3416_vm0, %v3787_v46, 0.0  ;;  %v9099_v21 = vld [vmem:[#allocation31_spill] sm:$0xff] }
 0x3cc   :  { %v3578_v20 = vpop.xlane.xlu0 %3577  ;;  %v3581_v51 = vpop.xlane.xlu1 %3580  ;;  %3949 = vadd.xlane.f32.xlu0 %v3948_v16  ;;  %3946 = vadd.xlane.f32.xlu1 %v3945_v28 }
 0x3cd   :  { %v3662_v5 = vmul.f32 0.015625, %v3578_v20  ;;  %v3663_v63 = vmul.f32 0.015625, %v3581_v51  ;;  %v3788_v22 = vmul.f32 %v8560_v56, %v8560_v56  ;;  %v3789_v19 = vmul.f32 %v8563_v47, %v8563_v47 }
 0x3cf   :  { %v8571_v61 = vsub.f32 %v8195_v25, %v3662_v5  ;;  %v8574_v39 = vsub.f32 %v9099_v21, %v3663_v63  ;;  %v3954_v58 = vsel %vm3416_vm0, %v3788_v22, 0.0  ;;  %v3957_v63 = vsel %vm3416_vm0, %v3789_v19, 0.0 }
 0x3d0   :  { %v3584_v43 = vpop.xlane.xlu0 %3583  ;;  %v3587_v28 = vpop.xlane.xlu1 %3586  ;;  %3955 = vadd.xlane.f32.xlu0 %v3954_v58  ;;  %3952 = vadd.xlane.f32.xlu1 %v3951_v60 }
 0x3d1   :  { %9100 = vst [vmem:[#allocation14_spill] sm:$0xff] %v8574_v39  ;;  %v3664_v16 = vmul.f32 0.015625, %v3584_v43  ;;  %v3665_v20 = vmul.f32 0.015625, %v3587_v28  ;;  %v3790_v46 = vmul.f32 %v8571_v61, %v8571_v61  ;;  %v3791_v25 = vmul.f32 %v8574_v39, %v8574_v39 }
 0x3d3   :  { %v8584_v51 = vsub.f32 %v8205_v48, %v3664_v16  ;;  %v8587_v22 = vsub.f32 %v8218_v8, %v3665_v20  ;;  %v3960_v5 = vsel %vm3416_vm0, %v3790_v46, 0.0  ;;  %v3963_v39 = vsel %vm3416_vm0, %v3791_v25, 0.0 }
 0x3d4   :  { %v3590_v21 = vpop.xlane.xlu0 %3589  ;;  %v3593_v60 = vpop.xlane.xlu1 %3592  ;;  %3961 = vadd.xlane.f32.xlu0 %v3960_v5  ;;  %3958 = vadd.xlane.f32.xlu1 %v3957_v63 }
 0x3d5   :  { %v3666_v58 = vmul.f32 0.015625, %v3590_v21  ;;  %v3667_v43 = vmul.f32 0.015625, %v3593_v60  ;;  %v3792_v28 = vmul.f32 %v8584_v51, %v8584_v51  ;;  %v3793_v19 = vmul.f32 %v8587_v22, %v8587_v22 }
 0x3d7   :  { %v8595_v48 = vsub.f32 %v8215_v35, %v3666_v58  ;;  %v8598_v8 = vsub.f32 %v8228_v33, %v3667_v43  ;;  %v3966_v16 = vsel %vm3416_vm0, %v3792_v28, 0.0  ;;  %v3969_v58 = vsel %vm3416_vm0, %v3793_v19, 0.0 }
 0x3d8   :  { %v3596_v20 = vpop.xlane.xlu0 %3595  ;;  %3967 = vadd.xlane.f32.xlu0 %v3966_v16  ;;  %3964 = vadd.xlane.f32.xlu1 %v3963_v39  ;;  %v3599_v46 = vpop.xlane.xlu1 %3598 }
 0x3d9   :  { %9101 = vst [vmem:[#allocation16_spill] sm:$0xff] %v8598_v8  ;;  %v3668_v5 = vmul.f32 0.015625, %v3596_v20  ;;  %v3669_v63 = vmul.f32 0.015625, %v3599_v46  ;;  %v3794_v25 = vmul.f32 %v8595_v48, %v8595_v48  ;;  %v3795_v35 = vmul.f32 %v8598_v8, %v8598_v8 }
 0x3db   :  { %v8608_v33 = vsub.f32 %v8225_v38, %v3668_v5  ;;  %v8611_v21 = vsub.f32 %v8238_v7, %v3669_v63  ;;  %v3972_v60 = vsel %vm3416_vm0, %v3794_v25, 0.0  ;;  %v3975_v46 = vsel %vm3416_vm0, %v3795_v35, 0.0 }
 0x3dc   :  { %3973 = vadd.xlane.f32.xlu0 %v3972_v60  ;;  %v3602_v39 = vpop.xlane.xlu0 %3601  ;;  %3970 = vadd.xlane.f32.xlu1 %v3969_v58  ;;  %v3605_v43 = vpop.xlane.xlu1 %3604 }
 0x3dd   :  { %9102 = vst [vmem:[#allocation21_spill] sm:$0xff] %v8611_v21  ;;  %v3670_v28 = vmul.f32 0.015625, %v3602_v39  ;;  %v3671_v16 = vmul.f32 0.015625, %v3605_v43  ;;  %v3796_v20 = vmul.f32 %v8608_v33, %v8608_v33  ;;  %v3797_v19 = vmul.f32 %v8611_v21, %v8611_v21 }
 0x3df   :  { %v8619_v38 = vsub.f32 %v8235_v13, %v3670_v28  ;;  %v8622_v7 = vsub.f32 %v8248_v40, %v3671_v16  ;;  %v3978_v5 = vsel %vm3416_vm0, %v3796_v20, 0.0  ;;  %v3981_v40 = vsel %vm3416_vm0, %v3797_v19, 0.0 }
 0x3e0   :  { %3979 = vadd.xlane.f32.xlu0 %v3978_v5  ;;  %v3608_v63 = vpop.xlane.xlu0 %3607  ;;  %3976 = vadd.xlane.f32.xlu1 %v3975_v46 }
 0x3e1   :  { %9103 = vst [vmem:[#allocation19_spill] sm:$0xff] %v8619_v38  ;;  %9104 = vst [vmem:[#allocation18_spill] sm:$0xff] %v8622_v7  ;;  %v3672_v25 = vmul.f32 0.015625, %v3608_v63  ;;  %v3798_v60 = vmul.f32 %v8619_v38, %v8619_v38  ;;  %v3799_v58 = vmul.f32 %v8622_v7, %v8622_v7 }
 0x3e3   :  { %v8630_v35 = vsub.f32 %v8245_v52, %v3672_v25  ;;  %v3984_v13 = vsel %vm3416_vm0, %v3798_v60, 0.0  ;;  %v3987_v28 = vsel %vm3416_vm0, %v3799_v58, 0.0 }
 0x3e4   :  { %3985 = vadd.xlane.f32.xlu0 %v3984_v13  ;;  %3982 = vadd.xlane.f32.xlu1 %v3981_v40 }
 0x3e5   :  { %9105 = vst [vmem:[#allocation23_spill] sm:$0xff] %v8630_v35  ;;  %v3800_v39 = vmul.f32 %v8630_v35, %v8630_v35 }
 0x3e7   :  { %v3990_v43 = vsel %vm3416_vm0, %v3800_v39, 0.0 }
 0x3e8   :  { %3991 = vadd.xlane.f32.xlu0 %v3990_v43  ;;  %3988 = vadd.xlane.f32.xlu1 %v3987_v28 }
 0x3f4   :  { %v3806_v52 = vpop.xlane.xlu0 %3805 }
 0x3f5   :  { %v3994_v16 = vmul.f32 0.015625, %v3806_v52  ;;  %v3803_v20 = vpop.xlane.xlu1 %3802  ;;  %v8643_v52 = vld [vmem:[%s8915_s7] ss:$0 sm:$0xff] }
 0x3f6   :  { %v3993_v46 = vmul.f32 0.015625, %v3803_v20  ;;  %v9106_v20 = vld [vmem:[#allocation33_spill] sm:$0xff] }
 0x3f7   :  { %v4058_v5 = vadd.f32 1e-05, %v3994_v16 }
 0x3f8   :  { %v4057_v19 = vadd.f32 1e-05, %v3993_v46 }
 0x3f9   :  { %5506 = vrsqrt.f32 %v4058_v5  ;;  %v3812_v63 = vpop.xlane.xlu0 %3811 }
 0x3fa   :  { %5508 = vrsqrt.f32 %v4057_v19  ;;  %v3996_v25 = vmul.f32 0.015625, %v3812_v63  ;;  %v8649_v63 = vld [vmem:[%s8916_s8] ss:$0 sm:$0xff] }
 0x3fc   :  { %v4060_v60 = vadd.f32 1e-05, %v3996_v25  ;;  %v9107_v25 = vld [vmem:[#allocation30_spill] sm:$0xff] }
 0x3fd   :  { %v3809_v13 = vpop.xlane.xlu1 %3808 }
 0x3fe   :  { %5510 = vrsqrt.f32 %v4060_v60  ;;  %v3995_v40 = vmul.f32 0.015625, %v3809_v13 }
 0x400   :  { %v4059_v7 = vadd.f32 1e-05, %v3995_v40 }
 0x401   :  { %v3818_v39 = vpop.xlane.xlu0 %3817  ;;  %v3815_v35 = vpop.xlane.xlu1 %3814 }
 0x402   :  { %5512 = vrsqrt.f32 %v4059_v7  ;;  %v3998_v58 = vmul.f32 0.015625, %v3818_v39  ;;  %v3997_v43 = vmul.f32 0.015625, %v3815_v35 }
 0x403   :  { %v5507_v28 = vpop.eup %5506 }
 0x404   :  { %v5509_v16 = vpop.eup %5508  ;;  %v4186_v46 = vmul.f32 %v5507_v28, %v9106_v20  ;;  %v4062_v5 = vadd.f32 1e-05, %v3998_v58  ;;  %v4061_v19 = vadd.f32 1e-05, %v3997_v43 }
 0x405   :  { %v4185_v7 = vmul.f32 %v5509_v16, %v9107_v25  ;;  %v3824_v60 = vpop.xlane.xlu0 %3823  ;;  %v3821_v35 = vpop.xlane.xlu1 %3820 }
 0x406   :  { %v4257_v13 = vmul.f32 %v8643_v52, %v4186_v46  ;;  %5514 = vrsqrt.f32 %v4062_v5  ;;  %v4000_v40 = vmul.f32 0.015625, %v3824_v60  ;;  %v3999_v39 = vmul.f32 0.015625, %v3821_v35 }
 0x407   :  { %v4256_v21 = vmul.f32 %v8643_v52, %v4185_v7  ;;  %5516 = vrsqrt.f32 %v4061_v19 }
 0x408   :  { %v5511_v28 = vpop.eup %5510  ;;  %v4328_v58 = vadd.f32 %v8649_v63, %v4257_v13  ;;  %v4064_v43 = vadd.f32 1e-05, %v4000_v40  ;;  %v4063_v20 = vadd.f32 1e-05, %v3999_v39 }
 0x409   :  { %v4327_v38 = vadd.f32 %v8649_v63, %v4256_v21  ;;  %v4188_v8 = vmul.f32 %v5511_v28, %v8268_v17  ;;  %v3830_v16 = vpop.xlane.xlu0 %3829  ;;  %v3827_v25 = vpop.xlane.xlu1 %3826 }
 0x40a   :  { %4392 = vst.msk [vmem:[#allocation2 + $0x8] sm:$0xff] %vm3416_vm0, %v4328_v58  ;;  %5518 = vrsqrt.f32 %v4064_v43  ;;  %v4002_v46 = vmul.f32 0.015625, %v3830_v16  ;;  %v4001_v5 = vmul.f32 0.015625, %v3827_v25 }
 0x40b   :  { %4391 = vst.msk [vmem:[#allocation2] sm:$0xff] %vm3416_vm0, %v4327_v38  ;;  %v4259_v19 = vmul.f32 %v8643_v52, %v4188_v8  ;;  %5520 = vrsqrt.f32 %v4063_v20 }
 0x40c   :  { %v5513_v7 = vpop.eup %5512  ;;  %v4066_v60 = vadd.f32 1e-05, %v4002_v46  ;;  %v4065_v35 = vadd.f32 1e-05, %v4001_v5  ;;  %v9108_v5 = vld [vmem:[#allocation32_spill] sm:$0xff] }
 0x40d   :  { %v4330_v13 = vadd.f32 %v8649_v63, %v4259_v19  ;;  %v4187_v21 = vmul.f32 %v5513_v7, %v8274_v30  ;;  %v3836_v17 = vpop.xlane.xlu0 %3835  ;;  %v3833_v40 = vpop.xlane.xlu1 %3832 }
 0x40e   :  { %5522 = vrsqrt.f32 %v4066_v60  ;;  %v4004_v39 = vmul.f32 0.015625, %v3836_v17  ;;  %v4003_v28 = vmul.f32 0.015625, %v3833_v40 }
 0x40f   :  { %4394 = vst.msk [vmem:[#allocation2 + $0x18] sm:$0xff] %vm3416_vm0, %v4330_v13  ;;  %v4258_v58 = vmul.f32 %v8643_v52, %v4187_v21  ;;  %5524 = vrsqrt.f32 %v4065_v35 }
 0x410   :  { %v5515_v38 = vpop.eup %5514  ;;  %v4068_v8 = vadd.f32 1e-05, %v4004_v39  ;;  %v4067_v43 = vadd.f32 1e-05, %v4003_v28 }
 0x411   :  { %v5517_v20 = vpop.eup %5516  ;;  %v4329_v16 = vadd.f32 %v8649_v63, %v4258_v58  ;;  %v4190_v25 = vmul.f32 %v5515_v38, %v8283_v0  ;;  %v3842_v46 = vpop.xlane.xlu0 %3841 }
 0x412   :  { %v3839_v30 = vpop.xlane.xlu1 %3838  ;;  %v4189_v19 = vmul.f32 %v5517_v20, %v9108_v5  ;;  %5526 = vrsqrt.f32 %v4068_v8  ;;  %v4006_v7 = vmul.f32 0.015625, %v3842_v46  ;;  %v9109_v20 = vld [vmem:[#allocation5_spill] sm:$0xff] }
 0x413   :  { %v4005_v60 = vmul.f32 0.015625, %v3839_v30  ;;  %4393 = vst.msk [vmem:[#allocation2 + $0x10] sm:$0xff] %vm3416_vm0, %v4329_v16  ;;  %v4261_v13 = vmul.f32 %v8643_v52, %v4190_v25  ;;  %5528 = vrsqrt.f32 %v4067_v43 }
 0x414   :  { %v5519_v35 = vpop.eup %5518  ;;  %v4260_v21 = vmul.f32 %v8643_v52, %v4189_v19  ;;  %v4070_v17 = vadd.f32 1e-05, %v4006_v7 }
 0x415   :  { %v4069_v40 = vadd.f32 1e-05, %v4005_v60  ;;  %v5521_v39 = vpop.eup %5520  ;;  %v4332_v0 = vadd.f32 %v8649_v63, %v4261_v13  ;;  %v4192_v28 = vmul.f32 %v5519_v35, %v8296_v42  ;;  %v3848_v58 = vpop.xlane.xlu0 %3847 }
 0x416   :  { %v3845_v38 = vpop.xlane.xlu1 %3844  ;;  %v4331_v8 = vadd.f32 %v8649_v63, %v4260_v21  ;;  %v4191_v46 = vmul.f32 %v5521_v39, %v9109_v20  ;;  %5530 = vrsqrt.f32 %v4070_v17  ;;  %v4008_v16 = vmul.f32 0.015625, %v3848_v58 }
 0x417   :  { %4396 = vst.msk [vmem:[#allocation2 + $0x28] sm:$0xff] %vm3416_vm0, %v4332_v0  ;;  %v4263_v43 = vmul.f32 %v8643_v52, %v4192_v28  ;;  %5532 = vrsqrt.f32 %v4069_v40  ;;  %v4007_v25 = vmul.f32 0.015625, %v3845_v38 }
 0x418   :  { %v5523_v30 = vpop.eup %5522  ;;  %4395 = vst.msk [vmem:[#allocation2 + $0x20] sm:$0xff] %vm3416_vm0, %v4331_v8  ;;  %v4262_v5 = vmul.f32 %v8643_v52, %v4191_v46  ;;  %v4072_v42 = vadd.f32 1e-05, %v4008_v16 }
 0x419   :  { %v5525_v19 = vpop.eup %5524  ;;  %v4334_v7 = vadd.f32 %v8649_v63, %v4263_v43  ;;  %v4194_v60 = vmul.f32 %v5523_v30, %v8307_v59  ;;  %v4071_v13 = vadd.f32 1e-05, %v4007_v25  ;;  %v3854_v35 = vpop.xlane.xlu0 %3853 }
 0x41a   :  { %v3851_v21 = vpop.xlane.xlu1 %3850  ;;  %v4333_v17 = vadd.f32 %v8649_v63, %v4262_v5  ;;  %v4193_v39 = vmul.f32 %v5525_v19, %v8299_v27  ;;  %5534 = vrsqrt.f32 %v4072_v42  ;;  %v4010_v40 = vmul.f32 0.015625, %v3854_v35 }
 0x41b   :  { %4398 = vst.msk [vmem:[#allocation2 + $0x38] sm:$0xff] %vm3416_vm0, %v4334_v7  ;;  %v4265_v0 = vmul.f32 %v8643_v52, %v4194_v60  ;;  %5536 = vrsqrt.f32 %v4071_v13  ;;  %v4009_v28 = vmul.f32 0.015625, %v3851_v21 }
 0x41c   :  { %v5527_v58 = vpop.eup %5526  ;;  %4397 = vst.msk [vmem:[#allocation2 + $0x30] sm:$0xff] %vm3416_vm0, %v4333_v17  ;;  %v4264_v59 = vmul.f32 %v8643_v52, %v4193_v39  ;;  %v4074_v38 = vadd.f32 1e-05, %v4010_v40 }
 0x41d   :  { %v5529_v8 = vpop.eup %5528  ;;  %v4336_v20 = vadd.f32 %v8649_v63, %v4265_v0  ;;  %v4196_v46 = vmul.f32 %v5527_v58, %v8320_v55  ;;  %v4073_v27 = vadd.f32 1e-05, %v4009_v28  ;;  %v3860_v16 = vpop.xlane.xlu0 %3859 }
 0x41e   :  { %v3857_v43 = vpop.xlane.xlu1 %3856  ;;  %v4335_v25 = vadd.f32 %v8649_v63, %v4264_v59  ;;  %v4195_v30 = vmul.f32 %v5529_v8, %v8310_v4  ;;  %5538 = vrsqrt.f32 %v4074_v38  ;;  %v4012_v5 = vmul.f32 0.015625, %v3860_v16 }
 0x41f   :  { %4400 = vst.msk [vmem:[#allocation2 + $0x48] sm:$0xff] %vm3416_vm0, %v4336_v20  ;;  %v4267_v42 = vmul.f32 %v8643_v52, %v4196_v46  ;;  %5540 = vrsqrt.f32 %v4073_v27  ;;  %v4011_v19 = vmul.f32 0.015625, %v3857_v43 }
 0x420   :  { %v5531_v7 = vpop.eup %5530  ;;  %4399 = vst.msk [vmem:[#allocation2 + $0x40] sm:$0xff] %vm3416_vm0, %v4335_v25  ;;  %v4266_v55 = vmul.f32 %v8643_v52, %v4195_v30  ;;  %v4076_v60 = vadd.f32 1e-05, %v4012_v5 }
 0x421   :  { %v5533_v13 = vpop.eup %5532  ;;  %v4338_v35 = vadd.f32 %v8649_v63, %v4267_v42  ;;  %v4198_v21 = vmul.f32 %v5531_v7, %v8331_v10  ;;  %v4075_v4 = vadd.f32 1e-05, %v4011_v19  ;;  %v3866_v17 = vpop.xlane.xlu0 %3865 }
 0x422   :  { %v3863_v39 = vpop.xlane.xlu1 %3862  ;;  %v4337_v40 = vadd.f32 %v8649_v63, %v4266_v55  ;;  %v4197_v0 = vmul.f32 %v5533_v13, %v8323_v1  ;;  %5542 = vrsqrt.f32 %v4076_v60  ;;  %v4014_v28 = vmul.f32 0.015625, %v3866_v17 }
 0x423   :  { %4402 = vst.msk [vmem:[#allocation2 + $0x58] sm:$0xff] %vm3416_vm0, %v4338_v35  ;;  %v4269_v58 = vmul.f32 %v8643_v52, %v4198_v21  ;;  %5544 = vrsqrt.f32 %v4075_v4  ;;  %v4013_v59 = vmul.f32 0.015625, %v3863_v39 }
 0x424   :  { %v5535_v38 = vpop.eup %5534  ;;  %4401 = vst.msk [vmem:[#allocation2 + $0x50] sm:$0xff] %vm3416_vm0, %v4337_v40  ;;  %v4268_v10 = vmul.f32 %v8643_v52, %v4197_v0  ;;  %v4078_v8 = vadd.f32 1e-05, %v4014_v28 }
 0x425   :  { %v5537_v20 = vpop.eup %5536  ;;  %v4340_v46 = vadd.f32 %v8649_v63, %v4269_v58  ;;  %v4200_v27 = vmul.f32 %v5535_v38, %v8344_v57  ;;  %v4077_v1 = vadd.f32 1e-05, %v4013_v59  ;;  %v3872_v16 = vpop.xlane.xlu0 %3871 }
 0x426   :  { %v3869_v43 = vpop.xlane.xlu1 %3868  ;;  %v4339_v25 = vadd.f32 %v8649_v63, %v4268_v10  ;;  %v4199_v30 = vmul.f32 %v5537_v20, %v8334_v9  ;;  %5546 = vrsqrt.f32 %v4078_v8  ;;  %v4016_v5 = vmul.f32 0.015625, %v3872_v16 }
 0x427   :  { %4404 = vst.msk [vmem:[#allocation2 + $0x68] sm:$0xff] %vm3416_vm0, %v4340_v46  ;;  %v4271_v42 = vmul.f32 %v8643_v52, %v4200_v27  ;;  %5548 = vrsqrt.f32 %v4077_v1  ;;  %v4015_v19 = vmul.f32 0.015625, %v3869_v43 }
 0x428   :  { %v5539_v7 = vpop.eup %5538  ;;  %4403 = vst.msk [vmem:[#allocation2 + $0x60] sm:$0xff] %vm3416_vm0, %v4339_v25  ;;  %v4270_v57 = vmul.f32 %v8643_v52, %v4199_v30  ;;  %v4080_v55 = vadd.f32 1e-05, %v4016_v5 }
 0x429   :  { %v5541_v60 = vpop.eup %5540  ;;  %v4342_v13 = vadd.f32 %v8649_v63, %v4271_v42  ;;  %v4202_v35 = vmul.f32 %v5539_v7, %v8355_v53  ;;  %v4079_v9 = vadd.f32 1e-05, %v4015_v19  ;;  %v3878_v21 = vpop.xlane.xlu0 %3877 }
 0x42a   :  { %v3875_v4 = vpop.xlane.xlu1 %3874  ;;  %v4341_v17 = vadd.f32 %v8649_v63, %v4270_v57  ;;  %v4201_v39 = vmul.f32 %v5541_v60, %v8347_v29  ;;  %5550 = vrsqrt.f32 %v4080_v55  ;;  %v4018_v40 = vmul.f32 0.015625, %v3878_v21 }
 0x42b   :  { %4406 = vst.msk [vmem:[#allocation2 + $0x78] sm:$0xff] %vm3416_vm0, %v4342_v13  ;;  %v4273_v0 = vmul.f32 %v8643_v52, %v4202_v35  ;;  %5552 = vrsqrt.f32 %v4079_v9  ;;  %v4017_v28 = vmul.f32 0.015625, %v3875_v4 }
 0x42c   :  { %v5543_v58 = vpop.eup %5542  ;;  %4405 = vst.msk [vmem:[#allocation2 + $0x70] sm:$0xff] %vm3416_vm0, %v4341_v17  ;;  %v4272_v53 = vmul.f32 %v8643_v52, %v4201_v39  ;;  %v4082_v59 = vadd.f32 1e-05, %v4018_v40 }
 0x42d   :  { %v5545_v38 = vpop.eup %5544  ;;  %v4344_v10 = vadd.f32 %v8649_v63, %v4273_v0  ;;  %v4204_v8 = vmul.f32 %v5543_v58, %v8368_v54  ;;  %v4081_v29 = vadd.f32 1e-05, %v4017_v28  ;;  %v3884_v20 = vpop.xlane.xlu0 %3883 }
 0x42e   :  { %v3881_v46 = vpop.xlane.xlu1 %3880  ;;  %v4343_v27 = vadd.f32 %v8649_v63, %v4272_v53  ;;  %v4203_v1 = vmul.f32 %v5545_v38, %v8358_v15  ;;  %5554 = vrsqrt.f32 %v4082_v59  ;;  %v4020_v16 = vmul.f32 0.015625, %v3884_v20 }
 0x42f   :  { %4408 = vst.msk [vmem:[#allocation2 + $0x88] sm:$0xff] %vm3416_vm0, %v4344_v10  ;;  %v4275_v43 = vmul.f32 %v8643_v52, %v4204_v8  ;;  %5556 = vrsqrt.f32 %v4081_v29  ;;  %v4019_v25 = vmul.f32 0.015625, %v3881_v46 }
 0x430   :  { %v5547_v30 = vpop.eup %5546  ;;  %4407 = vst.msk [vmem:[#allocation2 + $0x80] sm:$0xff] %vm3416_vm0, %v4343_v27  ;;  %v4274_v54 = vmul.f32 %v8643_v52, %v4203_v1  ;;  %v4084_v5 = vadd.f32 1e-05, %v4020_v16 }
 0x431   :  { %v5549_v42 = vpop.eup %5548  ;;  %v4346_v19 = vadd.f32 %v8649_v63, %v4275_v43  ;;  %v4206_v7 = vmul.f32 %v5547_v30, %v8379_v18  ;;  %v4083_v15 = vadd.f32 1e-05, %v4019_v25  ;;  %v3890_v57 = vpop.xlane.xlu0 %3889 }
 0x432   :  { %v3887_v55 = vpop.xlane.xlu1 %3886  ;;  %v4345_v60 = vadd.f32 %v8649_v63, %v4274_v54  ;;  %v4205_v13 = vmul.f32 %v5549_v42, %v8371_v6  ;;  %5558 = vrsqrt.f32 %v4084_v5  ;;  %v4022_v35 = vmul.f32 0.015625, %v3890_v57 }
 0x433   :  { %4410 = vst.msk [vmem:[#allocation2 + $0x98] sm:$0xff] %vm3416_vm0, %v4346_v19  ;;  %v4277_v9 = vmul.f32 %v8643_v52, %v4206_v7  ;;  %5560 = vrsqrt.f32 %v4083_v15  ;;  %v4021_v21 = vmul.f32 0.015625, %v3887_v55 }
 0x434   :  { %v5551_v4 = vpop.eup %5550  ;;  %4409 = vst.msk [vmem:[#allocation2 + $0x90] sm:$0xff] %vm3416_vm0, %v4345_v60  ;;  %v4276_v18 = vmul.f32 %v8643_v52, %v4205_v13  ;;  %v4086_v17 = vadd.f32 1e-05, %v4022_v35 }
 0x435   :  { %v5553_v39 = vpop.eup %5552  ;;  %v4348_v40 = vadd.f32 %v8649_v63, %v4277_v9  ;;  %v4208_v0 = vmul.f32 %v5551_v4, %v8392_v24  ;;  %v4085_v6 = vadd.f32 1e-05, %v4021_v21  ;;  %v3896_v28 = vpop.xlane.xlu0 %3895 }
 0x436   :  { %v3893_v58 = vpop.xlane.xlu1 %3892  ;;  %v4347_v53 = vadd.f32 %v8649_v63, %v4276_v18  ;;  %v4207_v59 = vmul.f32 %v5553_v39, %v8382_v49  ;;  %5562 = vrsqrt.f32 %v4086_v17  ;;  %v4024_v38 = vmul.f32 0.015625, %v3896_v28 }
 0x437   :  { %4412 = vst.msk [vmem:[#allocation2 + $0xa8] sm:$0xff] %vm3416_vm0, %v4348_v40  ;;  %v4279_v10 = vmul.f32 %v8643_v52, %v4208_v0  ;;  %5564 = vrsqrt.f32 %v4085_v6  ;;  %v4023_v8 = vmul.f32 0.015625, %v3893_v58 }
 0x438   :  { %v5555_v29 = vpop.eup %5554  ;;  %4411 = vst.msk [vmem:[#allocation2 + $0xa0] sm:$0xff] %vm3416_vm0, %v4347_v53  ;;  %v4278_v24 = vmul.f32 %v8643_v52, %v4207_v59  ;;  %v4088_v20 = vadd.f32 1e-05, %v4024_v38 }
 0x439   :  { %v5557_v46 = vpop.eup %5556  ;;  %v4350_v27 = vadd.f32 %v8649_v63, %v4279_v10  ;;  %v4210_v1 = vmul.f32 %v5555_v29, %v8403_v32  ;;  %v4087_v49 = vadd.f32 1e-05, %v4023_v8  ;;  %v3902_v16 = vpop.xlane.xlu0 %3901 }
 0x43a   :  { %v3899_v43 = vpop.xlane.xlu1 %3898  ;;  %v4349_v25 = vadd.f32 %v8649_v63, %v4278_v24  ;;  %v4209_v30 = vmul.f32 %v5557_v46, %v8395_v37  ;;  %5566 = vrsqrt.f32 %v4088_v20  ;;  %v4026_v54 = vmul.f32 0.015625, %v3902_v16 }
 0x43b   :  { %4414 = vst.msk [vmem:[#allocation2 + $0xb8] sm:$0xff] %vm3416_vm0, %v4350_v27  ;;  %v4281_v5 = vmul.f32 %v8643_v52, %v4210_v1  ;;  %5568 = vrsqrt.f32 %v4087_v49  ;;  %v4025_v42 = vmul.f32 0.015625, %v3899_v43 }
 0x43c   :  { %v5559_v19 = vpop.eup %5558  ;;  %4413 = vst.msk [vmem:[#allocation2 + $0xb0] sm:$0xff] %vm3416_vm0, %v4349_v25  ;;  %v4280_v32 = vmul.f32 %v8643_v52, %v4209_v30  ;;  %v4090_v7 = vadd.f32 1e-05, %v4026_v54 }
 0x43d   :  { %v5561_v15 = vpop.eup %5560  ;;  %v4352_v57 = vadd.f32 %v8649_v63, %v4281_v5  ;;  %v4212_v55 = vmul.f32 %v5559_v19, %v8416_v44  ;;  %v4089_v37 = vadd.f32 1e-05, %v4025_v42  ;;  %v3908_v60 = vpop.xlane.xlu0 %3907 }
 0x43e   :  { %v3905_v13 = vpop.xlane.xlu1 %3904  ;;  %v4351_v35 = vadd.f32 %v8649_v63, %v4280_v32  ;;  %v4211_v9 = vmul.f32 %v5561_v15, %v8406_v2  ;;  %5570 = vrsqrt.f32 %v4090_v7  ;;  %v4028_v21 = vmul.f32 0.015625, %v3908_v60 }
 0x43f   :  { %4416 = vst.msk [vmem:[#allocation2 + $0xc8] sm:$0xff] %vm3416_vm0, %v4352_v57  ;;  %v4283_v4 = vmul.f32 %v8643_v52, %v4212_v55  ;;  %5572 = vrsqrt.f32 %v4089_v37  ;;  %v4027_v18 = vmul.f32 0.015625, %v3905_v13 }
 0x440   :  { %v5563_v17 = vpop.eup %5562  ;;  %4415 = vst.msk [vmem:[#allocation2 + $0xc0] sm:$0xff] %vm3416_vm0, %v4351_v35  ;;  %v4282_v44 = vmul.f32 %v8643_v52, %v4211_v9  ;;  %v4092_v39 = vadd.f32 1e-05, %v4028_v21 }
 0x441   :  { %v5565_v40 = vpop.eup %5564  ;;  %v4354_v0 = vadd.f32 %v8649_v63, %v4283_v4  ;;  %v4214_v6 = vmul.f32 %v5563_v17, %v8427_v14  ;;  %v4091_v2 = vadd.f32 1e-05, %v4027_v18  ;;  %v3914_v28 = vpop.xlane.xlu0 %3913 }
 0x442   :  { %v3911_v58 = vpop.xlane.xlu1 %3910  ;;  %v4353_v53 = vadd.f32 %v8649_v63, %v4282_v44  ;;  %v4213_v59 = vmul.f32 %v5565_v40, %v8419_v50  ;;  %5574 = vrsqrt.f32 %v4092_v39  ;;  %v4030_v38 = vmul.f32 0.015625, %v3914_v28 }
 0x443   :  { %4418 = vst.msk [vmem:[#allocation2 + $0xd8] sm:$0xff] %vm3416_vm0, %v4354_v0  ;;  %v4285_v10 = vmul.f32 %v8643_v52, %v4214_v6  ;;  %5576 = vrsqrt.f32 %v4091_v2  ;;  %v4029_v8 = vmul.f32 0.015625, %v3911_v58 }
 0x444   :  { %v5567_v29 = vpop.eup %5566  ;;  %4417 = vst.msk [vmem:[#allocation2 + $0xd0] sm:$0xff] %vm3416_vm0, %v4353_v53  ;;  %v4284_v14 = vmul.f32 %v8643_v52, %v4213_v59  ;;  %v4094_v24 = vadd.f32 1e-05, %v4030_v38 }
 0x445   :  { %v5569_v20 = vpop.eup %5568  ;;  %v4356_v46 = vadd.f32 %v8649_v63, %v4285_v10  ;;  %v4216_v27 = vmul.f32 %v5567_v29, %v8440_v3  ;;  %v4093_v50 = vadd.f32 1e-05, %v4029_v8  ;;  %v3920_v1 = vpop.xlane.xlu0 %3919 }
 0x446   :  { %v3917_v49 = vpop.xlane.xlu1 %3916  ;;  %v4355_v16 = vadd.f32 %v8649_v63, %v4284_v14  ;;  %v4215_v43 = vmul.f32 %v5569_v20, %v8430_v26  ;;  %5578 = vrsqrt.f32 %v4094_v24  ;;  %v4032_v25 = vmul.f32 0.015625, %v3920_v1 }
 0x447   :  { %4420 = vst.msk [vmem:[#allocation2 + $0xe8] sm:$0xff] %vm3416_vm0, %v4356_v46  ;;  %v4287_v30 = vmul.f32 %v8643_v52, %v4216_v27  ;;  %5580 = vrsqrt.f32 %v4093_v50  ;;  %v4031_v54 = vmul.f32 0.015625, %v3917_v49 }
 0x448   :  { %v5571_v5 = vpop.eup %5570  ;;  %4419 = vst.msk [vmem:[#allocation2 + $0xe0] sm:$0xff] %vm3416_vm0, %v4355_v16  ;;  %v4286_v3 = vmul.f32 %v8643_v52, %v4215_v43  ;;  %v4096_v42 = vadd.f32 1e-05, %v4032_v25 }
 0x449   :  { %v5573_v19 = vpop.eup %5572  ;;  %v4358_v32 = vadd.f32 %v8649_v63, %v4287_v30  ;;  %v4218_v7 = vmul.f32 %v5571_v5, %v8451_v62  ;;  %v4095_v26 = vadd.f32 1e-05, %v4031_v54  ;;  %v3926_v15 = vpop.xlane.xlu0 %3925  ;;  %v9110_v5 = vld [vmem:[#allocation9_spill] sm:$0xff] }
 0x44a   :  { %v3923_v57 = vpop.xlane.xlu1 %3922  ;;  %v4357_v55 = vadd.f32 %v8649_v63, %v4286_v3  ;;  %v4217_v37 = vmul.f32 %v5573_v19, %v8443_v45  ;;  %5582 = vrsqrt.f32 %v4096_v42  ;;  %v4034_v60 = vmul.f32 0.015625, %v3926_v15 }
 0x44b   :  { %4422 = vst.msk [vmem:[#allocation2 + $0xf8] sm:$0xff] %vm3416_vm0, %v4358_v32  ;;  %v4289_v13 = vmul.f32 %v8643_v52, %v4218_v7  ;;  %5584 = vrsqrt.f32 %v4095_v26  ;;  %v4033_v35 = vmul.f32 0.015625, %v3923_v57 }
 0x44c   :  { %v5575_v9 = vpop.eup %5574  ;;  %4421 = vst.msk [vmem:[#allocation2 + $0xf0] sm:$0xff] %vm3416_vm0, %v4357_v55  ;;  %v4288_v62 = vmul.f32 %v8643_v52, %v4217_v37  ;;  %v4098_v21 = vadd.f32 1e-05, %v4034_v60  ;;  %v9111_v55 = vld [vmem:[#allocation8_spill] sm:$0xff] }
 0x44d   :  { %v5577_v4 = vpop.eup %5576  ;;  %v4360_v18 = vadd.f32 %v8649_v63, %v4289_v13  ;;  %v4220_v17 = vmul.f32 %v5575_v9, %v8464_v12  ;;  %v4097_v45 = vadd.f32 1e-05, %v4033_v35  ;;  %v3932_v44 = vpop.xlane.xlu0 %3931 }
 0x44e   :  { %v3929_v39 = vpop.xlane.xlu1 %3928  ;;  %v4359_v40 = vadd.f32 %v8649_v63, %v4288_v62  ;;  %v4219_v0 = vmul.f32 %v5577_v4, %v8454_v34  ;;  %5586 = vrsqrt.f32 %v4098_v21  ;;  %v4036_v6 = vmul.f32 0.015625, %v3932_v44  ;;  %v9112_v62 = vld [vmem:[#allocation7_spill] sm:$0xff] }
 0x44f   :  { %4424 = vst.msk [vmem:[#allocation2 + $0x108] sm:$0xff] %vm3416_vm0, %v4360_v18  ;;  %v4291_v2 = vmul.f32 %v8643_v52, %v4220_v17  ;;  %5588 = vrsqrt.f32 %v4097_v45  ;;  %v4035_v28 = vmul.f32 0.015625, %v3929_v39 }
 0x450   :  { %v5579_v58 = vpop.eup %5578  ;;  %4423 = vst.msk [vmem:[#allocation2 + $0x100] sm:$0xff] %vm3416_vm0, %v4359_v40  ;;  %v4290_v12 = vmul.f32 %v8643_v52, %v4219_v0  ;;  %v4100_v53 = vadd.f32 1e-05, %v4036_v6 }
 0x451   :  { %v5581_v59 = vpop.eup %5580  ;;  %v4362_v38 = vadd.f32 %v8649_v63, %v4291_v2  ;;  %v4222_v10 = vmul.f32 %v5579_v58, %v8475_v23  ;;  %v4099_v34 = vadd.f32 1e-05, %v4035_v28  ;;  %v3938_v8 = vpop.xlane.xlu0 %3937 }
 0x452   :  { %v3935_v29 = vpop.xlane.xlu1 %3934  ;;  %v4361_v14 = vadd.f32 %v8649_v63, %v4290_v12  ;;  %v4221_v24 = vmul.f32 %v5581_v59, %v8467_v36  ;;  %5590 = vrsqrt.f32 %v4100_v53  ;;  %v4038_v20 = vmul.f32 0.015625, %v3938_v8  ;;  %v9113_v53 = vld [vmem:[#allocation6_spill] sm:$0xff] }
 0x453   :  { %4426 = vst.msk [vmem:[#allocation2 + $0x118] sm:$0xff] %vm3416_vm0, %v4362_v38  ;;  %v4293_v46 = vmul.f32 %v8643_v52, %v4222_v10  ;;  %5592 = vrsqrt.f32 %v4099_v34  ;;  %v4037_v27 = vmul.f32 0.015625, %v3935_v29 }
 0x454   :  { %v5583_v50 = vpop.eup %5582  ;;  %4425 = vst.msk [vmem:[#allocation2 + $0x110] sm:$0xff] %vm3416_vm0, %v4361_v14  ;;  %v4292_v23 = vmul.f32 %v8643_v52, %v4221_v24  ;;  %v4102_v1 = vadd.f32 1e-05, %v4038_v20  ;;  %v9114_v20 = vld [vmem:[#allocation11_spill] sm:$0xff] }
 0x455   :  { %v5585_v49 = vpop.eup %5584  ;;  %v4364_v16 = vadd.f32 %v8649_v63, %v4293_v46  ;;  %v4224_v43 = vmul.f32 %v5583_v50, %v8488_v11  ;;  %v4101_v36 = vadd.f32 1e-05, %v4037_v27  ;;  %v3944_v25 = vpop.xlane.xlu0 %3943 }
 0x456   :  { %v3941_v30 = vpop.xlane.xlu1 %3940  ;;  %v4363_v54 = vadd.f32 %v8649_v63, %v4292_v23  ;;  %v4223_v3 = vmul.f32 %v5585_v49, %v9110_v5  ;;  %5594 = vrsqrt.f32 %v4102_v1  ;;  %v4040_v42 = vmul.f32 0.015625, %v3944_v25  ;;  %v9115_v49 = vld [vmem:[#allocation13_spill] sm:$0xff] }
 0x457   :  { %4428 = vst.msk [vmem:[#allocation2 + $0x128] sm:$0xff] %vm3416_vm0, %v4364_v16  ;;  %v4295_v19 = vmul.f32 %v8643_v52, %v4224_v43  ;;  %5596 = vrsqrt.f32 %v4101_v36  ;;  %v4039_v32 = vmul.f32 0.015625, %v3941_v30 }
 0x458   :  { %v5587_v7 = vpop.eup %5586  ;;  %4427 = vst.msk [vmem:[#allocation2 + $0x120] sm:$0xff] %vm3416_vm0, %v4363_v54  ;;  %v4294_v11 = vmul.f32 %v8643_v52, %v4223_v3  ;;  %v4104_v26 = vadd.f32 1e-05, %v4040_v42 }
 0x459   :  { %v5589_v15 = vpop.eup %5588  ;;  %v4366_v57 = vadd.f32 %v8649_v63, %v4295_v19  ;;  %v4226_v37 = vmul.f32 %v5587_v7, %v9111_v55  ;;  %v4103_v60 = vadd.f32 1e-05, %v4039_v32  ;;  %v3950_v13 = vpop.xlane.xlu0 %3949 }
 0x45a   :  { %v3947_v35 = vpop.xlane.xlu1 %3946  ;;  %v4365_v9 = vadd.f32 %v8649_v63, %v4294_v11  ;;  %v4225_v21 = vmul.f32 %v5589_v15, %v9112_v62  ;;  %5598 = vrsqrt.f32 %v4104_v26  ;;  %v4042_v4 = vmul.f32 0.015625, %v3950_v13  ;;  %v9116_v15 = vld [vmem:[#allocation12_spill] sm:$0xff] }
 0x45b   :  { %4430 = vst.msk [vmem:[#allocation2 + $0x138] sm:$0xff] %vm3416_vm0, %v4366_v57  ;;  %v4297_v18 = vmul.f32 %v8643_v52, %v4226_v37  ;;  %5600 = vrsqrt.f32 %v4103_v60  ;;  %v4041_v17 = vmul.f32 0.015625, %v3947_v35 }
 0x45c   :  { %v5591_v45 = vpop.eup %5590  ;;  %4429 = vst.msk [vmem:[#allocation2 + $0x130] sm:$0xff] %vm3416_vm0, %v4365_v9  ;;  %v4296_v44 = vmul.f32 %v8643_v52, %v4225_v21  ;;  %v4106_v39 = vadd.f32 1e-05, %v4042_v4  ;;  %v9117_v21 = vld [vmem:[#allocation17_spill] sm:$0xff] }
 0x45d   :  { %v5593_v40 = vpop.eup %5592  ;;  %v4368_v0 = vadd.f32 %v8649_v63, %v4297_v18  ;;  %v4228_v6 = vmul.f32 %v5591_v45, %v8512_v41  ;;  %v4105_v2 = vadd.f32 1e-05, %v4041_v17  ;;  %v3956_v28 = vpop.xlane.xlu0 %3955 }
 0x45e   :  { %v3953_v58 = vpop.xlane.xlu1 %3952  ;;  %v4367_v12 = vadd.f32 %v8649_v63, %v4296_v44  ;;  %v4227_v59 = vmul.f32 %v5593_v40, %v9113_v53  ;;  %5602 = vrsqrt.f32 %v4106_v39  ;;  %v4044_v38 = vmul.f32 0.015625, %v3956_v28  ;;  %v9118_v39 = vld [vmem:[#allocation10_spill] sm:$0xff] }
 0x45f   :  { %4432 = vst.msk [vmem:[#allocation2 + $0x148] sm:$0xff] %vm3416_vm0, %v4368_v0  ;;  %v4299_v10 = vmul.f32 %v8643_v52, %v4228_v6  ;;  %5604 = vrsqrt.f32 %v4105_v2  ;;  %v4043_v34 = vmul.f32 0.015625, %v3953_v58 }
 0x460   :  { %v5595_v8 = vpop.eup %5594  ;;  %4431 = vst.msk [vmem:[#allocation2 + $0x140] sm:$0xff] %vm3416_vm0, %v4367_v12  ;;  %v4298_v41 = vmul.f32 %v8643_v52, %v4227_v59  ;;  %v4108_v29 = vadd.f32 1e-05, %v4044_v38 }
 0x461   :  { %v5597_v14 = vpop.eup %5596  ;;  %v4370_v24 = vadd.f32 %v8649_v63, %v4299_v10  ;;  %v4230_v46 = vmul.f32 %v5595_v8, %v9114_v20  ;;  %v4107_v27 = vadd.f32 1e-05, %v4043_v34  ;;  %v3962_v50 = vpop.xlane.xlu0 %3961 }
 0x462   :  { %v3959_v23 = vpop.xlane.xlu1 %3958  ;;  %v4369_v1 = vadd.f32 %v8649_v63, %v4298_v41  ;;  %v4229_v16 = vmul.f32 %v5597_v14, %v9115_v49  ;;  %5606 = vrsqrt.f32 %v4108_v29  ;;  %v4046_v43 = vmul.f32 0.015625, %v3962_v50  ;;  %v9119_v29 = vld [vmem:[#allocation15_spill] sm:$0xff] }
 0x463   :  { %4434 = vst.msk [vmem:[#allocation2 + $0x158] sm:$0xff] %vm3416_vm0, %v4370_v24  ;;  %v4301_v36 = vmul.f32 %v8643_v52, %v4230_v46  ;;  %5608 = vrsqrt.f32 %v4107_v27  ;;  %v4045_v25 = vmul.f32 0.015625, %v3959_v23 }
 0x464   :  { %v5599_v30 = vpop.eup %5598  ;;  %4433 = vst.msk [vmem:[#allocation2 + $0x150] sm:$0xff] %vm3416_vm0, %v4369_v1  ;;  %v4300_v54 = vmul.f32 %v8643_v52, %v4229_v16  ;;  %v4110_v5 = vadd.f32 1e-05, %v4046_v43 }
 0x465   :  { %v5601_v3 = vpop.eup %5600  ;;  %v4372_v42 = vadd.f32 %v8649_v63, %v4301_v36  ;;  %v4232_v19 = vmul.f32 %v5599_v30, %v8536_v31  ;;  %v4109_v32 = vadd.f32 1e-05, %v4045_v25  ;;  %v3968_v7 = vpop.xlane.xlu0 %3967 }
 0x466   :  { %v3965_v11 = vpop.xlane.xlu1 %3964  ;;  %v4371_v26 = vadd.f32 %v8649_v63, %v4300_v54  ;;  %v4231_v57 = vmul.f32 %v5601_v3, %v9116_v15  ;;  %5610 = vrsqrt.f32 %v4110_v5  ;;  %v4048_v55 = vmul.f32 0.015625, %v3968_v7 }
 0x467   :  { %4436 = vst.msk [vmem:[#allocation2 + $0x168] sm:$0xff] %vm3416_vm0, %v4372_v42  ;;  %v4303_v37 = vmul.f32 %v8643_v52, %v4232_v19  ;;  %5612 = vrsqrt.f32 %v4109_v32  ;;  %v4047_v60 = vmul.f32 0.015625, %v3965_v11 }
 0x468   :  { %v5603_v13 = vpop.eup %5602  ;;  %4435 = vst.msk [vmem:[#allocation2 + $0x160] sm:$0xff] %vm3416_vm0, %v4371_v26  ;;  %v4302_v31 = vmul.f32 %v8643_v52, %v4231_v57  ;;  %v4112_v35 = vadd.f32 1e-05, %v4048_v55  ;;  %v9120_v55 = vld [vmem:[#allocation14_spill] sm:$0xff] }
 0x469   :  { %v5605_v9 = vpop.eup %5604  ;;  %v4374_v62 = vadd.f32 %v8649_v63, %v4303_v37  ;;  %v4234_v4 = vmul.f32 %v5603_v13, %v9117_v21  ;;  %v4111_v18 = vadd.f32 1e-05, %v4047_v60  ;;  %v3974_v17 = vpop.xlane.xlu0 %3973 }
 0x46a   :  { %v3971_v45 = vpop.xlane.xlu1 %3970  ;;  %v4373_v44 = vadd.f32 %v8649_v63, %v4302_v31  ;;  %v4233_v40 = vmul.f32 %v5605_v9, %v9118_v39  ;;  %5614 = vrsqrt.f32 %v4112_v35  ;;  %v4050_v0 = vmul.f32 0.015625, %v3974_v17 }
 0x46b   :  { %4438 = vst.msk [vmem:[#allocation2 + $0x178] sm:$0xff] %vm3416_vm0, %v4374_v62  ;;  %v4305_v6 = vmul.f32 %v8643_v52, %v4234_v4  ;;  %5616 = vrsqrt.f32 %v4111_v18  ;;  %v4049_v2 = vmul.f32 0.015625, %v3971_v45 }
 0x46c   :  { %v5607_v28 = vpop.eup %5606  ;;  %4437 = vst.msk [vmem:[#allocation2 + $0x170] sm:$0xff] %vm3416_vm0, %v4373_v44  ;;  %v4304_v58 = vmul.f32 %v8643_v52, %v4233_v40  ;;  %v4114_v12 = vadd.f32 1e-05, %v4050_v0  ;;  %v5698_v44 = vld [vmem:[%s8915_s7] ss:$0 sm:$0xff]  ;;  %s5727_s7 = smov [#allocation2]  }
 0x46d   :  { %v5609_v53 = vpop.eup %5608  ;;  %v4376_v59 = vadd.f32 %v8649_v63, %v4305_v6  ;;  %v4236_v38 = vmul.f32 %v5607_v28, %v8560_v56  ;;  %v4113_v10 = vadd.f32 1e-05, %v4049_v2  ;;  %v3980_v34 = vpop.xlane.xlu0 %3979  ;;  %v9121_v2 = vld [vmem:[#allocation16_spill] sm:$0xff] }
 0x46e   :  { %v3977_v8 = vpop.xlane.xlu1 %3976  ;;  %v4375_v41 = vadd.f32 %v8649_v63, %v4304_v58  ;;  %v4235_v14 = vmul.f32 %v5609_v53, %v9119_v29  ;;  %5618 = vrsqrt.f32 %v4114_v12  ;;  %v4052_v24 = vmul.f32 0.015625, %v3980_v34 }
 0x46f   :  { %4440 = vst.msk [vmem:[#allocation2 + $0x188] sm:$0xff] %vm3416_vm0, %v4376_v59  ;;  %v4307_v20 = vmul.f32 %v8643_v52, %v4236_v38  ;;  %5620 = vrsqrt.f32 %v4113_v10  ;;  %v4051_v46 = vmul.f32 0.015625, %v3977_v8  ;;  %v9122_v10 = vld [vmem:[#allocation19_spill] sm:$0xff] }
 0x470   :  { %v5611_v27 = vpop.eup %5610  ;;  %4439 = vst.msk [vmem:[#allocation2 + $0x180] sm:$0xff] %vm3416_vm0, %v4375_v41  ;;  %v4306_v56 = vmul.f32 %v8643_v52, %v4235_v14  ;;  %v4116_v50 = vadd.f32 1e-05, %v4052_v24  ;;  %v9123_v41 = vld [vmem:[#allocation21_spill] sm:$0xff] }
 0x471   :  { %v5613_v23 = vpop.eup %5612  ;;  %v4378_v1 = vadd.f32 %v8649_v63, %v4307_v20  ;;  %v4238_v49 = vmul.f32 %v5611_v27, %v8571_v61  ;;  %v4115_v16 = vadd.f32 1e-05, %v4051_v46  ;;  %v3986_v43 = vpop.xlane.xlu0 %3985  ;;  %v9124_v27 = vld [vmem:[#allocation23_spill] sm:$0xff] }
 0x472   :  { %v3983_v36 = vpop.xlane.xlu1 %3982  ;;  %v4377_v25 = vadd.f32 %v8649_v63, %v4306_v56  ;;  %v4237_v30 = vmul.f32 %v5613_v23, %v8563_v47  ;;  %5622 = vrsqrt.f32 %v4116_v50  ;;  %v4054_v54 = vmul.f32 0.015625, %v3986_v43  ;;  %v9125_v23 = vld [vmem:[#allocation18_spill] sm:$0xff] }
 0x473   :  { %4442 = vst.msk [vmem:[#allocation2 + $0x198] sm:$0xff] %vm3416_vm0, %v4378_v1  ;;  %v4309_v5 = vmul.f32 %v8643_v52, %v4238_v49  ;;  %5624 = vrsqrt.f32 %v4115_v16  ;;  %v4053_v3 = vmul.f32 0.015625, %v3983_v36 }
 0x474   :  { %v5615_v42 = vpop.eup %5614  ;;  %4441 = vst.msk [vmem:[#allocation2 + $0x190] sm:$0xff] %vm3416_vm0, %v4377_v25  ;;  %v4308_v61 = vmul.f32 %v8643_v52, %v4237_v30  ;;  %v4118_v19 = vadd.f32 1e-05, %v4054_v54 }
 0x475   :  { %v5617_v32 = vpop.eup %5616  ;;  %v4380_v7 = vadd.f32 %v8649_v63, %v4309_v5  ;;  %v4240_v11 = vmul.f32 %v5615_v42, %v8584_v51  ;;  %v4117_v47 = vadd.f32 1e-05, %v4053_v3  ;;  %v3992_v26 = vpop.xlane.xlu0 %3991 }
 0x476   :  { %v3989_v15 = vpop.xlane.xlu1 %3988  ;;  %v4379_v57 = vadd.f32 %v8649_v63, %v4308_v61  ;;  %v4239_v37 = vmul.f32 %v5617_v32, %v9120_v55  ;;  %5626 = vrsqrt.f32 %v4118_v19  ;;  %v4056_v60 = vmul.f32 0.015625, %v3992_v26 }
 0x477   :  { %4444 = vst.msk [vmem:[#allocation2 + $0x1a8] sm:$0xff] %vm3416_vm0, %v4380_v7  ;;  %v4311_v13 = vmul.f32 %v8643_v52, %v4240_v11  ;;  %5628 = vrsqrt.f32 %v4117_v47  ;;  %v4055_v31 = vmul.f32 0.015625, %v3989_v15 }
 0x478   :  { %v5619_v35 = vpop.eup %5618  ;;  %4443 = vst.msk [vmem:[#allocation2 + $0x1a0] sm:$0xff] %vm3416_vm0, %v4379_v57  ;;  %v4310_v51 = vmul.f32 %v8643_v52, %v4239_v37  ;;  %v4120_v9 = vadd.f32 1e-05, %v4056_v60 }
 0x479   :  { %v5621_v62 = vpop.eup %5620  ;;  %v4382_v21 = vadd.f32 %v8649_v63, %v4311_v13  ;;  %v4242_v4 = vmul.f32 %v5619_v35, %v8595_v48  ;;  %v4119_v18 = vadd.f32 1e-05, %v4055_v31  ;;  %v5699_v48 = vld [vmem:[%s8916_s8] ss:$0 sm:$0xff]  ;;  %s4460_s8 = sshll.u32 %s5727_s7, 4  ;;  %s4461_s8 = int_to_ptr.vmem [resolvable:$true] %s4460_s8 }
 0x47a   :  { %v4381_v17 = vadd.f32 %v8649_v63, %v4310_v51  ;;  %v4241_v45 = vmul.f32 %v5621_v62, %v8587_v22  ;;  %5630 = vrsqrt.f32 %v4120_v9  ;;  %s5700_s10 = scalar_lea.vmem %s4461_s8, 8192  ;;  %p5705_p1 = scmp.lt.s32.totalorder %s4461_s8, %s4461_s8 }
 0x47b   :  { %4446 = vst.msk [vmem:[#allocation2 + $0x1b8] sm:$0xff] %vm3416_vm0, %v4382_v21  ;;  %v4313_v39 = vmul.f32 %v5698_v44, %v4242_v4  ;;  %5632 = vrsqrt.f32 %v4119_v18  ;;  %p5701_p0 = scmp.ne.s32.totalorder %s4461_s8, %s5700_s10  ;;  %p5706_p2 = scmp.lt.s32.totalorder %s5700_s10, %s5700_s10 }
 0x47c   :  { %v5623_v52 = vpop.eup %5622  ;;  %4445 = vst.msk [vmem:[#allocation2 + $0x1b0] sm:$0xff] %vm3416_vm0, %v4381_v17  ;;  %v4312_v40 = vmul.f32 %v5698_v44, %v4241_v45 }
 0x47d   :  { %v5625_v0 = vpop.eup %5624  ;;  %v4384_v63 = vadd.f32 %v5699_v48, %v4313_v39  ;;  %v4244_v22 = vmul.f32 %v5623_v52, %v8608_v33  ;;  %p5707_p3 = por %p5706_p2, %p5705_p1 }
 0x47e   :  { %v4383_v6 = vadd.f32 %v5699_v48, %v4312_v40  ;;  %v4243_v28 = vmul.f32 %v5625_v0, %v9121_v2 }
 0x47f   :  { %4448 = vst.msk [vmem:[#allocation2 + $0x1c8] sm:$0xff] %vm3416_vm0, %v4384_v63  ;;  %v4315_v58 = vmul.f32 %v5698_v44, %v4244_v22  ;;  %p5708_p4 = pnand %p5707_p3, %p5701_p0 }
 0x480   :  { %v5627_v12 = vpop.eup %5626  ;;  %4447 = vst.msk [vmem:[#allocation2 + $0x1c0] sm:$0xff] %vm3416_vm0, %v4383_v6  ;;  %v4314_v53 = vmul.f32 %v5698_v44, %v4243_v28 }
 0x481   :  { %v5629_v59 = vpop.eup %5628  ;;  %v4386_v38 = vadd.f32 %v5699_v48, %v4315_v58  ;;  %v4246_v34 = vmul.f32 %v5627_v12, %v9122_v10 }
 0x482   :  { %v4385_v8 = vadd.f32 %v5699_v48, %v4314_v53  ;;  %v4245_v29 = vmul.f32 %v5629_v59, %v9123_v41 }
 0x483   :  { %4450 = vst.msk [vmem:[#allocation2 + $0x1d8] sm:$0xff] %vm3416_vm0, %v4386_v38  ;;  %v4317_v33 = vmul.f32 %v5698_v44, %v4246_v34 }
 0x484   :  { %v5631_v14 = vpop.eup %5630  ;;  %4449 = vst.msk [vmem:[#allocation2 + $0x1d0] sm:$0xff] %vm3416_vm0, %v4385_v8  ;;  %v4316_v24 = vmul.f32 %v5698_v44, %v4245_v29 }
 0x485   :  { %v5633_v20 = vpop.eup %5632  ;;  %v4388_v46 = vadd.f32 %v5699_v48, %v4317_v33  ;;  %v4248_v56 = vmul.f32 %v5631_v14, %v9124_v27 }
 0x486   :  { %v4387_v50 = vadd.f32 %v5699_v48, %v4316_v24  ;;  %v4247_v1 = vmul.f32 %v5633_v20, %v9125_v23 }
 0x487   :  { %4452 = vst.msk [vmem:[#allocation2 + $0x1e8] sm:$0xff] %vm3416_vm0, %v4388_v46  ;;  %v4319_v49 = vmul.f32 %v5698_v44, %v4248_v56 }
 0x488   :  { %4451 = vst.msk [vmem:[#allocation2 + $0x1e0] sm:$0xff] %vm3416_vm0, %v4387_v50  ;;  %v4318_v16 = vmul.f32 %v5698_v44, %v4247_v1 }
 0x489   :  { %v4390_v43 = vadd.f32 %v5699_v48, %v4319_v49 }
 0x48a   :  { %v4389_v36 = vadd.f32 %v5699_v48, %v4318_v16 }
 0x48b   :  { %4454 = vst.msk [vmem:[#allocation2 + $0x1f8] sm:$0xff] %vm3416_vm0, %v4390_v43 }
 0x48c   :  { %4453 = vst.msk [vmem:[#allocation2 + $0x1f0] sm:$0xff] %vm3416_vm0, %v4389_v36 }
 0x48d   :  { %5711 = shalt.err (!%p5708_p4)
}
 0x48e   :  { %s5712_s12 = scalar_lea.hbm %s8917_s9, 8192 }
 0x48f   :  { %p5713_p5 = scmp.ne.s32.totalorder %s8917_s9, %s5712_s12  ;;  %p5716_p6 = scmp.lt.u32.totalorder %s5712_s12, %s8917_s9 }
 0x491   :  { %p5718_p7 = pnand %p5716_p6, %p5713_p5 }
 0x493   :  { %5721 = shalt.err (!%p5718_p7)
}
 0x494   :  { %s5728_s16 = smov 128   ;;  %s5729_s17 = smov 8  }
 0x495   :  { %4466 = dma.vmem_to_hbm [thread:$0]  %s4461_s8, 8192, %s8917_s9, [#allocation3], %s5728_s16, %s5728_s16, %s5729_s17  }
 0x496   :  { %5722 = dma.done.wait [#allocation3], 8192  }
 0x497   :  { %5723 = vsyncadd [#allocation3], 4294959104 }
 0x498   :  { %4470 = vsyncpa [#allocation3], 1 }

</bundles_post_ra>
